<compile_context>
chip_gen: v7x
topology: tpu7x:2x2x1
jax: 0.10.0
libtpu: 0.0.40
codegen_flags: <defaults>
</compile_context>

<pallas_src>
import functools

import jax
import jax.numpy as jnp
from jax.experimental import pallas as pl
from jax.experimental.pallas import tpu as pltpu

# Flip MATMUL_DTYPE / WEIGHT_DTYPE to jnp.bfloat16 on v6e / v7x for higher MXU
# throughput and halved weight DMA (f32 accumulation is kept via
# preferred_element_type).  float32 default matches the torch reference.
MATMUL_DTYPE = jnp.float32
WEIGHT_DTYPE = jnp.float32


# ----------------------------- in-kernel helpers -----------------------------

def _ln(x, gamma, beta, eps=1e-5):
    # x: (R, D), gamma/beta: (1, D); biased variance + eps inside rsqrt, as torch.
    mu = jnp.mean(x, axis=-1, keepdims=True)
    var = jnp.mean(jnp.square(x - mu), axis=-1, keepdims=True)
    return (x - mu) * jax.lax.rsqrt(var + eps) * gamma + beta


def _gelu_exact(x):
    # matches torch.nn.GELU() default (erf based)
    return 0.5 * x * (1.0 + jax.lax.erf(x * jnp.float32(0.7071067811865476)))


def _mm(a, b):
    return jnp.dot(a.astype(MATMUL_DTYPE), b.astype(MATMUL_DTYPE),
                   preferred_element_type=jnp.float32)


def _bmm(a, b):
    # (h, M, K) @ (h, K, N) -> (h, M, N)
    return jax.lax.dot_general(
        a.astype(MATMUL_DTYPE), b.astype(MATMUL_DTYPE),
        dimension_numbers=(((2,), (1,)), ((0,), (0,))),
        preferred_element_type=jnp.float32)


def _bqk(q, k):
    # (h, Q, F) x (h, K, F) -> (h, Q, K)
    return jax.lax.dot_general(
        q.astype(MATMUL_DTYPE), k.astype(MATMUL_DTYPE),
        dimension_numbers=(((2,), (2,)), ((0,), (0,))),
        preferred_element_type=jnp.float32)


# ----------------------------- fused depth kernel -----------------------------

def _kat_depth_kernel(
        x1_ref, x2_ref,
        # get_k  (PreNorm(2D) + FeedForward_hk), LN/W1 pre-split per stream
        gk_ga_ref, gk_gb_ref, gk_ba_ref, gk_bb_ref,
        gk_w1a_ref, gk_w1b_ref, gk_b1_ref, gk_w2_ref, gk_b2_ref,
        # attention (PreNorm_hk + Attention_hk); w_qv has scale folded into q
        at_g_ref, at_b_ref, w_qv_ref, wo_ref, bo_ref,
        # feed-forward (PreNorm + FeedForward)
        ff_g_ref, ff_b_ref, ff_w1_ref, ff_b1_ref, ff_w2_ref, ff_b2_ref,
        # outputs (double as the resident activation carry across depth)
        y1_ref, y2_ref,
        *, heads, dim_head, eps=1e-5):
    layer = pl.program_id(1)

    # First layer for this batch row: initialize the resident activation
    # buffers from the HBM inputs; they stay in VMEM across the depth axis.
    @pl.when(layer == 0)
    def _():
        y1_ref[...] = x1_ref[...]
        y2_ref[...] = x2_ref[...]

    x1 = y1_ref[0].astype(jnp.float32)                 # (N, D)
    x2 = y2_ref[0].astype(jnp.float32)                 # (N, D)
    n, d = x1.shape
    dh = dim_head
    inner = heads * dh

    # ---- stage 1: k = FeedForward_hk(LayerNorm_{2D}(cat(x1, x2))) ----------
    # Joint LN stats pooled over both feature halves; weights pre-split so no
    # lane-dim concatenate is needed.
    mu = (jnp.sum(x1, -1, keepdims=True)
          + jnp.sum(x2, -1, keepdims=True)) / (2.0 * d)
    var = (jnp.sum(jnp.square(x1 - mu), -1, keepdims=True)
           + jnp.sum(jnp.square(x2 - mu), -1, keepdims=True)) / (2.0 * d)
    inv = jax.lax.rsqrt(var + eps)
    xn1 = (x1 - mu) * inv * gk_ga_ref[0] + gk_ba_ref[0]
    xn2 = (x2 - mu) * inv * gk_gb_ref[0] + gk_bb_ref[0]
    h1 = _gelu_exact(_mm(xn1, gk_w1a_ref[0]) + _mm(xn2, gk_w1b_ref[0])
                     + gk_b1_ref[0])                   # (N, mlp)
    k_flat = _mm(h1, gk_w2_ref[0]) + gk_b2_ref[0]      # (N, h*dh) lane-dense

    # ---- stage 2: shared-weight attention on the two row-stacked streams ----
    xs = jnp.concatenate([x1, x2], axis=0)             # (2N, D)
    xn = _ln(xs, at_g_ref[0], at_b_ref[0], eps)
    qv = _mm(xn, w_qv_ref[0])                          # (2N, 2*inner), one GEMM
    q_flat = qv[:, :inner]                             # scale already folded in
    v_flat = qv[:, inner:]

    # Re-expose the head axis only for QK^T / attn@V (static lane slices).
    q_hm = jnp.stack([q_flat[:, h * dh:(h + 1) * dh] for h in range(heads)], 0)
    k_hm = jnp.stack([k_flat[:, h * dh:(h + 1) * dh] for h in range(heads)], 0)
    v_hm = jnp.stack([v_flat[:, h * dh:(h + 1) * dh] for h in range(heads)], 0)

    dots = _bqk(q_hm, k_hm)                            # (h, 2N, N)
    m = jnp.max(dots, axis=-1, keepdims=True)
    p = jnp.exp(dots - m)
    attn = p * pl.reciprocal(jnp.sum(p, axis=-1, keepdims=True), approx=True)

    # v differs per stream -> split on the (cheap, 8-aligned) sublane axis.
    o1 = _bmm(attn[:, :n, :], v_hm[:, :n, :])          # (h, N, dh)
    o2 = _bmm(attn[:, n:, :], v_hm[:, n:, :])          # (h, N, dh)
    # Flatten heads back to a lane-dense (2N, h*dh) for a single to_out GEMM.
    o_flat = jnp.concatenate(
        [jnp.concatenate([o1[h], o2[h]], axis=0) for h in range(heads)],
        axis=-1)                                       # (2N, inner)

    a = _mm(o_flat, wo_ref[0]) + bo_ref[0] + xs        # to_out + residual

    # ---- stage 3: shared FeedForward + residual ------------------------------
    an = _ln(a, ff_g_ref[0], ff_b_ref[0], eps)
    f = _mm(_gelu_exact(_mm(an, ff_w1_ref[0]) + ff_b1_ref[0]),
            ff_w2_ref[0]) + ff_b2_ref[0]
    y = (f + a).astype(y1_ref.dtype)                   # (2N, D)

    y1_ref[0] = y[:n, :]
    y2_ref[0] = y[n:, :]


# --------------------------------- wrapper -----------------------------------

_WEIGHT_ORDER = (
    "gk_ga", "gk_gb", "gk_ba", "gk_bb",
    "gk_w1a", "gk_w1b", "gk_b1", "gk_w2", "gk_b2",
    "at_g", "at_b", "w_qv", "wo", "bo",
    "ff_g", "ff_b", "ff_w1", "ff_b1", "ff_w2", "ff_b2",
)


def _weight_spec(w):
    # Leading depth axis varies with the (innermost) layer grid index.
    return pl.BlockSpec((1,) + w.shape[1:], lambda b, l: (l, 0, 0))


def kat_forward(x1, x2, params, heads, dim_head):
    B, N, D = x1.shape
    depth = params["w_qv"].shape[0]
    weights = [params[name] for name in _WEIGHT_ORDER]
    act_spec = pl.BlockSpec((1, N, D), lambda b, l: (b, 0, 0))
    kern = functools.partial(_kat_depth_kernel, heads=heads, dim_head=dim_head)
    return pl.pallas_call(
        kern,
        out_shape=(jax.ShapeDtypeStruct((B, N, D), x1.dtype),
                   jax.ShapeDtypeStruct((B, N, D), x2.dtype)),
        grid=(B, depth),
        in_specs=[act_spec, act_spec] + [_weight_spec(w) for w in weights],
        out_specs=(act_spec, act_spec),
        compiler_params=pltpu.CompilerParams(
            dimension_semantics=("parallel", "arbitrary"),
            vmem_limit_bytes=48 * 1024 * 1024),
    )(x1, x2, *weights)


# ----------------------------- parameter init --------------------------------

def init_kat_params(key, dim, depth, heads, dim_head, mlp_dim,
                    dtype=WEIGHT_DTYPE):
    """All weights stacked with a leading depth axis.

    Layout vs torch:
      * Linear weights are stored [in_features, out_features] (transposed).
      * to_qkv (bias=False) is one (dim, 2*h*dh) slab; its q half (first
        h*dh columns) is pre-multiplied by dim_head**-0.5.
      * get_k's LayerNorm(2*dim) / Linear(2*dim, mlp) are split into the x1
        and x2 halves.
    """
    assert not (heads == 1 and dim_head == dim), "to_out projection assumed"
    inner = heads * dim_head
    f32 = jnp.float32

    def lin(k, shape, std=0.02):
        return std * jax.random.normal(k, shape, f32)

    ks = jax.random.split(key, 7)
    w_qv = lin(ks[3], (depth, dim, 2 * inner))
    w_qv = w_qv.at[:, :, :inner].multiply(float(dim_head) ** -0.5)

    params = dict(
        gk_ga=jnp.ones((depth, 1, dim), f32), gk_gb=jnp.ones((depth, 1, dim), f32),
        gk_ba=jnp.zeros((depth, 1, dim), f32), gk_bb=jnp.zeros((depth, 1, dim), f32),
        gk_w1a=lin(ks[0], (depth, dim, mlp_dim)),
        gk_w1b=lin(ks[1], (depth, dim, mlp_dim)),
        gk_b1=jnp.zeros((depth, 1, mlp_dim), f32),
        gk_w2=lin(ks[2], (depth, mlp_dim, inner)),
        gk_b2=jnp.zeros((depth, 1, inner), f32),
        at_g=jnp.ones((depth, 1, dim), f32), at_b=jnp.zeros((depth, 1, dim), f32),
        w_qv=w_qv,
        wo=lin(ks[4], (depth, inner, dim)),
        bo=jnp.zeros((depth, 1, dim), f32),
        ff_g=jnp.ones((depth, 1, dim), f32), ff_b=jnp.zeros((depth, 1, dim), f32),
        ff_w1=lin(ks[5], (depth, dim, mlp_dim)),
        ff_b1=jnp.zeros((depth, 1, mlp_dim), f32),
        ff_w2=lin(ks[6], (depth, mlp_dim, dim)),
        ff_b2=jnp.zeros((depth, 1, dim), f32),
    )
    return jax.tree_util.tree_map(lambda a: a.astype(dtype), params)


# ----------------------------------- main -------------------------------------

if __name__ == "__main__":
    # Small but lane-dense demo shapes: D, mlp, h*dh multiples of 128; N % 8 == 0.
    B, N = 2, 16
    dim, depth, heads, dim_head, mlp_dim = 128, 2, 4, 32, 256

    key = jax.random.PRNGKey(0)
    k_p, k_x1, k_x2 = jax.random.split(key, 3)
    params = init_kat_params(k_p, dim, depth, heads, dim_head, mlp_dim)
    x1 = jax.random.normal(k_x1, (B, N, dim), jnp.float32)
    x2 = jax.random.normal(k_x2, (B, N, dim), jnp.float32)

    fwd = jax.jit(functools.partial(kat_forward, heads=heads,
                                    dim_head=dim_head))
    y1, y2 = fwd(x1, x2, params)
    jax.block_until_ready((y1, y2))
    assert y1.shape == (B, N, dim) and y2.shape == (B, N, dim)
    assert bool(jnp.all(jnp.isfinite(y1))) and bool(jnp.all(jnp.isfinite(y2)))
    print("KERNEL_OK")
</pallas_src>

<mosaic_0001>
module attributes {stable_mosaic.version = 11 : i64} {
  func.func @_kat_depth_kernel(%arg0: i32, %arg1: i32, %arg2: memref<1x16x128xf32, #tpu.memory_space<vmem>>, %arg3: memref<1x16x128xf32, #tpu.memory_space<vmem>>, %arg4: memref<1x1x128xf32, #tpu.memory_space<vmem>>, %arg5: memref<1x1x128xf32, #tpu.memory_space<vmem>>, %arg6: memref<1x1x128xf32, #tpu.memory_space<vmem>>, %arg7: memref<1x1x128xf32, #tpu.memory_space<vmem>>, %arg8: memref<1x128x256xf32, #tpu.memory_space<vmem>>, %arg9: memref<1x128x256xf32, #tpu.memory_space<vmem>>, %arg10: memref<1x1x256xf32, #tpu.memory_space<vmem>>, %arg11: memref<1x256x128xf32, #tpu.memory_space<vmem>>, %arg12: memref<1x1x128xf32, #tpu.memory_space<vmem>>, %arg13: memref<1x1x128xf32, #tpu.memory_space<vmem>>, %arg14: memref<1x1x128xf32, #tpu.memory_space<vmem>>, %arg15: memref<1x128x256xf32, #tpu.memory_space<vmem>>, %arg16: memref<1x128x128xf32, #tpu.memory_space<vmem>>, %arg17: memref<1x1x128xf32, #tpu.memory_space<vmem>>, %arg18: memref<1x1x128xf32, #tpu.memory_space<vmem>>, %arg19: memref<1x1x128xf32, #tpu.memory_space<vmem>>, %arg20: memref<1x128x256xf32, #tpu.memory_space<vmem>>, %arg21: memref<1x1x256xf32, #tpu.memory_space<vmem>>, %arg22: memref<1x256x128xf32, #tpu.memory_space<vmem>>, %arg23: memref<1x1x128xf32, #tpu.memory_space<vmem>>, %arg24: memref<1x16x128xf32, #tpu.memory_space<vmem>>, %arg25: memref<1x16x128xf32, #tpu.memory_space<vmem>>) attributes {dimension_semantics = [#tpu.dimension_semantics<parallel>, #tpu.dimension_semantics<arbitrary>], iteration_bounds = array<i64: 2, 2>, scalar_prefetch = 0 : i64, scratch_operands = 0 : i64, tpu.core_type = #tpu.core_type<tc>, window_params = [{transform_indices = @transform_0, window_bounds = array<i64: 1, 16, 128>}, {transform_indices = @transform_1, window_bounds = array<i64: 1, 16, 128>}, {transform_indices = @transform_2, window_bounds = array<i64: 1, 1, 128>}, {transform_indices = @transform_3, window_bounds = array<i64: 1, 1, 128>}, {transform_indices = @transform_4, window_bounds = array<i64: 1, 1, 128>}, {transform_indices = @transform_5, window_bounds = array<i64: 1, 1, 128>}, {transform_indices = @transform_6, window_bounds = array<i64: 1, 128, 256>}, {transform_indices = @transform_7, window_bounds = array<i64: 1, 128, 256>}, {transform_indices = @transform_8, window_bounds = array<i64: 1, 1, 256>}, {transform_indices = @transform_9, window_bounds = array<i64: 1, 256, 128>}, {transform_indices = @transform_10, window_bounds = array<i64: 1, 1, 128>}, {transform_indices = @transform_11, window_bounds = array<i64: 1, 1, 128>}, {transform_indices = @transform_12, window_bounds = array<i64: 1, 1, 128>}, {transform_indices = @transform_13, window_bounds = array<i64: 1, 128, 256>}, {transform_indices = @transform_14, window_bounds = array<i64: 1, 128, 128>}, {transform_indices = @transform_15, window_bounds = array<i64: 1, 1, 128>}, {transform_indices = @transform_16, window_bounds = array<i64: 1, 1, 128>}, {transform_indices = @transform_17, window_bounds = array<i64: 1, 1, 128>}, {transform_indices = @transform_18, window_bounds = array<i64: 1, 128, 256>}, {transform_indices = @transform_19, window_bounds = array<i64: 1, 1, 256>}, {transform_indices = @transform_20, window_bounds = array<i64: 1, 256, 128>}, {transform_indices = @transform_21, window_bounds = array<i64: 1, 1, 128>}, {transform_indices = @transform_22, window_bounds = array<i64: 1, 16, 128>}, {transform_indices = @transform_23, window_bounds = array<i64: 1, 16, 128>}]} {
    %c0_i32 = arith.constant 0 : i32
    %0 = arith.cmpi eq, %arg1, %c0_i32 : i32
    %1 = arith.extui %0 : i1 to i32
    %c0_i32_0 = arith.constant 0 : i32
    %2 = arith.cmpi ne, %1, %c0_i32_0 : i32
    scf.if %2 {
      %c0_106 = arith.constant 0 : index
      %c0_107 = arith.constant 0 : index
      %c0_108 = arith.constant 0 : index
      %242 = vector.load %arg2[%c0_106, %c0_107, %c0_108] : memref<1x16x128xf32, #tpu.memory_space<vmem>>, vector<1x16x128xf32>
      %c0_109 = arith.constant 0 : index
      %c0_110 = arith.constant 0 : index
      %c0_111 = arith.constant 0 : index
      %243 = vector.load %arg24[%c0_109, %c0_110, %c0_111] : memref<1x16x128xf32, #tpu.memory_space<vmem>>, vector<1x16x128xf32>
      tpu.vector_store %arg24[%c0_109, %c0_110, %c0_111], %242 {strides = array<i32>} : memref<1x16x128xf32, #tpu.memory_space<vmem>>, vector<1x16x128xf32>,
      %c0_112 = arith.constant 0 : index
      %c0_113 = arith.constant 0 : index
      %c0_114 = arith.constant 0 : index
      %244 = vector.load %arg3[%c0_112, %c0_113, %c0_114] : memref<1x16x128xf32, #tpu.memory_space<vmem>>, vector<1x16x128xf32>
      %c0_115 = arith.constant 0 : index
      %c0_116 = arith.constant 0 : index
      %c0_117 = arith.constant 0 : index
      %245 = vector.load %arg25[%c0_115, %c0_116, %c0_117] : memref<1x16x128xf32, #tpu.memory_space<vmem>>, vector<1x16x128xf32>
      tpu.vector_store %arg25[%c0_115, %c0_116, %c0_117], %244 {strides = array<i32>} : memref<1x16x128xf32, #tpu.memory_space<vmem>>, vector<1x16x128xf32>,
    } else {
    }
    %c0 = arith.constant 0 : index
    %c0_1 = arith.constant 0 : index
    %c0_2 = arith.constant 0 : index
    %3 = vector.load %arg24[%c0, %c0_1, %c0_2] : memref<1x16x128xf32, #tpu.memory_space<vmem>>, vector<1x16x128xf32>
    %4 = vector.shape_cast %3 : vector<1x16x128xf32> to vector<16x128xf32>
    %c0_3 = arith.constant 0 : index
    %c0_4 = arith.constant 0 : index
    %c0_5 = arith.constant 0 : index
    %5 = vector.load %arg25[%c0_3, %c0_4, %c0_5] : memref<1x16x128xf32, #tpu.memory_space<vmem>>, vector<1x16x128xf32>
    %6 = vector.shape_cast %5 : vector<1x16x128xf32> to vector<16x128xf32>
    %cst = arith.constant dense<0.000000e+00> : vector<16xf32>
    %7 = vector.multi_reduction <add>, %4, %cst [1] : vector<16x128xf32> to vector<16xf32>
    %8 = vector.shape_cast %7 : vector<16xf32> to vector<16x1xf32>
    %cst_6 = arith.constant dense<0.000000e+00> : vector<16xf32>
    %9 = vector.multi_reduction <add>, %6, %cst_6 [1] : vector<16x128xf32> to vector<16xf32>
    %10 = vector.shape_cast %9 : vector<16xf32> to vector<16x1xf32>
    %11 = arith.addf %8, %10 : vector<16x1xf32>
    %cst_7 = arith.constant 2.560000e+02 : f32
    %12 = vector.broadcast %cst_7 : f32 to vector<16x1xf32>
    %13 = arith.divf %11, %12 : vector<16x1xf32>
    %14 = vector.broadcast %13 : vector<16x1xf32> to vector<16x128xf32>
    %15 = arith.subf %4, %14 : vector<16x128xf32>
    %16 = arith.mulf %15, %15 : vector<16x128xf32>
    %cst_8 = arith.constant dense<0.000000e+00> : vector<16xf32>
    %17 = vector.multi_reduction <add>, %16, %cst_8 [1] : vector<16x128xf32> to vector<16xf32>
    %18 = vector.shape_cast %17 : vector<16xf32> to vector<16x1xf32>
    %19 = vector.broadcast %13 : vector<16x1xf32> to vector<16x128xf32>
    %20 = arith.subf %6, %19 : vector<16x128xf32>
    %21 = arith.mulf %20, %20 : vector<16x128xf32>
    %cst_9 = arith.constant dense<0.000000e+00> : vector<16xf32>
    %22 = vector.multi_reduction <add>, %21, %cst_9 [1] : vector<16x128xf32> to vector<16xf32>
    %23 = vector.shape_cast %22 : vector<16xf32> to vector<16x1xf32>
    %24 = arith.addf %18, %23 : vector<16x1xf32>
    %cst_10 = arith.constant 2.560000e+02 : f32
    %25 = vector.broadcast %cst_10 : f32 to vector<16x1xf32>
    %26 = arith.divf %24, %25 : vector<16x1xf32>
    %cst_11 = arith.constant 9.99999974E-6 : f32
    %27 = vector.broadcast %cst_11 : f32 to vector<16x1xf32>
    %28 = arith.addf %26, %27 : vector<16x1xf32>
    %29 = math.rsqrt %28 : vector<16x1xf32>
    %30 = vector.broadcast %13 : vector<16x1xf32> to vector<16x128xf32>
    %31 = arith.subf %4, %30 : vector<16x128xf32>
    %32 = vector.broadcast %29 : vector<16x1xf32> to vector<16x128xf32>
    %33 = arith.mulf %31, %32 : vector<16x128xf32>
    %c0_12 = arith.constant 0 : index
    %c0_13 = arith.constant 0 : index
    %c0_14 = arith.constant 0 : index
    %34 = vector.load %arg4[%c0_12, %c0_13, %c0_14] : memref<1x1x128xf32, #tpu.memory_space<vmem>>, vector<1x1x128xf32>
    %35 = vector.shape_cast %34 : vector<1x1x128xf32> to vector<1x128xf32>
    %36 = vector.broadcast %35 : vector<1x128xf32> to vector<16x128xf32>
    %37 = arith.mulf %33, %36 : vector<16x128xf32>
    %c0_15 = arith.constant 0 : index
    %c0_16 = arith.constant 0 : index
    %c0_17 = arith.constant 0 : index
    %38 = vector.load %arg6[%c0_15, %c0_16, %c0_17] : memref<1x1x128xf32, #tpu.memory_space<vmem>>, vector<1x1x128xf32>
    %39 = vector.shape_cast %38 : vector<1x1x128xf32> to vector<1x128xf32>
    %40 = vector.broadcast %39 : vector<1x128xf32> to vector<16x128xf32>
    %41 = arith.addf %37, %40 : vector<16x128xf32>
    %42 = vector.broadcast %13 : vector<16x1xf32> to vector<16x128xf32>
    %43 = arith.subf %6, %42 : vector<16x128xf32>
    %44 = vector.broadcast %29 : vector<16x1xf32> to vector<16x128xf32>
    %45 = arith.mulf %43, %44 : vector<16x128xf32>
    %c0_18 = arith.constant 0 : index
    %c0_19 = arith.constant 0 : index
    %c0_20 = arith.constant 0 : index
    %46 = vector.load %arg5[%c0_18, %c0_19, %c0_20] : memref<1x1x128xf32, #tpu.memory_space<vmem>>, vector<1x1x128xf32>
    %47 = vector.shape_cast %46 : vector<1x1x128xf32> to vector<1x128xf32>
    %48 = vector.broadcast %47 : vector<1x128xf32> to vector<16x128xf32>
    %49 = arith.mulf %45, %48 : vector<16x128xf32>
    %c0_21 = arith.constant 0 : index
    %c0_22 = arith.constant 0 : index
    %c0_23 = arith.constant 0 : index
    %50 = vector.load %arg7[%c0_21, %c0_22, %c0_23] : memref<1x1x128xf32, #tpu.memory_space<vmem>>, vector<1x1x128xf32>
    %51 = vector.shape_cast %50 : vector<1x1x128xf32> to vector<1x128xf32>
    %52 = vector.broadcast %51 : vector<1x128xf32> to vector<16x128xf32>
    %53 = arith.addf %49, %52 : vector<16x128xf32>
    %c0_24 = arith.constant 0 : index
    %c0_25 = arith.constant 0 : index
    %c0_26 = arith.constant 0 : index
    %54 = vector.load %arg8[%c0_24, %c0_25, %c0_26] : memref<1x128x256xf32, #tpu.memory_space<vmem>>, vector<1x128x256xf32>
    %55 = vector.shape_cast %54 : vector<1x128x256xf32> to vector<128x256xf32>
    %cst_27 = arith.constant dense<0.000000e+00> : vector<16x256xf32>
    %56 = tpu.matmul %41, %55, %cst_27 {dimension_numbers = #tpu.dot_dimension_numbers<[1], [0], [0], [1], [0, 0, 1, 1], [], []>} : vector<16x128xf32>, vector<128x256xf32>, vector<16x256xf32> -> vector<16x256xf32>
    %c0_28 = arith.constant 0 : index
    %c0_29 = arith.constant 0 : index
    %c0_30 = arith.constant 0 : index
    %57 = vector.load %arg9[%c0_28, %c0_29, %c0_30] : memref<1x128x256xf32, #tpu.memory_space<vmem>>, vector<1x128x256xf32>
    %58 = vector.shape_cast %57 : vector<1x128x256xf32> to vector<128x256xf32>
    %cst_31 = arith.constant dense<0.000000e+00> : vector<16x256xf32>
    %59 = tpu.matmul %53, %58, %cst_31 {dimension_numbers = #tpu.dot_dimension_numbers<[1], [0], [0], [1], [0, 0, 1, 1], [], []>} : vector<16x128xf32>, vector<128x256xf32>, vector<16x256xf32> -> vector<16x256xf32>
    %60 = arith.addf %56, %59 : vector<16x256xf32>
    %c0_32 = arith.constant 0 : index
    %c0_33 = arith.constant 0 : index
    %c0_34 = arith.constant 0 : index
    %61 = vector.load %arg10[%c0_32, %c0_33, %c0_34] : memref<1x1x256xf32, #tpu.memory_space<vmem>>, vector<1x1x256xf32>
    %62 = vector.shape_cast %61 : vector<1x1x256xf32> to vector<1x256xf32>
    %63 = vector.broadcast %62 : vector<1x256xf32> to vector<16x256xf32>
    %64 = arith.addf %60, %63 : vector<16x256xf32>
    %cst_35 = arith.constant 5.000000e-01 : f32
    %65 = vector.broadcast %cst_35 : f32 to vector<16x256xf32>
    %66 = arith.mulf %65, %64 : vector<16x256xf32>
    %cst_36 = arith.constant 0.707106769 : f32
    %67 = vector.broadcast %cst_36 : f32 to vector<16x256xf32>
    %68 = arith.mulf %64, %67 : vector<16x256xf32>
    %69 = math.erf %68 : vector<16x256xf32>
    %cst_37 = arith.constant 1.000000e+00 : f32
    %70 = vector.broadcast %cst_37 : f32 to vector<16x256xf32>
    %71 = arith.addf %70, %69 : vector<16x256xf32>
    %72 = arith.mulf %66, %71 : vector<16x256xf32>
    %c0_38 = arith.constant 0 : index
    %c0_39 = arith.constant 0 : index
    %c0_40 = arith.constant 0 : index
    %73 = vector.load %arg11[%c0_38, %c0_39, %c0_40] : memref<1x256x128xf32, #tpu.memory_space<vmem>>, vector<1x256x128xf32>
    %74 = vector.shape_cast %73 : vector<1x256x128xf32> to vector<256x128xf32>
    %cst_41 = arith.constant dense<0.000000e+00> : vector<16x128xf32>
    %75 = tpu.matmul %72, %74, %cst_41 {dimension_numbers = #tpu.dot_dimension_numbers<[1], [0], [0], [1], [0, 0, 1, 1], [], []>} : vector<16x256xf32>, vector<256x128xf32>, vector<16x128xf32> -> vector<16x128xf32>
    %c0_42 = arith.constant 0 : index
    %c0_43 = arith.constant 0 : index
    %c0_44 = arith.constant 0 : index
    %76 = vector.load %arg12[%c0_42, %c0_43, %c0_44] : memref<1x1x128xf32, #tpu.memory_space<vmem>>, vector<1x1x128xf32>
    %77 = vector.shape_cast %76 : vector<1x1x128xf32> to vector<1x128xf32>
    %78 = vector.broadcast %77 : vector<1x128xf32> to vector<16x128xf32>
    %79 = arith.addf %75, %78 : vector<16x128xf32>
    %80 = tpu.concatenate %4, %6 in 0 : vector<16x128xf32>, vector<16x128xf32> -> vector<32x128xf32>
    %c0_45 = arith.constant 0 : index
    %c0_46 = arith.constant 0 : index
    %c0_47 = arith.constant 0 : index
    %81 = vector.load %arg13[%c0_45, %c0_46, %c0_47] : memref<1x1x128xf32, #tpu.memory_space<vmem>>, vector<1x1x128xf32>
    %82 = vector.shape_cast %81 : vector<1x1x128xf32> to vector<1x128xf32>
    %c0_48 = arith.constant 0 : index
    %c0_49 = arith.constant 0 : index
    %c0_50 = arith.constant 0 : index
    %83 = vector.load %arg14[%c0_48, %c0_49, %c0_50] : memref<1x1x128xf32, #tpu.memory_space<vmem>>, vector<1x1x128xf32>
    %84 = vector.shape_cast %83 : vector<1x1x128xf32> to vector<1x128xf32>
    %cst_51 = arith.constant dense<0.000000e+00> : vector<32xf32>
    %85 = vector.multi_reduction <add>, %80, %cst_51 [1] : vector<32x128xf32> to vector<32xf32>
    %86 = vector.shape_cast %85 : vector<32xf32> to vector<32x1xf32>
    %cst_52 = arith.constant 1.280000e+02 : f32
    %87 = vector.broadcast %cst_52 : f32 to vector<32x1xf32>
    %88 = arith.divf %86, %87 : vector<32x1xf32>
    %89 = vector.broadcast %88 : vector<32x1xf32> to vector<32x128xf32>
    %90 = arith.subf %80, %89 : vector<32x128xf32>
    %91 = arith.mulf %90, %90 : vector<32x128xf32>
    %cst_53 = arith.constant dense<0.000000e+00> : vector<32xf32>
    %92 = vector.multi_reduction <add>, %91, %cst_53 [1] : vector<32x128xf32> to vector<32xf32>
    %93 = vector.shape_cast %92 : vector<32xf32> to vector<32x1xf32>
    %cst_54 = arith.constant 1.280000e+02 : f32
    %94 = vector.broadcast %cst_54 : f32 to vector<32x1xf32>
    %95 = arith.divf %93, %94 : vector<32x1xf32>
    %96 = vector.broadcast %88 : vector<32x1xf32> to vector<32x128xf32>
    %97 = arith.subf %80, %96 : vector<32x128xf32>
    %cst_55 = arith.constant 9.99999974E-6 : f32
    %98 = vector.broadcast %cst_55 : f32 to vector<32x1xf32>
    %99 = arith.addf %95, %98 : vector<32x1xf32>
    %100 = math.rsqrt %99 : vector<32x1xf32>
    %101 = vector.broadcast %100 : vector<32x1xf32> to vector<32x128xf32>
    %102 = arith.mulf %97, %101 : vector<32x128xf32>
    %103 = vector.broadcast %82 : vector<1x128xf32> to vector<32x128xf32>
    %104 = arith.mulf %102, %103 : vector<32x128xf32>
    %105 = vector.broadcast %84 : vector<1x128xf32> to vector<32x128xf32>
    %106 = arith.addf %104, %105 : vector<32x128xf32>
    %c0_56 = arith.constant 0 : index
    %c0_57 = arith.constant 0 : index
    %c0_58 = arith.constant 0 : index
    %107 = vector.load %arg15[%c0_56, %c0_57, %c0_58] : memref<1x128x256xf32, #tpu.memory_space<vmem>>, vector<1x128x256xf32>
    %108 = vector.shape_cast %107 : vector<1x128x256xf32> to vector<128x256xf32>
    %cst_59 = arith.constant dense<0.000000e+00> : vector<32x256xf32>
    %109 = tpu.matmul %106, %108, %cst_59 {dimension_numbers = #tpu.dot_dimension_numbers<[1], [0], [0], [1], [0, 0, 1, 1], [], []>} : vector<32x128xf32>, vector<128x256xf32>, vector<32x256xf32> -> vector<32x256xf32>
    %110 = vector.extract_strided_slice %109 {offsets = [0, 0], sizes = [32, 128], strides = [1, 1]} : vector<32x256xf32> to vector<32x128xf32>
    %111 = vector.extract_strided_slice %109 {offsets = [0, 128], sizes = [32, 128], strides = [1, 1]} : vector<32x256xf32> to vector<32x128xf32>
    %112 = vector.extract_strided_slice %110 {offsets = [0, 0], sizes = [32, 32], strides = [1, 1]} : vector<32x128xf32> to vector<32x32xf32>
    %113 = vector.extract_strided_slice %110 {offsets = [0, 32], sizes = [32, 32], strides = [1, 1]} : vector<32x128xf32> to vector<32x32xf32>
    %114 = vector.extract_strided_slice %110 {offsets = [0, 64], sizes = [32, 32], strides = [1, 1]} : vector<32x128xf32> to vector<32x32xf32>
    %115 = vector.extract_strided_slice %110 {offsets = [0, 96], sizes = [32, 32], strides = [1, 1]} : vector<32x128xf32> to vector<32x32xf32>
    %116 = vector.shape_cast %112 : vector<32x32xf32> to vector<1x32x32xf32>
    %117 = vector.shape_cast %113 : vector<32x32xf32> to vector<1x32x32xf32>
    %118 = vector.shape_cast %114 : vector<32x32xf32> to vector<1x32x32xf32>
    %119 = vector.shape_cast %115 : vector<32x32xf32> to vector<1x32x32xf32>
    %120 = tpu.concatenate %116, %117, %118, %119 in 0 : vector<1x32x32xf32>, vector<1x32x32xf32>, vector<1x32x32xf32>, vector<1x32x32xf32> -> vector<4x32x32xf32>
    %121 = vector.extract_strided_slice %79 {offsets = [0, 0], sizes = [16, 32], strides = [1, 1]} : vector<16x128xf32> to vector<16x32xf32>
    %122 = vector.extract_strided_slice %79 {offsets = [0, 32], sizes = [16, 32], strides = [1, 1]} : vector<16x128xf32> to vector<16x32xf32>
    %123 = vector.extract_strided_slice %79 {offsets = [0, 64], sizes = [16, 32], strides = [1, 1]} : vector<16x128xf32> to vector<16x32xf32>
    %124 = vector.extract_strided_slice %79 {offsets = [0, 96], sizes = [16, 32], strides = [1, 1]} : vector<16x128xf32> to vector<16x32xf32>
    %125 = vector.shape_cast %121 : vector<16x32xf32> to vector<1x16x32xf32>
    %126 = vector.shape_cast %122 : vector<16x32xf32> to vector<1x16x32xf32>
    %127 = vector.shape_cast %123 : vector<16x32xf32> to vector<1x16x32xf32>
    %128 = vector.shape_cast %124 : vector<16x32xf32> to vector<1x16x32xf32>
    %129 = tpu.concatenate %125, %126, %127, %128 in 0 : vector<1x16x32xf32>, vector<1x16x32xf32>, vector<1x16x32xf32>, vector<1x16x32xf32> -> vector<4x16x32xf32>
    %130 = vector.extract_strided_slice %111 {offsets = [0, 0], sizes = [32, 32], strides = [1, 1]} : vector<32x128xf32> to vector<32x32xf32>
    %131 = vector.extract_strided_slice %111 {offsets = [0, 32], sizes = [32, 32], strides = [1, 1]} : vector<32x128xf32> to vector<32x32xf32>
    %132 = vector.extract_strided_slice %111 {offsets = [0, 64], sizes = [32, 32], strides = [1, 1]} : vector<32x128xf32> to vector<32x32xf32>
    %133 = vector.extract_strided_slice %111 {offsets = [0, 96], sizes = [32, 32], strides = [1, 1]} : vector<32x128xf32> to vector<32x32xf32>
    %134 = vector.shape_cast %130 : vector<32x32xf32> to vector<1x32x32xf32>
    %135 = vector.shape_cast %131 : vector<32x32xf32> to vector<1x32x32xf32>
    %136 = vector.shape_cast %132 : vector<32x32xf32> to vector<1x32x32xf32>
    %137 = vector.shape_cast %133 : vector<32x32xf32> to vector<1x32x32xf32>
    %138 = tpu.concatenate %134, %135, %136, %137 in 0 : vector<1x32x32xf32>, vector<1x32x32xf32>, vector<1x32x32xf32>, vector<1x32x32xf32> -> vector<4x32x32xf32>
    %cst_60 = arith.constant dense<0.000000e+00> : vector<4x32x16xf32>
    %139 = tpu.matmul %120, %129, %cst_60 {dimension_numbers = #tpu.dot_dimension_numbers<[2], [2], [1], [1], [0, 0, 0, 1, 1, 1], [0], [0]>} : vector<4x32x32xf32>, vector<4x16x32xf32>, vector<4x32x16xf32> -> vector<4x32x16xf32>
    %cst_61 = arith.constant dense<0xFF800000> : vector<4x32xf32>
    %140 = vector.multi_reduction <maximumf>, %139, %cst_61 [2] : vector<4x32x16xf32> to vector<4x32xf32>
    %141 = vector.shape_cast %140 : vector<4x32xf32> to vector<4x32x1xf32>
    %142 = vector.broadcast %141 : vector<4x32x1xf32> to vector<4x32x16xf32>
    %143 = arith.subf %139, %142 : vector<4x32x16xf32>
    %144 = math.exp %143 : vector<4x32x16xf32>
    %cst_62 = arith.constant dense<0.000000e+00> : vector<4x32xf32>
    %145 = vector.multi_reduction <add>, %144, %cst_62 [2] : vector<4x32x16xf32> to vector<4x32xf32>
    %146 = vector.shape_cast %145 : vector<4x32xf32> to vector<4x32x1xf32>
    %147 = tpu.reciprocal %146 {approx = true} : vector<4x32x1xf32> -> vector<4x32x1xf32>
    %148 = vector.broadcast %147 : vector<4x32x1xf32> to vector<4x32x16xf32>
    %149 = arith.mulf %144, %148 : vector<4x32x16xf32>
    %150 = vector.extract_strided_slice %149 {offsets = [0, 0, 0], sizes = [4, 16, 16], strides = [1, 1, 1]} : vector<4x32x16xf32> to vector<4x16x16xf32>
    %151 = vector.extract_strided_slice %138 {offsets = [0, 0, 0], sizes = [4, 16, 32], strides = [1, 1, 1]} : vector<4x32x32xf32> to vector<4x16x32xf32>
    %cst_63 = arith.constant dense<0.000000e+00> : vector<4x16x32xf32>
    %152 = tpu.matmul %150, %151, %cst_63 {dimension_numbers = #tpu.dot_dimension_numbers<[2], [1], [1], [2], [0, 0, 0, 1, 1, 2], [0], [0]>} : vector<4x16x16xf32>, vector<4x16x32xf32>, vector<4x16x32xf32> -> vector<4x16x32xf32>
    %153 = vector.extract_strided_slice %149 {offsets = [0, 16, 0], sizes = [4, 16, 16], strides = [1, 1, 1]} : vector<4x32x16xf32> to vector<4x16x16xf32>
    %154 = vector.extract_strided_slice %138 {offsets = [0, 16, 0], sizes = [4, 16, 32], strides = [1, 1, 1]} : vector<4x32x32xf32> to vector<4x16x32xf32>
    %cst_64 = arith.constant dense<0.000000e+00> : vector<4x16x32xf32>
    %155 = tpu.matmul %153, %154, %cst_64 {dimension_numbers = #tpu.dot_dimension_numbers<[2], [1], [1], [2], [0, 0, 0, 1, 1, 2], [0], [0]>} : vector<4x16x16xf32>, vector<4x16x32xf32>, vector<4x16x32xf32> -> vector<4x16x32xf32>
    %156 = vector.extract_strided_slice %152 {offsets = [0, 0, 0], sizes = [1, 16, 32], strides = [1, 1, 1]} : vector<4x16x32xf32> to vector<1x16x32xf32>
    %157 = vector.shape_cast %156 : vector<1x16x32xf32> to vector<16x32xf32>
    %158 = vector.extract_strided_slice %155 {offsets = [0, 0, 0], sizes = [1, 16, 32], strides = [1, 1, 1]} : vector<4x16x32xf32> to vector<1x16x32xf32>
    %159 = vector.shape_cast %158 : vector<1x16x32xf32> to vector<16x32xf32>
    %160 = tpu.concatenate %157, %159 in 0 : vector<16x32xf32>, vector<16x32xf32> -> vector<32x32xf32>
    %161 = vector.extract_strided_slice %152 {offsets = [1, 0, 0], sizes = [1, 16, 32], strides = [1, 1, 1]} : vector<4x16x32xf32> to vector<1x16x32xf32>
    %162 = vector.shape_cast %161 : vector<1x16x32xf32> to vector<16x32xf32>
    %163 = vector.extract_strided_slice %155 {offsets = [1, 0, 0], sizes = [1, 16, 32], strides = [1, 1, 1]} : vector<4x16x32xf32> to vector<1x16x32xf32>
    %164 = vector.shape_cast %163 : vector<1x16x32xf32> to vector<16x32xf32>
    %165 = tpu.concatenate %162, %164 in 0 : vector<16x32xf32>, vector<16x32xf32> -> vector<32x32xf32>
    %166 = vector.extract_strided_slice %152 {offsets = [2, 0, 0], sizes = [1, 16, 32], strides = [1, 1, 1]} : vector<4x16x32xf32> to vector<1x16x32xf32>
    %167 = vector.shape_cast %166 : vector<1x16x32xf32> to vector<16x32xf32>
    %168 = vector.extract_strided_slice %155 {offsets = [2, 0, 0], sizes = [1, 16, 32], strides = [1, 1, 1]} : vector<4x16x32xf32> to vector<1x16x32xf32>
    %169 = vector.shape_cast %168 : vector<1x16x32xf32> to vector<16x32xf32>
    %170 = tpu.concatenate %167, %169 in 0 : vector<16x32xf32>, vector<16x32xf32> -> vector<32x32xf32>
    %171 = vector.extract_strided_slice %152 {offsets = [3, 0, 0], sizes = [1, 16, 32], strides = [1, 1, 1]} : vector<4x16x32xf32> to vector<1x16x32xf32>
    %172 = vector.shape_cast %171 : vector<1x16x32xf32> to vector<16x32xf32>
    %173 = vector.extract_strided_slice %155 {offsets = [3, 0, 0], sizes = [1, 16, 32], strides = [1, 1, 1]} : vector<4x16x32xf32> to vector<1x16x32xf32>
    %174 = vector.shape_cast %173 : vector<1x16x32xf32> to vector<16x32xf32>
    %175 = tpu.concatenate %172, %174 in 0 : vector<16x32xf32>, vector<16x32xf32> -> vector<32x32xf32>
    %176 = tpu.concatenate %160, %165, %170, %175 in 1 : vector<32x32xf32>, vector<32x32xf32>, vector<32x32xf32>, vector<32x32xf32> -> vector<32x128xf32>
    %c0_65 = arith.constant 0 : index
    %c0_66 = arith.constant 0 : index
    %c0_67 = arith.constant 0 : index
    %177 = vector.load %arg16[%c0_65, %c0_66, %c0_67] : memref<1x128x128xf32, #tpu.memory_space<vmem>>, vector<1x128x128xf32>
    %178 = vector.shape_cast %177 : vector<1x128x128xf32> to vector<128x128xf32>
    %cst_68 = arith.constant dense<0.000000e+00> : vector<32x128xf32>
    %179 = tpu.matmul %176, %178, %cst_68 {dimension_numbers = #tpu.dot_dimension_numbers<[1], [0], [0], [1], [0, 0, 1, 1], [], []>} : vector<32x128xf32>, vector<128x128xf32>, vector<32x128xf32> -> vector<32x128xf32>
    %c0_69 = arith.constant 0 : index
    %c0_70 = arith.constant 0 : index
    %c0_71 = arith.constant 0 : index
    %180 = vector.load %arg17[%c0_69, %c0_70, %c0_71] : memref<1x1x128xf32, #tpu.memory_space<vmem>>, vector<1x1x128xf32>
    %181 = vector.shape_cast %180 : vector<1x1x128xf32> to vector<1x128xf32>
    %182 = vector.broadcast %181 : vector<1x128xf32> to vector<32x128xf32>
    %183 = arith.addf %179, %182 : vector<32x128xf32>
    %184 = arith.addf %183, %80 : vector<32x128xf32>
    %c0_72 = arith.constant 0 : index
    %c0_73 = arith.constant 0 : index
    %c0_74 = arith.constant 0 : index
    %185 = vector.load %arg18[%c0_72, %c0_73, %c0_74] : memref<1x1x128xf32, #tpu.memory_space<vmem>>, vector<1x1x128xf32>
    %186 = vector.shape_cast %185 : vector<1x1x128xf32> to vector<1x128xf32>
    %c0_75 = arith.constant 0 : index
    %c0_76 = arith.constant 0 : index
    %c0_77 = arith.constant 0 : index
    %187 = vector.load %arg19[%c0_75, %c0_76, %c0_77] : memref<1x1x128xf32, #tpu.memory_space<vmem>>, vector<1x1x128xf32>
    %188 = vector.shape_cast %187 : vector<1x1x128xf32> to vector<1x128xf32>
    %cst_78 = arith.constant dense<0.000000e+00> : vector<32xf32>
    %189 = vector.multi_reduction <add>, %184, %cst_78 [1] : vector<32x128xf32> to vector<32xf32>
    %190 = vector.shape_cast %189 : vector<32xf32> to vector<32x1xf32>
    %cst_79 = arith.constant 1.280000e+02 : f32
    %191 = vector.broadcast %cst_79 : f32 to vector<32x1xf32>
    %192 = arith.divf %190, %191 : vector<32x1xf32>
    %193 = vector.broadcast %192 : vector<32x1xf32> to vector<32x128xf32>
    %194 = arith.subf %184, %193 : vector<32x128xf32>
    %195 = arith.mulf %194, %194 : vector<32x128xf32>
    %cst_80 = arith.constant dense<0.000000e+00> : vector<32xf32>
    %196 = vector.multi_reduction <add>, %195, %cst_80 [1] : vector<32x128xf32> to vector<32xf32>
    %197 = vector.shape_cast %196 : vector<32xf32> to vector<32x1xf32>
    %cst_81 = arith.constant 1.280000e+02 : f32
    %198 = vector.broadcast %cst_81 : f32 to vector<32x1xf32>
    %199 = arith.divf %197, %198 : vector<32x1xf32>
    %200 = vector.broadcast %192 : vector<32x1xf32> to vector<32x128xf32>
    %201 = arith.subf %184, %200 : vector<32x128xf32>
    %cst_82 = arith.constant 9.99999974E-6 : f32
    %202 = vector.broadcast %cst_82 : f32 to vector<32x1xf32>
    %203 = arith.addf %199, %202 : vector<32x1xf32>
    %204 = math.rsqrt %203 : vector<32x1xf32>
    %205 = vector.broadcast %204 : vector<32x1xf32> to vector<32x128xf32>
    %206 = arith.mulf %201, %205 : vector<32x128xf32>
    %207 = vector.broadcast %186 : vector<1x128xf32> to vector<32x128xf32>
    %208 = arith.mulf %206, %207 : vector<32x128xf32>
    %209 = vector.broadcast %188 : vector<1x128xf32> to vector<32x128xf32>
    %210 = arith.addf %208, %209 : vector<32x128xf32>
    %c0_83 = arith.constant 0 : index
    %c0_84 = arith.constant 0 : index
    %c0_85 = arith.constant 0 : index
    %211 = vector.load %arg20[%c0_83, %c0_84, %c0_85] : memref<1x128x256xf32, #tpu.memory_space<vmem>>, vector<1x128x256xf32>
    %212 = vector.shape_cast %211 : vector<1x128x256xf32> to vector<128x256xf32>
    %cst_86 = arith.constant dense<0.000000e+00> : vector<32x256xf32>
    %213 = tpu.matmul %210, %212, %cst_86 {dimension_numbers = #tpu.dot_dimension_numbers<[1], [0], [0], [1], [0, 0, 1, 1], [], []>} : vector<32x128xf32>, vector<128x256xf32>, vector<32x256xf32> -> vector<32x256xf32>
    %c0_87 = arith.constant 0 : index
    %c0_88 = arith.constant 0 : index
    %c0_89 = arith.constant 0 : index
    %214 = vector.load %arg21[%c0_87, %c0_88, %c0_89] : memref<1x1x256xf32, #tpu.memory_space<vmem>>, vector<1x1x256xf32>
    %215 = vector.shape_cast %214 : vector<1x1x256xf32> to vector<1x256xf32>
    %216 = vector.broadcast %215 : vector<1x256xf32> to vector<32x256xf32>
    %217 = arith.addf %213, %216 : vector<32x256xf32>
    %cst_90 = arith.constant 5.000000e-01 : f32
    %218 = vector.broadcast %cst_90 : f32 to vector<32x256xf32>
    %219 = arith.mulf %218, %217 : vector<32x256xf32>
    %cst_91 = arith.constant 0.707106769 : f32
    %220 = vector.broadcast %cst_91 : f32 to vector<32x256xf32>
    %221 = arith.mulf %217, %220 : vector<32x256xf32>
    %222 = math.erf %221 : vector<32x256xf32>
    %cst_92 = arith.constant 1.000000e+00 : f32
    %223 = vector.broadcast %cst_92 : f32 to vector<32x256xf32>
    %224 = arith.addf %223, %222 : vector<32x256xf32>
    %225 = arith.mulf %219, %224 : vector<32x256xf32>
    %c0_93 = arith.constant 0 : index
    %c0_94 = arith.constant 0 : index
    %c0_95 = arith.constant 0 : index
    %226 = vector.load %arg22[%c0_93, %c0_94, %c0_95] : memref<1x256x128xf32, #tpu.memory_space<vmem>>, vector<1x256x128xf32>
    %227 = vector.shape_cast %226 : vector<1x256x128xf32> to vector<256x128xf32>
    %cst_96 = arith.constant dense<0.000000e+00> : vector<32x128xf32>
    %228 = tpu.matmul %225, %227, %cst_96 {dimension_numbers = #tpu.dot_dimension_numbers<[1], [0], [0], [1], [0, 0, 1, 1], [], []>} : vector<32x256xf32>, vector<256x128xf32>, vector<32x128xf32> -> vector<32x128xf32>
    %c0_97 = arith.constant 0 : index
    %c0_98 = arith.constant 0 : index
    %c0_99 = arith.constant 0 : index
    %229 = vector.load %arg23[%c0_97, %c0_98, %c0_99] : memref<1x1x128xf32, #tpu.memory_space<vmem>>, vector<1x1x128xf32>
    %230 = vector.shape_cast %229 : vector<1x1x128xf32> to vector<1x128xf32>
    %231 = vector.broadcast %230 : vector<1x128xf32> to vector<32x128xf32>
    %232 = arith.addf %228, %231 : vector<32x128xf32>
    %233 = arith.addf %232, %184 : vector<32x128xf32>
    %234 = vector.extract_strided_slice %233 {offsets = [0, 0], sizes = [16, 128], strides = [1, 1]} : vector<32x128xf32> to vector<16x128xf32>
    %c0_100 = arith.constant 0 : index
    %c0_101 = arith.constant 0 : index
    %c0_102 = arith.constant 0 : index
    %235 = vector.load %arg24[%c0_100, %c0_101, %c0_102] : memref<1x16x128xf32, #tpu.memory_space<vmem>>, vector<1x16x128xf32>
    %236 = vector.shape_cast %235 : vector<1x16x128xf32> to vector<16x128xf32>
    %237 = vector.shape_cast %234 : vector<16x128xf32> to vector<1x16x128xf32>
    tpu.vector_store %arg24[%c0_100, %c0_101, %c0_102], %237 {strides = array<i32>} : memref<1x16x128xf32, #tpu.memory_space<vmem>>, vector<1x16x128xf32>,
    %238 = vector.extract_strided_slice %233 {offsets = [16, 0], sizes = [16, 128], strides = [1, 1]} : vector<32x128xf32> to vector<16x128xf32>
    %c0_103 = arith.constant 0 : index
    %c0_104 = arith.constant 0 : index
    %c0_105 = arith.constant 0 : index
    %239 = vector.load %arg25[%c0_103, %c0_104, %c0_105] : memref<1x16x128xf32, #tpu.memory_space<vmem>>, vector<1x16x128xf32>
    %240 = vector.shape_cast %239 : vector<1x16x128xf32> to vector<16x128xf32>
    %241 = vector.shape_cast %238 : vector<16x128xf32> to vector<1x16x128xf32>
    tpu.vector_store %arg25[%c0_103, %c0_104, %c0_105], %241 {strides = array<i32>} : memref<1x16x128xf32, #tpu.memory_space<vmem>>, vector<1x16x128xf32>,
    return
  }
  func.func @transform_0(%arg0: i32, %arg1: i32) -> (i32, i32, i32) {
    %c0_i32 = arith.constant 0 : i32
    %c0_i32_0 = arith.constant 0 : i32
    %c0_i32_1 = arith.constant 0 : i32
    return %arg0, %c0_i32, %c0_i32_0 : i32, i32, i32
  }
  func.func @transform_1(%arg0: i32, %arg1: i32) -> (i32, i32, i32) {
    %c0_i32 = arith.constant 0 : i32
    %c0_i32_0 = arith.constant 0 : i32
    %c0_i32_1 = arith.constant 0 : i32
    return %arg0, %c0_i32, %c0_i32_0 : i32, i32, i32
  }
  func.func @transform_2(%arg0: i32, %arg1: i32) -> (i32, i32, i32) {
    %c0_i32 = arith.constant 0 : i32
    %c0_i32_0 = arith.constant 0 : i32
    %c0_i32_1 = arith.constant 0 : i32
    return %arg1, %c0_i32, %c0_i32_0 : i32, i32, i32
  }
  func.func @transform_3(%arg0: i32, %arg1: i32) -> (i32, i32, i32) {
    %c0_i32 = arith.constant 0 : i32
    %c0_i32_0 = arith.constant 0 : i32
    %c0_i32_1 = arith.constant 0 : i32
    return %arg1, %c0_i32, %c0_i32_0 : i32, i32, i32
  }
  func.func @transform_4(%arg0: i32, %arg1: i32) -> (i32, i32, i32) {
    %c0_i32 = arith.constant 0 : i32
    %c0_i32_0 = arith.constant 0 : i32
    %c0_i32_1 = arith.constant 0 : i32
    return %arg1, %c0_i32, %c0_i32_0 : i32, i32, i32
  }
  func.func @transform_5(%arg0: i32, %arg1: i32) -> (i32, i32, i32) {
    %c0_i32 = arith.constant 0 : i32
    %c0_i32_0 = arith.constant 0 : i32
    %c0_i32_1 = arith.constant 0 : i32
    return %arg1, %c0_i32, %c0_i32_0 : i32, i32, i32
  }
  func.func @transform_6(%arg0: i32, %arg1: i32) -> (i32, i32, i32) {
    %c0_i32 = arith.constant 0 : i32
    %c0_i32_0 = arith.constant 0 : i32
    %c0_i32_1 = arith.constant 0 : i32
    return %arg1, %c0_i32, %c0_i32_0 : i32, i32, i32
  }
  func.func @transform_7(%arg0: i32, %arg1: i32) -> (i32, i32, i32) {
    %c0_i32 = arith.constant 0 : i32
    %c0_i32_0 = arith.constant 0 : i32
    %c0_i32_1 = arith.constant 0 : i32
    return %arg1, %c0_i32, %c0_i32_0 : i32, i32, i32
  }
  func.func @transform_8(%arg0: i32, %arg1: i32) -> (i32, i32, i32) {
    %c0_i32 = arith.constant 0 : i32
    %c0_i32_0 = arith.constant 0 : i32
    %c0_i32_1 = arith.constant 0 : i32
    return %arg1, %c0_i32, %c0_i32_0 : i32, i32, i32
  }
  func.func @transform_9(%arg0: i32, %arg1: i32) -> (i32, i32, i32) {
    %c0_i32 = arith.constant 0 : i32
    %c0_i32_0 = arith.constant 0 : i32
    %c0_i32_1 = arith.constant 0 : i32
    return %arg1, %c0_i32, %c0_i32_0 : i32, i32, i32
  }
  func.func @transform_10(%arg0: i32, %arg1: i32) -> (i32, i32, i32) {
    %c0_i32 = arith.constant 0 : i32
    %c0_i32_0 = arith.constant 0 : i32
    %c0_i32_1 = arith.constant 0 : i32
    return %arg1, %c0_i32, %c0_i32_0 : i32, i32, i32
  }
  func.func @transform_11(%arg0: i32, %arg1: i32) -> (i32, i32, i32) {
    %c0_i32 = arith.constant 0 : i32
    %c0_i32_0 = arith.constant 0 : i32
    %c0_i32_1 = arith.constant 0 : i32
    return %arg1, %c0_i32, %c0_i32_0 : i32, i32, i32
  }
  func.func @transform_12(%arg0: i32, %arg1: i32) -> (i32, i32, i32) {
    %c0_i32 = arith.constant 0 : i32
    %c0_i32_0 = arith.constant 0 : i32
    %c0_i32_1 = arith.constant 0 : i32
    return %arg1, %c0_i32, %c0_i32_0 : i32, i32, i32
  }
  func.func @transform_13(%arg0: i32, %arg1: i32) -> (i32, i32, i32) {
    %c0_i32 = arith.constant 0 : i32
    %c0_i32_0 = arith.constant 0 : i32
    %c0_i32_1 = arith.constant 0 : i32
    return %arg1, %c0_i32, %c0_i32_0 : i32, i32, i32
  }
  func.func @transform_14(%arg0: i32, %arg1: i32) -> (i32, i32, i32) {
    %c0_i32 = arith.constant 0 : i32
    %c0_i32_0 = arith.constant 0 : i32
    %c0_i32_1 = arith.constant 0 : i32
    return %arg1, %c0_i32, %c0_i32_0 : i32, i32, i32
  }
  func.func @transform_15(%arg0: i32, %arg1: i32) -> (i32, i32, i32) {
    %c0_i32 = arith.constant 0 : i32
    %c0_i32_0 = arith.constant 0 : i32
    %c0_i32_1 = arith.constant 0 : i32
    return %arg1, %c0_i32, %c0_i32_0 : i32, i32, i32
  }
  func.func @transform_16(%arg0: i32, %arg1: i32) -> (i32, i32, i32) {
    %c0_i32 = arith.constant 0 : i32
    %c0_i32_0 = arith.constant 0 : i32
    %c0_i32_1 = arith.constant 0 : i32
    return %arg1, %c0_i32, %c0_i32_0 : i32, i32, i32
  }
  func.func @transform_17(%arg0: i32, %arg1: i32) -> (i32, i32, i32) {
    %c0_i32 = arith.constant 0 : i32
    %c0_i32_0 = arith.constant 0 : i32
    %c0_i32_1 = arith.constant 0 : i32
    return %arg1, %c0_i32, %c0_i32_0 : i32, i32, i32
  }
  func.func @transform_18(%arg0: i32, %arg1: i32) -> (i32, i32, i32) {
    %c0_i32 = arith.constant 0 : i32
    %c0_i32_0 = arith.constant 0 : i32
    %c0_i32_1 = arith.constant 0 : i32
    return %arg1, %c0_i32, %c0_i32_0 : i32, i32, i32
  }
  func.func @transform_19(%arg0: i32, %arg1: i32) -> (i32, i32, i32) {
    %c0_i32 = arith.constant 0 : i32
    %c0_i32_0 = arith.constant 0 : i32
    %c0_i32_1 = arith.constant 0 : i32
    return %arg1, %c0_i32, %c0_i32_0 : i32, i32, i32
  }
  func.func @transform_20(%arg0: i32, %arg1: i32) -> (i32, i32, i32) {
    %c0_i32 = arith.constant 0 : i32
    %c0_i32_0 = arith.constant 0 : i32
    %c0_i32_1 = arith.constant 0 : i32
    return %arg1, %c0_i32, %c0_i32_0 : i32, i32, i32
  }
  func.func @transform_21(%arg0: i32, %arg1: i32) -> (i32, i32, i32) {
    %c0_i32 = arith.constant 0 : i32
    %c0_i32_0 = arith.constant 0 : i32
    %c0_i32_1 = arith.constant 0 : i32
    return %arg1, %c0_i32, %c0_i32_0 : i32, i32, i32
  }
  func.func @transform_22(%arg0: i32, %arg1: i32) -> (i32, i32, i32) {
    %c0_i32 = arith.constant 0 : i32
    %c0_i32_0 = arith.constant 0 : i32
    %c0_i32_1 = arith.constant 0 : i32
    return %arg0, %c0_i32, %c0_i32_0 : i32, i32, i32
  }
  func.func @transform_23(%arg0: i32, %arg1: i32) -> (i32, i32, i32) {
    %c0_i32 = arith.constant 0 : i32
    %c0_i32_0 = arith.constant 0 : i32
    %c0_i32_1 = arith.constant 0 : i32
    return %arg0, %c0_i32, %c0_i32_0 : i32, i32, i32
  }
}

</mosaic_0001>

<bundles_post_ra>
// kernel: kat_forward.1
= control target key start
LH: loop header
LB: loop body
LE: loop exit
PB: predicated region body
PF: predicated region fallthrough
CT: control target
= control target key end

     0   :  { %s7588_s0 = inlined_call_operand.hbm [shape: f32[2,16,128], index: 0, kind: input, shape index: {}]   ;;  %s7589_s1 = inlined_call_operand.hbm [shape: f32[2,16,128], index: 1, kind: input, shape index: {}]   ;;  %s7590_s2 = inlined_call_operand.vmem [shape: f32[2,1,128], index: 2, kind: input, shape index: {}]   ;;  %s7591_s3 = inlined_call_operand.vmem [shape: f32[2,1,128], index: 3, kind: input, shape index: {}]   ;;  %s7592_s4 = inlined_call_operand.vmem [shape: f32[2,1,128], index: 4, kind: input, shape index: {}]   ;;  %s7593_s5 = inlined_call_operand.vmem [shape: f32[2,1,128], index: 5, kind: input, shape index: {}]   ;;  %s7594_s6 = inlined_call_operand.hbm [shape: f32[2,128,256], index: 6, kind: input, shape index: {}]   ;;  %s7595_s7 = inlined_call_operand.hbm [shape: f32[2,128,256], index: 7, kind: input, shape index: {}]   ;;  %s7596_s8 = inlined_call_operand.vmem [shape: f32[2,1,256], index: 8, kind: input, shape index: {}]   ;;  %s7597_s9 = inlined_call_operand.hbm [shape: f32[2,256,128], index: 9, kind: input, shape index: {}]   ;;  %s7598_s10 = inlined_call_operand.vmem [shape: f32[2,1,128], index: 10, kind: input, shape index: {}]   ;;  %s7599_s11 = inlined_call_operand.hbm [shape: f32[2,1,128], index: 11, kind: input, shape index: {}]   ;;  %s7600_s12 = inlined_call_operand.hbm [shape: f32[2,1,128], index: 12, kind: input, shape index: {}]   ;;  %s7601_s13 = inlined_call_operand.hbm [shape: f32[2,128,256], index: 13, kind: input, shape index: {}]   ;;  %s7602_s14 = inlined_call_operand.hbm [shape: f32[2,128,128], index: 14, kind: input, shape index: {}]   ;;  %s7603_s15 = inlined_call_operand.hbm [shape: f32[2,1,128], index: 15, kind: input, shape index: {}]   ;;  %s7604_s16 = inlined_call_operand.vmem [shape: f32[2,1,128], index: 16, kind: input, shape index: {}]   ;;  %s7605_s17 = inlined_call_operand.hbm [shape: f32[2,1,128], index: 17, kind: input, shape index: {}]   ;;  %s7606_s18 = inlined_call_operand.hbm [shape: f32[2,128,256], index: 18, kind: input, shape index: {}]   ;;  %s7607_s19 = inlined_call_operand.vmem [shape: f32[2,1,256], index: 19, kind: input, shape index: {}]   ;;  %s7608_s20 = inlined_call_operand.hbm [shape: f32[2,256,128], index: 20, kind: input, shape index: {}]   ;;  %s7609_s21 = inlined_call_operand.vmem [shape: f32[2,1,128], index: 21, kind: input, shape index: {}]   ;;  %s7610_s22 = inlined_call_operand.hbm [shape: f32[2,16,128], index: 22, kind: output, shape index: {0}]   ;;  %s7611_s23 = inlined_call_operand.hbm [shape: f32[2,16,128], index: 23, kind: output, shape index: {1}]  }
   0x1   :  { %7678 = sst [smem:[#allocation58_spill]] %s7588_s0 }
   0x2   :  { %7679 = sst [smem:[#allocation59_spill]] %s7589_s1 }
   0x3   :  { %7680 = sst [smem:[#allocation60_spill]] %s7590_s2 }
   0x4   :  { %7681 = sst [smem:[#allocation61_spill]] %s7591_s3 }
   0x5   :  { %7682 = sst [smem:[#allocation62_spill]] %s7592_s4 }
   0x6   :  { %7683 = sst [smem:[#allocation63_spill]] %s7593_s5 }
   0x7   :  { %7684 = sst [smem:[#allocation64_spill]] %s7594_s6 }
   0x8   :  { %7685 = sst [smem:[#allocation65_spill]] %s7595_s7 }
   0x9   :  { %7686 = sst [smem:[#allocation66_spill]] %s7596_s8 }
   0xa   :  { %7687 = sst [smem:[#allocation67_spill]] %s7597_s9 }
   0xb   :  { %7688 = sst [smem:[#allocation68_spill]] %s7598_s10 }
   0xc   :  { %7689 = sst [smem:[#allocation69_spill]] %s7599_s11 }
   0xd   :  { %7690 = sst [smem:[#allocation70_spill]] %s7600_s12 }
   0xe   :  { %7691 = sst [smem:[#allocation71_spill]] %s7601_s13 }
   0xf   :  { %7692 = sst [smem:[#allocation72_spill]] %s7602_s14 }
  0x10   :  { %7693 = sst [smem:[#allocation73_spill]] %s7603_s15 }
  0x11   :  { %7694 = sst [smem:[#allocation74_spill]] %s7604_s16 }
  0x12   :  { %7695 = sst [smem:[#allocation75_spill]] %s7605_s17 }
  0x13   :  { %7696 = sst [smem:[#allocation76_spill]] %s7606_s18 }
  0x14   :  { %7697 = sst [smem:[#allocation77_spill]] %s7607_s19 }
  0x15   :  { %7698 = sst [smem:[#allocation78_spill]] %s7608_s20 }
  0x16   :  { %7699 = sst [smem:[#allocation79_spill]] %s7609_s21 }
  0x17   :  { %7700 = sst [smem:[#allocation80_spill]] %s7610_s22 }
  0x18   :  { %7701 = sst [smem:[#allocation81_spill]] %s7611_s23 }
  0x19   :  { %29 = vsyncpa [#allocation3], 0 }
  0x1a   :  { %31 = vsyncpa [#allocation3 + $0x1], 0 }
  0x1b   :  { %32 = vsyncpa [#allocation6], 0 }
  0x1c   :  { %34 = vsyncpa [#allocation6 + $0x1], 0 }
  0x1d   :  { %35 = vsyncpa [#allocation9], 0 }
  0x1e   :  { %37 = vsyncpa [#allocation9 + $0x1], 0 }
  0x1f   :  { %38 = vsyncpa [#allocation12], 0 }
  0x20   :  { %40 = vsyncpa [#allocation12 + $0x1], 0 }
  0x21   :  { %41 = vsyncpa [#allocation15], 0 }
  0x22   :  { %43 = vsyncpa [#allocation15 + $0x1], 0 }
  0x23   :  { %44 = vsyncpa [#allocation18], 0 }
  0x24   :  { %46 = vsyncpa [#allocation18 + $0x1], 0 }
  0x25   :  { %47 = vsyncpa [#allocation21], 0 }
  0x26   :  { %49 = vsyncpa [#allocation21 + $0x1], 0 }
  0x27   :  { %50 = vsyncpa [#allocation4], 0 }
  0x28   :  { %52 = vsyncpa [#allocation4 + $0x1], 0 }
  0x29   :  { %53 = vsyncpa [#allocation25], 0 }
  0x2a   :  { %55 = vsyncpa [#allocation25 + $0x1], 0  ;;  %s6067_s4 = smov 0   ;;  %s6069_s30 = smov 0  }
  0x2b   :  { %s6071_s24 = smov 0   ;;  %s6073_s25 = smov 0  }
  0x2c   :  { %s6075_s5 = smov 0   ;;  %s6077_s1 = smov 0  }
  0x2d   :  { %s6079_s26 = smov 0   ;;  %s6081_s2 = smov 0  }
  0x2e   :  { %s6083_s6 = smov 0   ;;  %s6085_s27 = smov 0  }
  0x2f   :  { %s6087_s7 = smov 0  }
  0x30 LB: > { %7702 = sst [smem:[#allocation36_spill]] %s5884_s30  ;;  %s6123_s28 = sadd.s32 4294967295, %s5920_s7   ;;  %s5920_s7 = sphi %s6087_s7, %s61_s7   ;;  %s5916_s27 = sphi %s6085_s27, %s7830_s27   ;;  %s5912_s6 = sphi %s6083_s6, %s7829_s6   ;;  %s5908_s2 = sphi %s6081_s2, %s7828_s2   ;;  %s5904_s26 = sphi %s6079_s26, %s7827_s26   ;;  %s5900_s1 = sphi %s6077_s1, %s7826_s1   ;;  %s5896_s5 = sphi %s6075_s5, %s7825_s5   ;;  %s5892_s25 = sphi %s6073_s25, %s7824_s25   ;;  %s5888_s24 = sphi %s6071_s24, %s7823_s24   ;;  %s5884_s30 = sphi %s6069_s30, %s7822_s30   ;;  %s5880_s4 = sphi %s6067_s4, %s7821_s4  }
  0x31   : > { %7703 = sst [smem:[#allocation37_spill]] %s5888_s24  ;;  %s4289_s29 = sadd.s32 4294967294, %s5920_s7  }
  0x32   : > { %7704 = sst [smem:[#allocation38_spill]] %s5892_s25  ;;  %s70_s3 = sadd.s32 1, %s5912_s6 }
  0x33   : > { %7705 = sst [smem:[#allocation39_spill]] %s5896_s5  ;;  %s73_s0 = sadd.s32 1, %s5916_s27 }
  0x34   : > { %7706 = sst [smem:[#allocation40_spill]] %s5900_s1  ;;  %p71_p0 = scmp.ge.s32.totalorder %s70_s3, 2 }
  0x35   : > { %7707 = sst [smem:[#allocation41_spill]] %s5904_s26  ;;  %s80_s23 = sadd.s32 1, %s5900_s1 }
  0x36   : > { %7708 = sst [smem:[#allocation42_spill]] %s5908_s2  ;;  %p87_p1 = scmp.ne.s32.totalorder %s5900_s1, %s5896_s5 }
  0x37   : > { %7709 = sst [smem:[#allocation43_spill]] %s5912_s6  ;;  %p88_p2 = scmp.eq.s32.totalorder %s5920_s7, 0 }
  0x38   : > { %7710 = sst [smem:[#allocation44_spill]] %s5916_s27  ;;  %s7832_s3 = smov (%p71_p0, %s70_s3), 0 }
  0x39   : > { %7711 = sst [smem:[#allocation45_spill]] %s5920_s7  ;;  %s7834_s0 = smov (!%p71_p0, %s73_s0), %s5916_s27 }
  0x3a   : > { %7712 = sst [smem:[#allocation46_spill]] %s6123_s28  ;;  %p6140_p3 = por %p88_p2, %p87_p1 }
  0x3b   : > { %7713 = sst [smem:[#allocation47_spill]] %s7832_s3  ;;  %p7620_p4 = scmp.ne.s32.totalorder %s5896_s5, %s5892_s25 }
  0x3c   : > { %p75_p5 = scmp.ge.s32.totalorder %s7834_s0, 2  ;;  %p94_p6 = scmp.eq.s32.totalorder %s6123_s28, 0 }
  0x3d   : > { %s233_s2 = ssub.s32 %s5912_s6, %s7832_s3  ;;  %s236_s21 = sadd.s32 1, %s5888_s24 }
  0x3e   : > { %s7836_s0 = smov (%p75_p5, %s7834_s0), 0  ;;  %p6157_p7 = por %p94_p6, %p7620_p4 }
  0x3f   : > { %7715 = sst [smem:[#allocation48_spill]] %s7836_s0  ;;  %p234_p8 = scmp.eq.s32.totalorder %s233_s2, 0 }
  0x40   : > { %s7716_s19 = scalar_select %p6157_p7, 1, 0 }
  0x41   : > { %s77_s16 = ssub.s32 %s5916_s27, %s7836_s0  ;;  %p243_p9 = scmp.ne.s32.totalorder %s5888_s24, %s5884_s30 }
  0x42   : > { %7717 = sst [smem:[#allocation49_spill]] %s7716_s19  ;;  %p78_p10 = scmp.eq.s32.totalorder %s77_s16, 0 }
  0x43   : > { %p249_p11 = scmp.ne.s32.totalorder %s5884_s30, %s5880_s4  ;;  %p6175_p12 = por %p243_p9, %p88_p2 }
  0x44   : > { %s6168_s3 = scalar_select %p234_p8, %s5888_s24, %s236_s21  }
  0x45   : > { %s6171_s8 = scalar_select %p78_p10, %s5900_s1, %s80_s23  }
  0x46   : > { %7718 = sst [smem:[#allocation50_spill]] %s6168_s3  ;;  %p6181_p13 = por %p249_p11, %p94_p6 }
  0x47   : > { %7719 = sst [smem:[#allocation51_spill]] %s6171_s8  ;;  %p663_p0 = scmp.eq.s32.totalorder %s6123_s28, 3 }
  0x48   : > { %s7721_s2 = scalar_select %p6181_p13, 1, 0 }
  0x49   : > { %p669_p5 = scmp.eq.s32.totalorder %s4289_s29, 3  ;;  %p5061_p4 = scmp.lt.s32.totalorder %s5920_s7, 4 }
  0x4a   : > { %7722 = sst [smem:[#allocation52_spill]] %s7721_s2  ;;  %p6190_p7 = por %p663_p0, %p87_p1 }
  0x4b   : > { %p7725_p8 = scmp.ne.s32.totalorder %s5896_s5, %s5892_s25  ;;  %s7627_s23 = sand.u32 1, %s5900_s1  }
  0x4c   : > { %s7723_s16 = scalar_select %p6190_p7, 1, 0 }
  0x4d   : > { %p6197_p10 = por %p669_p5, %p7725_p8  ;;  %s7632_s4 = sshll.u32 %s5916_s27, 8 }
  0x4e   : > { %7724 = sst [smem:[#allocation53_spill]] %s7723_s16  ;;  %s6205_s0 = sshll.u32 %s7627_s23, 4 }
  0x4f   : > { %s7726_s21 = scalar_select %p6197_p10, 1, 0 }
  0x50   : > { %p6209_p2 = pnand %p5061_p4, %p6140_p3  ;;  %s6214_s8 = sand.u32 1, %s5920_s7  }
  0x51   : > { %7727 = sst [smem:[#allocation54_spill]] %s7726_s21  ;;  %s7729_s16 = sld [smem:[#allocation59_spill]] }
  0x52   : > { %s7728_s29 = scalar_select %p6209_p2, 1, 0 }
  0x53   : > { %s740_s22 = scalar_lea.vmem [#allocation5], %s6205_s0  ;;  %p6228_p1 = pnand %p5061_p4, %p6175_p12 }
  0x54   : > { %s747_s23 = sshll.u32 %s740_s22, 4  ;;  %s7640_s2 = scalar_lea.sflag [#allocation6], %s6214_s8  ;;  %s6224_s23 = int_to_ptr.vmem [resolvable:$true] %s747_s23 }
  0x55   : > { %s7730_s26 = scalar_select %p6228_p1, 1, 0 }
  0x56   : > { %p7648_p6 = pneg %p6209_p2 }
  0x57   : > { %s6221_s21 = scalar_lea.hbm %s7729_s16, %s7632_s4  ;;  %s5353_s22 = scalar_lea.hbm %s7729_s16, 512 }
  0x58   : > { %s5348_s30 = scalar_lea.hbm %s6221_s21, 256  ;;  %p5354_p4 = scmp.lt.u32.totalorder %s6221_s21, %s7729_s16 }
  0x59   : > { %p5349_p3 = scmp.ne.s32.totalorder %s6221_s21, %s5348_s30  ;;  %p5355_p12 = scmp.lt.u32.totalorder %s5353_s22, %s5348_s30 }
  0x5a   : > { %p5357_p5 = scmp.lt.u32.totalorder %s5348_s30, %s6221_s21 }
  0x5b   : > { %p5351_p9 = pnand %p7648_p6, %p5349_p3  ;;  %p5356_p0 = por %p5355_p12, %p5354_p4 }
  0x5d   : > { %p5352_p11 = pneg %p5351_p9  ;;  %p5358_p8 = por %p5357_p5, %p5356_p0 }
  0x5f   : > { %p5359_p10 = pnand %p5358_p8, %p5352_p11 }
  0x61   : > { %5362 = shalt.err (!%p5359_p10)
}
  0x62   : > { %s5363_s10 = scalar_lea.vmem %s6224_s23, 256  ;;  %s5922_s25 = smov [#allocation5]  }
  0x63   : > { %p5364_p3 = scmp.ne.s32.totalorder %s6224_s23, %s5363_s10  ;;  %s5368_s3 = sshll.u32 %s5922_s25, 4  ;;  %s5369_s3 = int_to_ptr.vmem [resolvable:$false] %s5368_s3 }
  0x64   : > { %s5370_s28 = scalar_lea.vmem %s5369_s3, 512  ;;  %p5371_p13 = scmp.lt.s32.totalorder %s6224_s23, %s5369_s3 }
  0x65   : > { %p5366_p9 = pnand %p5364_p3, %p7648_p6  ;;  %p5372_p4 = scmp.lt.s32.totalorder %s5370_s28, %s5363_s10 }
  0x67   : > { %p5367_p7 = pneg %p5366_p9  ;;  %p5373_p12 = por %p5372_p4, %p5371_p13 }
  0x69   : > { %p5374_p0 = pnand %p5373_p12, %p5367_p7 }
  0x6b   : > { %5377 = shalt.err (!%p5374_p0)
}
  0x6c   : > { %s7641_s30 = smov 128   ;;  %s7643_s4 = smov 8  }
  0x6d   : > { %5020 = dma.hbm_to_vmem [thread:$0]  (!%p6209_p2), %s6221_s21, 256, %s6224_s23, %s7640_s2, %s7641_s30, %s7641_s30, %s7643_s4  }
  0x6e   : > { %p4323_p7 = scmp.ge.s32.totalorder %s5920_s7, 1  ;;  %p1026_p13 = scmp.lt.s32.totalorder %s5920_s7, 5 }
  0x6f   : > { %s6266_s22 = sand.u32 1, %s5888_s24   ;;  %s6272_s25 = sshll.u32 %s5912_s6, 12 }
  0x70   : > { %s6269_s10 = sshll.u32 %s6266_s22, 8  ;;  %p6274_p10 = pnand %p4323_p7, %p1026_p13 }
  0x71   : > { %s7733_s19 = sld [smem:[#allocation65_spill]]  ;;  %s806_s21 = scalar_lea.vmem [#allocation8], %s6269_s10 }
  0x72   : > { %s7731_s3 = scalar_select %p6274_p10, 1, 0 }
  0x73   : > { %s813_s23 = sshll.u32 %s806_s21, 4  ;;  %p6292_p5 = pneg %p6228_p1  ;;  %s6285_s23 = int_to_ptr.vmem [resolvable:$true] %s813_s23 }
  0x74   : > { %7732 = sst [smem:[#allocation55_spill]] %s7731_s3 }
  0x77   : > { %s6282_s5 = scalar_lea.hbm %s7733_s19, %s6272_s25  ;;  %s5383_s24 = scalar_lea.hbm %s7733_s19, 8192 }
  0x78   : > { %s5378_s30 = scalar_lea.hbm %s6282_s5, 4096  ;;  %p5384_p9 = scmp.lt.u32.totalorder %s6282_s5, %s7733_s19 }
  0x79   : > { %p5379_p11 = scmp.ne.s32.totalorder %s6282_s5, %s5378_s30  ;;  %p5385_p4 = scmp.lt.u32.totalorder %s5383_s24, %s5378_s30 }
  0x7a   : > { %p5387_p0 = scmp.lt.u32.totalorder %s5378_s30, %s6282_s5 }
  0x7b   : > { %p5381_p8 = pnand %p6292_p5, %p5379_p11  ;;  %p5386_p12 = por %p5385_p4, %p5384_p9 }
  0x7d   : > { %p5382_p3 = pneg %p5381_p8  ;;  %p5388_p7 = por %p5387_p0, %p5386_p12 }
  0x7f   : > { %p5389_p13 = pnand %p5388_p7, %p5382_p3 }
  0x81   : > { %5392 = shalt.err (!%p5389_p13)
}
  0x82   : > { %s5393_s2 = scalar_lea.vmem %s6285_s23, 4096  ;;  %s5925_s16 = smov [#allocation8]  }
  0x83   : > { %p5394_p11 = scmp.ne.s32.totalorder %s6285_s23, %s5393_s2  ;;  %s5398_s28 = sshll.u32 %s5925_s16, 4  ;;  %s5399_s28 = int_to_ptr.vmem [resolvable:$false] %s5398_s28 }
  0x84   : > { %s5400_s7 = scalar_lea.vmem %s5399_s28, 8192  ;;  %p5401_p10 = scmp.lt.s32.totalorder %s6285_s23, %s5399_s28 }
  0x85   : > { %p5396_p8 = pnand %p5394_p11, %p6292_p5  ;;  %p5402_p2 = scmp.lt.s32.totalorder %s5400_s7, %s5393_s2 }
  0x87   : > { %p5397_p6 = pneg %p5396_p8  ;;  %p5403_p9 = por %p5402_p2, %p5401_p10 }
  0x89   : > { %p5404_p4 = pnand %p5403_p9, %p5397_p6 }
  0x8b   : > { %5407 = shalt.err (!%p5404_p4)
}
  0x8c   : > { %s7655_s24 = smov 256   ;;  %s7657_s30 = smov 16  }
  0x8d   : > { %s7735_s21 = scalar_lea.sflag [#allocation9], %s6214_s8  ;;  %s6321_s2 = sshll.u32 %s5912_s6, 4 }
  0x8e   : > { %5026 = dma.hbm_to_vmem [thread:$0]  (!%p6228_p1), %s6282_s5, 4096, %s6285_s23, %s7735_s21, %s7655_s24, %s7655_s24, %s7657_s30  }
  0x8f   : > { %s860_s16 = scalar_lea.vmem [#allocation11], %s6266_s22  ;;  %s7736_s11 = sld [smem:[#allocation69_spill]] }
  0x90   : > { %s867_s28 = sshll.u32 %s860_s16, 4  ;;  %s7661_s20 = scalar_lea.sflag [#allocation12], %s6214_s8  ;;  %s868_s28 = int_to_ptr.vmem [resolvable:$true] %s867_s28 }
  0x95   : > { %s6328_s3 = scalar_lea.hbm %s7736_s11, %s6321_s2  ;;  %s5413_s21 = scalar_lea.hbm %s7736_s11, 32 }
  0x96   : > { %s5408_s17 = scalar_lea.hbm %s6328_s3, 16  ;;  %p5414_p3 = scmp.lt.u32.totalorder %s6328_s3, %s7736_s11 }
  0x97   : > { %p5409_p2 = scmp.ne.s32.totalorder %s6328_s3, %s5408_s17  ;;  %p5415_p12 = scmp.lt.u32.totalorder %s5413_s21, %s5408_s17 }
  0x98   : > { %p5417_p7 = scmp.lt.u32.totalorder %s5408_s17, %s6328_s3 }
  0x99   : > { %p5411_p6 = pnand %p5409_p2, %p6292_p5  ;;  %p5416_p0 = por %p5415_p12, %p5414_p3 }
  0x9b   : > { %p5412_p10 = pneg %p5411_p6  ;;  %p5418_p13 = por %p5417_p7, %p5416_p0 }
  0x9d   : > { %p5419_p11 = pnand %p5418_p13, %p5412_p10 }
  0x9f   : > { %5422 = shalt.err (!%p5419_p11)
}
  0xa0   : > { %s5423_s19 = scalar_lea.vmem %s868_s28, 16  ;;  %s5928_s7 = smov [#allocation11]  }
  0xa1   : > { %p5424_p8 = scmp.ne.s32.totalorder %s868_s28, %s5423_s19  ;;  %s5428_s30 = sshll.u32 %s5928_s7, 4  ;;  %s5429_s30 = int_to_ptr.vmem [resolvable:$false] %s5428_s30 }
  0xa2   : > { %s5430_s5 = scalar_lea.vmem %s5429_s30, 32  ;;  %p5431_p2 = scmp.lt.s32.totalorder %s868_s28, %s5429_s30 }
  0xa3   : > { %p5426_p9 = pnand %p5424_p8, %p6292_p5  ;;  %p5432_p6 = scmp.lt.s32.totalorder %s5430_s5, %s5423_s19 }
  0xa5   : > { %p5427_p4 = pneg %p5426_p9  ;;  %p5433_p1 = por %p5432_p6, %p5431_p2 }
  0xa7   : > { %p5434_p3 = pnand %p5433_p1, %p5427_p4 }
  0xa9   : > { %5437 = shalt.err (!%p5434_p3)
}
  0xaa   : > { %p7737_p12 = scmp.ne.s32.totalorder %s7730_s26, 0  ;;  %s7738_s13 = sld [smem:[#allocation71_spill]] }
  0xab   : > { %s895_s30 = scalar_lea.vmem [#allocation14], %s6269_s10  ;;  %s7662_s16 = scalar_lea.sflag [#allocation15], %s6214_s8 }
  0xac   : > { %5032 = dma.hbm_to_vmem [thread:$0]  (!%p7737_p12), %s6328_s3, 16, %s868_s28, %s7661_s20  }
  0xad   : > { %s902_s21 = sshll.u32 %s895_s30, 4  ;;  %s6357_s21 = int_to_ptr.vmem [resolvable:$true] %s902_s21 }
  0xb0   : > { %s6354_s23 = scalar_lea.hbm %s7738_s13, %s6272_s25  ;;  %s5443_s7 = scalar_lea.hbm %s7738_s13, 8192 }
  0xb1   : > { %s5438_s19 = scalar_lea.hbm %s6354_s23, 4096  ;;  %p5444_p7 = scmp.lt.u32.totalorder %s6354_s23, %s7738_s13 }
  0xb2   : > { %p5439_p1 = scmp.ne.s32.totalorder %s6354_s23, %s5438_s19  ;;  %p5445_p13 = scmp.lt.u32.totalorder %s5443_s7, %s5438_s19 }
  0xb3   : > { %p5447_p8 = scmp.lt.u32.totalorder %s5438_s19, %s6354_s23 }
  0xb4   : > { %p5441_p10 = pnand %p5439_p1, %p6292_p5  ;;  %p5446_p11 = por %p5445_p13, %p5444_p7 }
  0xb6   : > { %p5442_p0 = pneg %p5441_p10  ;;  %p5448_p9 = por %p5447_p8, %p5446_p11 }
  0xb8   : > { %p5449_p4 = pnand %p5448_p9, %p5442_p0 }
  0xba   : > { %5452 = shalt.err (!%p5449_p4)
}
  0xbb   : > { %s5453_s24 = scalar_lea.vmem %s6357_s21, 4096  ;;  %s5929_s30 = smov [#allocation14]  }
  0xbc   : > { %p5454_p2 = scmp.ne.s32.totalorder %s6357_s21, %s5453_s24  ;;  %s5458_s3 = sshll.u32 %s5929_s30, 4  ;;  %s5459_s3 = int_to_ptr.vmem [resolvable:$false] %s5458_s3 }
  0xbd   : > { %s5460_s28 = scalar_lea.vmem %s5459_s3, 8192  ;;  %p5461_p1 = scmp.lt.s32.totalorder %s6357_s21, %s5459_s3 }
  0xbe   : > { %p5456_p6 = pnand %p5454_p2, %p6292_p5  ;;  %p5462_p10 = scmp.lt.s32.totalorder %s5460_s28, %s5453_s24 }
  0xc0   : > { %p5457_p3 = pneg %p5456_p6  ;;  %p5463_p7 = por %p5462_p10, %p5461_p1 }
  0xc2   : > { %p5464_p13 = pnand %p5463_p7, %p5457_p3 }
  0xc4   : > { %5467 = shalt.err (!%p5464_p13)
}
  0xc5   : > { %s7739_s19 = smov 16   ;;  %s7740_s7 = smov 256  }
  0xc6   : > { %5038 = dma.hbm_to_vmem [thread:$0]  (!%p7737_p12), %s6354_s23, 4096, %s6357_s21, %s7662_s16, %s7740_s7, %s7740_s7, %s7739_s19  }
  0xc7   : > { %s7741_s15 = sld [smem:[#allocation73_spill]]  ;;  %s936_s30 = scalar_lea.vmem [#allocation17], %s6266_s22 }
  0xc8   : > { %s943_s3 = sshll.u32 %s936_s30, 4  ;;  %s944_s3 = int_to_ptr.vmem [resolvable:$true] %s943_s3 }
  0xcd   : > { %s6390_s24 = scalar_lea.hbm %s7741_s15, %s6321_s2  ;;  %s5473_s21 = scalar_lea.hbm %s7741_s15, 32 }
  0xce   : > { %s5468_s20 = scalar_lea.hbm %s6390_s24, 16  ;;  %p5474_p9 = scmp.lt.u32.totalorder %s6390_s24, %s7741_s15 }
  0xcf   : > { %p5469_p0 = scmp.ne.s32.totalorder %s6390_s24, %s5468_s20  ;;  %p5475_p4 = scmp.lt.u32.totalorder %s5473_s21, %s5468_s20 }
  0xd0   : > { %p5477_p6 = scmp.lt.u32.totalorder %s5468_s20, %s6390_s24 }
  0xd1   : > { %p5471_p11 = pnand %p5469_p0, %p6292_p5  ;;  %p5476_p2 = por %p5475_p4, %p5474_p9 }
  0xd3   : > { %p5472_p8 = pneg %p5471_p11  ;;  %p5478_p3 = por %p5477_p6, %p5476_p2 }
  0xd5   : > { %p5479_p1 = pnand %p5478_p3, %p5472_p8 }
  0xd7   : > { %5482 = shalt.err (!%p5479_p1)
}
  0xd8   : > { %s5483_s30 = scalar_lea.vmem %s944_s3, 16  ;;  %s5930_s16 = smov [#allocation17]  }
  0xd9   : > { %p5484_p10 = scmp.ne.s32.totalorder %s944_s3, %s5483_s30  ;;  %s5488_s28 = sshll.u32 %s5930_s16, 4  ;;  %s5489_s28 = int_to_ptr.vmem [resolvable:$false] %s5488_s28 }
  0xda   : > { %s5490_s11 = scalar_lea.vmem %s5489_s28, 32  ;;  %p5491_p0 = scmp.lt.s32.totalorder %s944_s3, %s5489_s28 }
  0xdb   : > { %p5486_p7 = pnand %p5484_p10, %p6292_p5  ;;  %p5492_p11 = scmp.lt.s32.totalorder %s5490_s11, %s5483_s30 }
  0xdd   : > { %p5487_p13 = pneg %p5486_p7  ;;  %p5493_p12 = por %p5492_p11, %p5491_p0 }
  0xdf   : > { %p5494_p4 = pnand %p5493_p12, %p5487_p13 }
  0xe1   : > { %5497 = shalt.err (!%p5494_p4)
}
  0xe2   : > { %p7742_p9 = scmp.ne.s32.totalorder %s7730_s26, 0  ;;  %s7743_s20 = scalar_lea.sflag [#allocation18], %s6214_s8 }
  0xe3   : > { %s7744_s18 = sld [smem:[#allocation76_spill]]  ;;  %s977_s28 = scalar_lea.vmem [#allocation20], %s6269_s10 }
  0xe4   : > { %5044 = dma.hbm_to_vmem [thread:$0]  (!%p7742_p9), %s6390_s24, 16, %s944_s3, %s7743_s20  }
  0xe5   : > { %s984_s5 = sshll.u32 %s977_s28, 4  ;;  %s7664_s17 = scalar_lea.sflag [#allocation21], %s6214_s8  ;;  %s6420_s5 = int_to_ptr.vmem [resolvable:$true] %s984_s5 }
  0xe9   : > { %s6417_s16 = scalar_lea.hbm %s7744_s18, %s6272_s25  ;;  %s5503_s11 = scalar_lea.hbm %s7744_s18, 8192 }
  0xea   : > { %s5498_s30 = scalar_lea.hbm %s6417_s16, 4096  ;;  %p5504_p6 = scmp.lt.u32.totalorder %s6417_s16, %s7744_s18 }
  0xeb   : > { %p5499_p12 = scmp.ne.s32.totalorder %s6417_s16, %s5498_s30  ;;  %p5505_p3 = scmp.lt.u32.totalorder %s5503_s11, %s5498_s30 }
  0xec   : > { %p5507_p10 = scmp.lt.u32.totalorder %s5498_s30, %s6417_s16 }
  0xed   : > { %p5501_p8 = pnand %p5499_p12, %p6292_p5  ;;  %p5506_p1 = por %p5505_p3, %p5504_p6 }
  0xef   : > { %p5502_p2 = pneg %p5501_p8  ;;  %p5508_p7 = por %p5507_p10, %p5506_p1 }
  0xf1   : > { %p5509_p13 = pnand %p5508_p7, %p5502_p2 }
  0xf3   : > { %5512 = shalt.err (!%p5509_p13)
}
  0xf4   : > { %s5513_s21 = scalar_lea.vmem %s6420_s5, 4096  ;;  %s5931_s28 = smov [#allocation20]  }
  0xf5   : > { %p5514_p0 = scmp.ne.s32.totalorder %s6420_s5, %s5513_s21  ;;  %s5518_s24 = sshll.u32 %s5931_s28, 4  ;;  %s5519_s24 = int_to_ptr.vmem [resolvable:$false] %s5518_s24 }
  0xf6   : > { %s5520_s3 = scalar_lea.vmem %s5519_s24, 8192  ;;  %p5521_p12 = scmp.lt.s32.totalorder %s6420_s5, %s5519_s24 }
  0xf7   : > { %p5516_p11 = pnand %p5514_p0, %p6292_p5  ;;  %p5522_p8 = scmp.lt.s32.totalorder %s5520_s3, %s5513_s21 }
  0xf9   : > { %p5517_p4 = pneg %p5516_p11  ;;  %p5523_p6 = por %p5522_p8, %p5521_p12 }
  0xfb   : > { %p5524_p3 = pnand %p5523_p6, %p5517_p4 }
  0xfd   : > { %5527 = shalt.err (!%p5524_p3)
}
  0xfe   : > { %5050 = dma.hbm_to_vmem [thread:$0]  (!%p7742_p9), %s6417_s16, 4096, %s6420_s5, %s7664_s17, %s7740_s7, %s7740_s7, %s7739_s19  }
  0xff   : > { %s7745_s30 = sshll.u32 %s5916_s27, 8  ;;  %s7746_s23 = sld [smem:[#allocation58_spill]] }
 0x100   : > { %s719_s28 = scalar_lea.vmem [#allocation2], %s6205_s0  ;;  %s7747_s15 = sld [smem:[#allocation64_spill]] }
 0x101   : > { %s726_s24 = sshll.u32 %s719_s28, 4  ;;  %s7748_s16 = sand.u32 1, %s5900_s1   ;;  %s6457_s24 = int_to_ptr.vmem [resolvable:$true] %s726_s24 }
 0x102   : > { %s6467_s5 = scalar_lea.sflag [#allocation3], %s7748_s16  ;;  %p7749_p1 = scmp.ne.s32.totalorder %s7728_s29, 0 }
 0x104   : > { %p7750_p10 = pneg %p7749_p1 }
 0x105   : > { %s6454_s21 = scalar_lea.hbm %s7746_s23, %s7745_s30  ;;  %s5533_s0 = scalar_lea.hbm %s7746_s23, 512 }
 0x106   : > { %s6463_s18 = scalar_lea.hbm %s7747_s15, %s6272_s25  ;;  %s5528_s17 = scalar_lea.hbm %s6454_s21, 256 }
 0x107   : > { %p5529_p2 = scmp.ne.s32.totalorder %s6454_s21, %s5528_s17  ;;  %p5534_p0 = scmp.lt.u32.totalorder %s6454_s21, %s7746_s23 }
 0x108   : > { %p5535_p11 = scmp.lt.u32.totalorder %s5533_s0, %s5528_s17  ;;  %p5537_p12 = scmp.lt.u32.totalorder %s5528_s17, %s6454_s21 }
 0x109   : > { %p5531_p7 = pnand %p5529_p2, %p7750_p10 }
 0x10a   : > { %p5536_p4 = por %p5535_p11, %p5534_p0 }
 0x10b   : > { %p5532_p13 = pneg %p5531_p7 }
 0x10c   : > { %p5538_p8 = por %p5537_p12, %p5536_p4 }
 0x10e   : > { %p5539_p6 = pnand %p5538_p8, %p5532_p13 }
 0x110   : > { %5542 = shalt.err (!%p5539_p6)
}
 0x111   : > { %s5543_s13 = scalar_lea.vmem %s6457_s24, 256  ;;  %p7751_p2 = pmov %p7750_p10 }
 0x112   : > { %p5544_p3 = scmp.ne.s32.totalorder %s6457_s24, %s5543_s13  ;;  %s5932_s3 = smov [#allocation2]  }
 0x113   : > { %s5548_s16 = sshll.u32 %s5932_s3, 4  ;;  %s5549_s16 = int_to_ptr.vmem [resolvable:$false] %s5548_s16 }
 0x114   : > { %p5546_p10 = pnand %p5544_p3, %p7751_p2  ;;  %s5550_s30 = scalar_lea.vmem %s5549_s16, 512 }
 0x115   : > { %p5551_p9 = scmp.lt.s32.totalorder %s6457_s24, %s5549_s16  ;;  %p5552_p0 = scmp.lt.s32.totalorder %s5550_s30, %s5543_s13 }
 0x116   : > { %p5547_p7 = pneg %p5546_p10 }
 0x117   : > { %p5553_p11 = por %p5552_p0, %p5551_p9 }
 0x119   : > { %p5554_p4 = pnand %p5553_p11, %p5547_p7 }
 0x11b   : > { %5557 = shalt.err (!%p5554_p4)
}
 0x11c   : > { %s7752_s17 = smov 8   ;;  %s7753_s11 = smov 128  }
 0x11d   : > { %5017 = dma.hbm_to_vmem [thread:$0]  (!%p7749_p1), %s6454_s21, 256, %s6457_s24, %s6467_s5, %s7753_s11, %s7753_s11, %s7752_s17  }
 0x11e   : > { %s785_s0 = scalar_lea.vmem [#allocation7], %s6269_s10  ;;  %s7754_s9 = sld [smem:[#allocation67_spill]] }
 0x11f   : > { %s792_s20 = sshll.u32 %s785_s0, 4  ;;  %s5558_s3 = scalar_lea.hbm %s6463_s18, 4096  ;;  %s6497_s20 = int_to_ptr.vmem [resolvable:$true] %s792_s20 }
 0x120   : > { %p5559_p9 = scmp.ne.s32.totalorder %s6463_s18, %s5558_s3  ;;  %s5563_s23 = scalar_lea.hbm %s7747_s15, 8192 }
 0x121   : > { %p5564_p1 = scmp.lt.u32.totalorder %s6463_s18, %s7747_s15  ;;  %p5565_p8 = scmp.lt.u32.totalorder %s5563_s23, %s5558_s3 }
 0x122   : > { %p5561_p13 = pnand %p5559_p9, %p6292_p5  ;;  %p5567_p3 = scmp.lt.u32.totalorder %s5558_s3, %s6463_s18 }
 0x123   : > { %p5566_p6 = por %p5565_p8, %p5564_p1 }
 0x124   : > { %s6503_s13 = scalar_lea.hbm %s7754_s9, %s6272_s25  ;;  %p5562_p12 = pneg %p5561_p13 }
 0x125   : > { %p5568_p2 = por %p5567_p3, %p5566_p6 }
 0x127   : > { %p5569_p10 = pnand %p5568_p2, %p5562_p12 }
 0x129   : > { %5572 = shalt.err (!%p5569_p10)
}
 0x12a   : > { %s5573_s24 = scalar_lea.vmem %s6497_s20, 4096  ;;  %s5933_s5 = smov [#allocation7]  }
 0x12b   : > { %p5574_p7 = scmp.ne.s32.totalorder %s6497_s20, %s5573_s24  ;;  %s5578_s0 = sshll.u32 %s5933_s5, 4  ;;  %s5579_s0 = int_to_ptr.vmem [resolvable:$false] %s5578_s0 }
 0x12c   : > { %s5580_s27 = scalar_lea.vmem %s5579_s0, 8192  ;;  %p5581_p4 = scmp.lt.s32.totalorder %s6497_s20, %s5579_s0 }
 0x12d   : > { %p5576_p0 = pnand %p5574_p7, %p6292_p5  ;;  %p5582_p9 = scmp.lt.s32.totalorder %s5580_s27, %s5573_s24 }
 0x12f   : > { %p5577_p11 = pneg %p5576_p0  ;;  %p5583_p13 = por %p5582_p9, %p5581_p4 }
 0x131   : > { %p5584_p1 = pnand %p5583_p13, %p5577_p11 }
 0x133   : > { %5587 = shalt.err (!%p5584_p1)
}
 0x134   : > { %p7755_p12 = scmp.ne.s32.totalorder %s7730_s26, 0  ;;  %s7756_s23 = scalar_lea.sflag [#allocation6], %s6214_s8 }
 0x135   : > { %s834_s28 = scalar_lea.vmem [#allocation10], %s6269_s10  ;;  %s7757_s12 = sld [smem:[#allocation70_spill]] }
 0x136   : > { %5023 = dma.hbm_to_vmem [thread:$0]  (!%p7755_p12), %s6463_s18, 4096, %s6497_s20, %s7756_s23, %s7740_s7, %s7740_s7, %s7739_s19  }
 0x137   : > { %s841_s29 = sshll.u32 %s834_s28, 4  ;;  %s5588_s21 = scalar_lea.hbm %s6503_s13, 4096  ;;  %s6532_s29 = int_to_ptr.vmem [resolvable:$true] %s841_s29 }
 0x138   : > { %p5589_p8 = scmp.ne.s32.totalorder %s6503_s13, %s5588_s21  ;;  %s5593_s0 = scalar_lea.hbm %s7754_s9, 8192 }
 0x139   : > { %p5594_p2 = scmp.lt.u32.totalorder %s6503_s13, %s7754_s9  ;;  %p5595_p10 = scmp.lt.u32.totalorder %s5593_s0, %s5588_s21 }
 0x13a   : > { %p5591_p6 = pnand %p5589_p8, %p6292_p5  ;;  %p5597_p0 = scmp.lt.u32.totalorder %s5588_s21, %s6503_s13 }
 0x13b   : > { %s6538_s30 = scalar_lea.hbm %s7757_s12, %s6321_s2  ;;  %p5596_p7 = por %p5595_p10, %p5594_p2 }
 0x13c   : > { %p5592_p3 = pneg %p5591_p6 }
 0x13d   : > { %p5598_p11 = por %p5597_p0, %p5596_p7 }
 0x13f   : > { %p5599_p4 = pnand %p5598_p11, %p5592_p3 }
 0x141   : > { %5602 = shalt.err (!%p5599_p4)
}
 0x142   : > { %s5603_s19 = scalar_lea.vmem %s6532_s29, 4096  ;;  %s5934_s7 = smov [#allocation10]  }
 0x143   : > { %p5604_p9 = scmp.ne.s32.totalorder %s6532_s29, %s5603_s19  ;;  %s5608_s20 = sshll.u32 %s5934_s7, 4  ;;  %s5609_s20 = int_to_ptr.vmem [resolvable:$false] %s5608_s20 }
 0x144   : > { %s5610_s23 = scalar_lea.vmem %s5609_s20, 8192  ;;  %p5611_p8 = scmp.lt.s32.totalorder %s6532_s29, %s5609_s20 }
 0x145   : > { %p5606_p13 = pnand %p5604_p9, %p6292_p5  ;;  %p5612_p6 = scmp.lt.s32.totalorder %s5610_s23, %s5603_s19 }
 0x147   : > { %p5607_p1 = pneg %p5606_p13  ;;  %p5613_p2 = por %p5612_p6, %p5611_p8 }
 0x149   : > { %p5614_p10 = pnand %p5613_p2, %p5607_p1 }
 0x14b   : > { %5617 = shalt.err (!%p5614_p10)
}
 0x14c   : > { %s7758_s28 = scalar_lea.sflag [#allocation9], %s6214_s8  ;;  %s877_s3 = scalar_lea.vmem [#allocation13], %s6266_s22 }
 0x14d   : > { %5029 = dma.hbm_to_vmem [thread:$0]  (!%p7755_p12), %s6503_s13, 4096, %s6532_s29, %s7758_s28, %s7753_s11, %s7753_s11, %s7752_s17  }
 0x14e   : > { %s884_s16 = sshll.u32 %s877_s3, 4  ;;  %s4312_s21 = sshll.u32 %s6266_s22, 7  ;;  %s885_s16 = int_to_ptr.vmem [resolvable:$true] %s884_s16 }
 0x14f   : > { %s5618_s24 = scalar_lea.hbm %s6538_s30, 16  ;;  %s5623_s27 = scalar_lea.hbm %s7757_s12, 32 }
 0x150   : > { %p5619_p3 = scmp.ne.s32.totalorder %s6538_s30, %s5618_s24  ;;  %p5624_p11 = scmp.lt.u32.totalorder %s6538_s30, %s7757_s12 }
 0x151   : > { %p5625_p4 = scmp.lt.u32.totalorder %s5623_s27, %s5618_s24  ;;  %p5627_p13 = scmp.lt.u32.totalorder %s5618_s24, %s6538_s30 }
 0x152   : > { %p5621_p7 = pnand %p5619_p3, %p6292_p5 }
 0x153   : > { %p5626_p9 = por %p5625_p4, %p5624_p11 }
 0x154   : > { %p5622_p0 = pneg %p5621_p7 }
 0x155   : > { %p5628_p1 = por %p5627_p13, %p5626_p9 }
 0x157   : > { %p5629_p8 = pnand %p5628_p1, %p5622_p0 }
 0x159   : > { %5632 = shalt.err (!%p5629_p8)
}
 0x15a   : > { %s5633_s13 = scalar_lea.vmem %s885_s16, 16  ;;  %s5935_s29 = smov [#allocation13]  }
 0x15b   : > { %p5634_p6 = scmp.ne.s32.totalorder %s885_s16, %s5633_s13  ;;  %s5638_s7 = sshll.u32 %s5935_s29, 4  ;;  %s5639_s7 = int_to_ptr.vmem [resolvable:$false] %s5638_s7 }
 0x15c   : > { %s5640_s20 = scalar_lea.vmem %s5639_s7, 32  ;;  %p5641_p3 = scmp.lt.s32.totalorder %s885_s16, %s5639_s7 }
 0x15d   : > { %p5636_p2 = pnand %p5634_p6, %p6292_p5  ;;  %p5642_p7 = scmp.lt.s32.totalorder %s5640_s20, %s5633_s13 }
 0x15f   : > { %p5637_p10 = pneg %p5636_p2  ;;  %p5643_p12 = por %p5642_p7, %p5641_p3 }
 0x161   : > { %p5644_p4 = pnand %p5643_p12, %p5637_p10 }
 0x163   : > { %5647 = shalt.err (!%p5644_p4)
}
 0x164   : > { %p7759_p11 = scmp.ne.s32.totalorder %s7730_s26, 0  ;;  %s7760_s23 = scalar_lea.sflag [#allocation12], %s6214_s8 }
 0x165   : > { %s4403_s28 = sshll.u32 %s5912_s6, 11  ;;  %s916_s3 = scalar_lea.vmem [#allocation16], %s4312_s21 }
 0x166   : > { %5035 = dma.hbm_to_vmem [thread:$0]  (!%p7759_p11), %s6538_s30, 16, %s885_s16, %s7760_s23  }
 0x167   : > { %s923_s24 = sshll.u32 %s916_s3, 4  ;;  %s7761_s14 = sld [smem:[#allocation72_spill]]  ;;  %s6595_s24 = int_to_ptr.vmem [resolvable:$true] %s923_s24 }
 0x16d   : > { %s6593_s27 = scalar_lea.hbm %s7761_s14, %s4403_s28  ;;  %s5653_s21 = scalar_lea.hbm %s7761_s14, 4096 }
 0x16e   : > { %s5648_s18 = scalar_lea.hbm %s6593_s27, 2048  ;;  %p5654_p13 = scmp.lt.u32.totalorder %s6593_s27, %s7761_s14 }
 0x16f   : > { %p5649_p12 = scmp.ne.s32.totalorder %s6593_s27, %s5648_s18  ;;  %p5655_p1 = scmp.lt.u32.totalorder %s5653_s21, %s5648_s18 }
 0x170   : > { %p5657_p6 = scmp.lt.u32.totalorder %s5648_s18, %s6593_s27 }
 0x171   : > { %p5651_p0 = pnand %p5649_p12, %p6292_p5  ;;  %p5656_p8 = por %p5655_p1, %p5654_p13 }
 0x173   : > { %p5652_p9 = pneg %p5651_p0  ;;  %p5658_p2 = por %p5657_p6, %p5656_p8 }
 0x175   : > { %p5659_p10 = pnand %p5658_p2, %p5652_p9 }
 0x177   : > { %5662 = shalt.err (!%p5659_p10)
}
 0x178   : > { %s5663_s29 = scalar_lea.vmem %s6595_s24, 2048  ;;  %s5936_s7 = smov [#allocation16]  }
 0x179   : > { %p5664_p3 = scmp.ne.s32.totalorder %s6595_s24, %s5663_s29  ;;  %s5668_s20 = sshll.u32 %s5936_s7, 4  ;;  %s5669_s20 = int_to_ptr.vmem [resolvable:$false] %s5668_s20 }
 0x17a   : > { %s5670_s23 = scalar_lea.vmem %s5669_s20, 4096  ;;  %p5671_p12 = scmp.lt.s32.totalorder %s6595_s24, %s5669_s20 }
 0x17b   : > { %p5666_p7 = pnand %p5664_p3, %p6292_p5  ;;  %p5672_p0 = scmp.lt.s32.totalorder %s5670_s23, %s5663_s29 }
 0x17d   : > { %p5667_p4 = pneg %p5666_p7  ;;  %p5673_p13 = por %p5672_p0, %p5671_p12 }
 0x17f   : > { %p5674_p1 = pnand %p5673_p13, %p5667_p4 }
 0x181   : > { %5677 = shalt.err (!%p5674_p1)
}
 0x182   : > { %s7762_s28 = scalar_lea.sflag [#allocation15], %s6214_s8  ;;  %s7763_s0 = sld [smem:[#allocation75_spill]] }
 0x183   : > { %5041 = dma.hbm_to_vmem [thread:$0]  (!%p7759_p11), %s6593_s27, 2048, %s6595_s24, %s7762_s28, %s7753_s11, %s7753_s11, %s7752_s17  }
 0x184   : > { %s959_s30 = scalar_lea.vmem [#allocation19], %s6266_s22  ;;  %s7764_s13 = sld [smem:[#allocation78_spill]] }
 0x185   : > { %s966_s16 = sshll.u32 %s959_s30, 4  ;;  %s967_s16 = int_to_ptr.vmem [resolvable:$true] %s966_s16 }
 0x188   : > { %s6627_s18 = scalar_lea.hbm %s7763_s0, %s6321_s2  ;;  %s5683_s27 = scalar_lea.hbm %s7763_s0, 32 }
 0x189   : > { %s5678_s7 = scalar_lea.hbm %s6627_s18, 16  ;;  %p5684_p2 = scmp.lt.u32.totalorder %s6627_s18, %s7763_s0 }
 0x18a   : > { %s6634_s29 = scalar_lea.hbm %s7764_s13, %s6272_s25  ;;  %p5679_p9 = scmp.ne.s32.totalorder %s6627_s18, %s5678_s7 }
 0x18b   : > { %p5685_p10 = scmp.lt.u32.totalorder %s5683_s27, %s5678_s7  ;;  %p5687_p7 = scmp.lt.u32.totalorder %s5678_s7, %s6627_s18 }
 0x18c   : > { %p5681_p8 = pnand %p5679_p9, %p6292_p5 }
 0x18d   : > { %p5686_p3 = por %p5685_p10, %p5684_p2 }
 0x18e   : > { %p5682_p6 = pneg %p5681_p8 }
 0x18f   : > { %p5688_p4 = por %p5687_p7, %p5686_p3 }
 0x191   : > { %p5689_p12 = pnand %p5688_p4, %p5682_p6 }
 0x193   : > { %5692 = shalt.err (!%p5689_p12)
}
 0x194   : > { %s5693_s22 = scalar_lea.vmem %s967_s16, 16  ;;  %s5937_s25 = smov [#allocation19]  }
 0x195   : > { %p5694_p0 = scmp.ne.s32.totalorder %s967_s16, %s5693_s22  ;;  %s5698_s28 = sshll.u32 %s5937_s25, 4  ;;  %s5699_s28 = int_to_ptr.vmem [resolvable:$false] %s5698_s28 }
 0x196   : > { %s5700_s3 = scalar_lea.vmem %s5699_s28, 32  ;;  %p5701_p9 = scmp.lt.s32.totalorder %s967_s16, %s5699_s28 }
 0x197   : > { %p5696_p13 = pnand %p5694_p0, %p6292_p5  ;;  %p5702_p8 = scmp.lt.s32.totalorder %s5700_s3, %s5693_s22 }
 0x199   : > { %p5697_p1 = pneg %p5696_p13  ;;  %p5703_p11 = por %p5702_p8, %p5701_p9 }
 0x19b   : > { %p5704_p2 = pnand %p5703_p11, %p5697_p1 }
 0x19d   : > { %5707 = shalt.err (!%p5704_p2)
}
 0x19e   : > { %p7765_p10 = scmp.ne.s32.totalorder %s7730_s26, 0  ;;  %s7766_s5 = scalar_lea.sflag [#allocation18], %s6214_s8 }
 0x19f   : > { %s1005_s30 = scalar_lea.vmem [#allocation22], %s6269_s10  ;;  %s5708_s19 = scalar_lea.hbm %s6634_s29, 4096 }
 0x1a0   : > { %5047 = dma.hbm_to_vmem [thread:$0]  (!%p7765_p10), %s6627_s18, 16, %s967_s16, %s7766_s5  }
 0x1a1   : > { %s1012_s21 = sshll.u32 %s1005_s30, 4  ;;  %p5709_p6 = scmp.ne.s32.totalorder %s6634_s29, %s5708_s19  ;;  %s6656_s21 = int_to_ptr.vmem [resolvable:$true] %s1012_s21 }
 0x1a2   : > { %s5713_s2 = scalar_lea.hbm %s7764_s13, 8192  ;;  %p5714_p7 = scmp.lt.u32.totalorder %s6634_s29, %s7764_s13 }
 0x1a3   : > { %p5711_p11 = pnand %p5709_p6, %p6292_p5  ;;  %p5715_p4 = scmp.lt.u32.totalorder %s5713_s2, %s5708_s19 }
 0x1a4   : > { %p5717_p0 = scmp.lt.u32.totalorder %s5708_s19, %s6634_s29 }
 0x1a5   : > { %p5712_p3 = pneg %p5711_p11  ;;  %p5716_p12 = por %p5715_p4, %p5714_p7 }
 0x1a7   : > { %p5718_p13 = por %p5717_p0, %p5716_p12 }
 0x1a9   : > { %p5719_p1 = pnand %p5718_p13, %p5712_p3 }
 0x1ab   : > { %5722 = shalt.err (!%p5719_p1)
}
 0x1ac   : > { %s5723_s10 = scalar_lea.vmem %s6656_s21, 4096  ;;  %s5938_s18 = smov [#allocation22]  }
 0x1ad   : > { %p5724_p9 = scmp.ne.s32.totalorder %s6656_s21, %s5723_s10  ;;  %s5728_s16 = sshll.u32 %s5938_s18, 4  ;;  %s5729_s16 = int_to_ptr.vmem [resolvable:$false] %s5728_s16 }
 0x1ae   : > { %s5730_s23 = scalar_lea.vmem %s5729_s16, 8192  ;;  %p5731_p6 = scmp.lt.s32.totalorder %s6656_s21, %s5729_s16 }
 0x1af   : > { %p5726_p8 = pnand %p5724_p9, %p6292_p5  ;;  %p5732_p11 = scmp.lt.s32.totalorder %s5730_s23, %s5723_s10 }
 0x1b1   : > { %p5727_p2 = pneg %p5726_p8  ;;  %p5733_p7 = por %p5732_p11, %p5731_p6 }
 0x1b3   : > { %p5734_p4 = pnand %p5733_p7, %p5727_p2 }
 0x1b5   : > { %5737 = shalt.err (!%p5734_p4)
}
 0x1b6   : > { %s7767_s22 = scalar_lea.sflag [#allocation21], %s6214_s8  ;;  %s7768_s4 = sld [smem:[#allocation55_spill]] }
 0x1b7   : > { %5053 = dma.hbm_to_vmem [thread:$0]  (!%p7765_p10), %s6634_s29, 4096, %s6656_s21, %s7767_s22, %s7753_s11, %s7753_s11, %s7752_s17  }
 0x1bc   : > { %p7769_p5 = scmp.ne.s32.totalorder %s7768_s4, 0 }
 0x1be   : > { %1030 = sbr.rel (%p7769_p5) target bundleno = 3450 (0xd7a), region = 108 }
 0x1c5   : > { %s7770_s25 = sld [smem:[#allocation39_spill]]  ;;  %s7771_s28 = sld [smem:[#allocation49_spill]] }
 0x1cb   : > { %s6687_s3 = sand.u32 1, %s7770_s25   ;;  %p7773_p3 = scmp.ne.s32.totalorder %s7771_s28, 0 }
 0x1cc   : > { %7772 = sst [smem:[#allocation56_spill]] %s6687_s3  ;;  %s6690_s5 = sshll.u32 %s6687_s3, 4 }
 0x1cd   : > { %s1033_s26 = scalar_lea.sflag [#allocation3], %s6687_s3 }
 0x1ce   : > { %5839 = dma.done.wait (%p7773_p3), %s1033_s26, 256  }
 0x1cf   : > { %5841 = vsyncadd (%p7773_p3), %s1033_s26, 4294967040  ;;  %s7774_s8 = sld [smem:[#allocation46_spill]] }
 0x1d5   : > { %s6699_s17 = sand.u32 1, %s7774_s8  }
 0x1d6   : > { %s1042_s11 = scalar_lea.sflag [#allocation6], %s6699_s17 }
 0x1d7   : > { %5843 = dma.done.wait (%p7773_p3), %s1042_s11, 256  }
 0x1d8   : > { %5845 = vsyncadd (%p7773_p3), %s1042_s11, 4294967040  ;;  %s7775_s21 = sld [smem:[#allocation36_spill]] }
 0x1d9   : > { %s7776_s19 = sld [smem:[#allocation52_spill]] }
 0x1de   : > { %s6708_s7 = sand.u32 1, %s7775_s21  }
 0x1df   : > { %s6711_s24 = sshll.u32 %s6708_s7, 8  ;;  %p7777_p10 = scmp.ne.s32.totalorder %s7776_s19, 0 }
 0x1e0   : > { %s6714_s2 = scalar_lea.vmem [#allocation7], %s6711_s24 }
 0x1e1   : > { %5847 = dma.done.wait (%p7777_p10), %s1042_s11, 4096  }
 0x1e2   : > { %5849 = vsyncadd (%p7777_p10), %s1042_s11, 4294963200  ;;  %s1060_s27 = scalar_lea.sflag [#allocation9], %s6699_s17  ;;  %s6722_s20 = scalar_lea.vmem [#allocation8], %s6711_s24 }
 0x1e3   : > { %5851 = dma.done.wait (%p7777_p10), %s1060_s27, 8192  }
 0x1e4   : > { %5853 = vsyncadd (%p7777_p10), %s1060_s27, 4294959104  ;;  %s6729_s10 = scalar_lea.vmem [#allocation10], %s6711_s24  ;;  %s1078_s18 = scalar_lea.sflag [#allocation12], %s6699_s17 }
 0x1e5   : > { %5855 = dma.done.wait (%p7777_p10), %s1078_s18, 32  }
 0x1e6   : > { %5857 = vsyncadd (%p7777_p10), %s1078_s18, 4294967264  ;;  %s1094_s22 = scalar_lea.sflag [#allocation15], %s6699_s17  ;;  %s6740_s4 = scalar_lea.vmem [#allocation14], %s6711_s24 }
 0x1e7   : > { %5859 = dma.done.wait (%p7777_p10), %s1094_s22, 6144  }
 0x1e8   : > { %5861 = vsyncadd (%p7777_p10), %s1094_s22, 4294961152  ;;  %s4330_s25 = sshll.u32 %s6708_s7, 7  ;;  %s1112_s26 = scalar_lea.sflag [#allocation18], %s6699_s17 }
 0x1e9   : > { %s6747_s28 = scalar_lea.vmem [#allocation16], %s4330_s25 }
 0x1ea   : > { %5863 = dma.done.wait (%p7777_p10), %s1112_s26, 32  }
 0x1eb   : > { %5865 = vsyncadd (%p7777_p10), %s1112_s26, 4294967264  ;;  %s1128_s21 = scalar_lea.sflag [#allocation21], %s6699_s17  ;;  %s6758_s27 = scalar_lea.vmem [#allocation20], %s6711_s24 }
 0x1ec   : > { %7778 = sst [smem:[#allocation57_spill]] %s6758_s27 }
 0x1ed   : > { %5867 = dma.done.wait (%p7777_p10), %s1128_s21, 8192  }
 0x1ee   : > { %5869 = vsyncadd (%p7777_p10), %s1128_s21, 4294959104  ;;  %s7779_s18 = sld [smem:[#allocation41_spill]]  ;;  %s7784_s6 = sld [smem:[#allocation68_spill]] }
 0x1ef   : > { %s7785_s11 = sld [smem:[#allocation66_spill]]  ;;  %s7787_s16 = sld [smem:[#allocation77_spill]] }
 0x1f0   : > { %s7786_s21 = sld [smem:[#allocation74_spill]]  ;;  %s7788_s13 = sld [smem:[#allocation79_spill]] }
 0x1f1   : > { %s6808_s14 = scalar_lea.vmem [#allocation22], %s6711_s24  ;;  %s6811_s15 = scalar_lea.vmem [#allocation23], %s6690_s5 }
 0x1f4   : > { %p1293_p12 = scmp.lt.s32.totalorder %s7779_s18, 1  ;;  %p4337_p0 = scmp.ne.s32.totalorder %s7779_s18, 0 }
 0x1f5   : > { %s7789_s3 = scalar_lea.vmem (!%p4337_p0), [#allocation2], %s6690_s5  ;;  %s7791_s24 = scalar_lea.vmem (!%p4337_p0), [#allocation5], %s6690_s5 }
 0x1f6   : > { %s6766_s22 = scalar_select %p1293_p12, %s7779_s18, 1 }
 0x1f7   : > { %1325 = sbr.rel (%p4337_p0) target bundleno = 510 (0x1fe), region = 164  ;;  %v1326_v0 = vld [vmem:[%s7789_s3] sm:$0xff] (!%p4337_p0)  ;;  %s7790_s27 = smov (!%p4337_p0), %s7789_s3 }
 0x1f8   : > { %s4335_s26 = sshll.u32 %s6766_s22, 1  ;;  %s1311_s1 = scalar_lea.vmem %s7784_s6, %s6766_s22  ;;  %v1327_v1 = vld [vmem:[%s7790_s27 + $0x8] sm:$0xff] (!%p4337_p0)  ;;  %v1330_v2 = vld [vmem:[%s7791_s24] sm:$0xff] (!%p4337_p0)  ;;  %1328 = vst [vmem:[%s6811_s15] sm:$0xff] (!%p4337_p0), %v1326_v0 }
 0x1f9   : > { %s6792_s17 = scalar_lea.vmem %s7785_s11, %s4335_s26  ;;  %s1314_s23 = scalar_lea.vmem %s7786_s21, %s6766_s22  ;;  %1329 = vst [vmem:[%s6811_s15 + $0x8] sm:$0xff] (!%p4337_p0), %v1327_v1 }
 0x1fa   : > { %s6801_s0 = scalar_lea.vmem %s7787_s16, %s4335_s26  ;;  %s1321_s25 = scalar_lea.vmem %s7788_s13, %s6766_s22 }
 0x1fb   : > { %s6814_s6 = scalar_lea.vmem [#allocation24], %s6690_s5  ;;  %s7792_s26 = smov (!%p4337_p0), %s7791_s24 }
 0x1fc   : > { %1332 = vst [vmem:[%s6814_s6] sm:$0xff] (!%p4337_p0), %v1330_v2  ;;  %v1331_v3 = vld [vmem:[%s7792_s26 + $0x8] sm:$0xff] (!%p4337_p0) }
 0x1fd   : > { %1333 = vst [vmem:[%s6814_s6 + $0x8] sm:$0xff] (!%p4337_p0), %v1331_v3 }
 0x1fe PF: > { %v1448_v8 = vld [vmem:[%s6722_s20 + $0x8] sm:$0xff]  ;;  %v1450_v9 = vld [vmem:[%s6722_s20 + $0x18] sm:$0xff]  ;;  %v1447_v10 = vld [vmem:[%s6722_s20] sm:$0xff]  ;;  %s7793_s18 = sld [smem:[#allocation61_spill]]  ;;  %s7795_s21 = sld [smem:[#allocation63_spill]]  ;;  %vm2045_vm0 = vcmask 261120  }
 0x1ff   : > { %v1334_v4 = vld [vmem:[%s6811_s15] sm:$0xff]  ;;  %v4700_v11 = vpack.c.bf16 %v1450_v9, %v1448_v8  ;;  %v1449_v12 = vld [vmem:[%s6722_s20 + $0x10] sm:$0xff]  ;;  %v1451_v17 = vld [vmem:[%s6722_s20 + $0x20] sm:$0xff]  ;;  %s7797_s9 = sld [smem:[#allocation60_spill]]  ;;  %s7799_s27 = sld [smem:[#allocation62_spill]]  ;;  %vm2434_vm2 = vcmask 130048  }
 0x200   : > { %v1335_v5 = vld [vmem:[%s6811_s15 + $0x8] sm:$0xff]  ;;  %1338 = vadd.xlane.f32.xlu0 %v1334_v4  ;;  %v1452_v13 = vld [vmem:[%s6722_s20 + $0x28] sm:$0xff]  ;;  %v1454_v14 = vld [vmem:[%s6722_s20 + $0x38] sm:$0xff]  ;;  %v4702_v15 = vpack.c.bf16 %v1449_v12, %v1447_v10  ;;  %s5940_s5 = smov 64   ;;  %vm3311_vm3 = vcmask 523264   ;;  %vm3316_vm4 = vcmask 785408  }
 0x201   : > { %1340 = vadd.xlane.f32.xlu1 %v1335_v5  ;;  %v4704_v16 = vpack.c.bf16 %v1454_v14, %v1452_v13  ;;  %v1453_v18 = vld [vmem:[%s6722_s20 + $0x30] sm:$0xff]  ;;  %v1456_v19 = vld [vmem:[%s6722_s20 + $0x48] sm:$0xff]  ;;  %4701 = vmatprep.subr.bf16.mxu0 %v4700_v11  ;;  %v1458_v20 = vld [vmem:[%s6722_s20 + $0x58] sm:$0xff]  ;;  %s7813_s30 = sld [smem:[#allocation53_spill]] }
 0x202   : > { %4703 = vmatpush1.bf16.msra.mxu0 %v4702_v15  ;;  %v4706_v21 = vpack.c.bf16 %v1453_v18, %v1451_v17  ;;  %v4708_v22 = vpack.c.bf16 %v1458_v20, %v1456_v19  ;;  %v1455_v23 = vld [vmem:[%s6722_s20 + $0x40] sm:$0xff]  ;;  %v1457_v24 = vld [vmem:[%s6722_s20 + $0x50] sm:$0xff]  ;;  %v1460_v54 = vld [vmem:[%s6722_s20 + $0x68] sm:$0xff] }
 0x203   : > { %v1336_v6 = vld [vmem:[%s6814_s6] sm:$0xff]  ;;  %4705 = vmatprep.subr.bf16.mxu0 %v4704_v16  ;;  %v4710_v25 = vpack.c.bf16 %v1457_v24, %v1455_v23  ;;  %v1459_v57 = vld [vmem:[%s6722_s20 + $0x60] sm:$0xff]  ;;  %v1461_v58 = vld [vmem:[%s6722_s20 + $0x70] sm:$0xff]  ;;  %v5939_v23 = vmov 0.0  }
 0x204   : > { %v1337_v7 = vld [vmem:[%s6814_s6 + $0x8] sm:$0xff]  ;;  %1342 = vadd.xlane.f32.xlu0 %v1336_v6  ;;  %v1462_v55 = vld [vmem:[%s6722_s20 + $0x78] sm:$0xff]  ;;  %v4714_v59 = vpack.c.bf16 %v1461_v58, %v1459_v57  ;;  %v1464_v60 = vld [vmem:[%s6722_s20 + $0x88] sm:$0xff]  ;;  %1543 = vmatprep.mubr.f32.mxu0 %v5939_v23  ;;  %s7794_s11 = scalar_lea.vmem %s7793_s18, %s6766_s22  ;;  %s7796_s29 = scalar_lea.vmem %s7795_s21, %s6766_s22 }
 0x205   : > { %1344 = vadd.xlane.f32.xlu1 %v1337_v7  ;;  %v4712_v56 = vpack.c.bf16 %v1462_v55, %v1460_v54  ;;  %v1466_v61 = vld [vmem:[%s6722_s20 + $0x98] sm:$0xff]  ;;  %v1463_v63 = vld [vmem:[%s6722_s20 + $0x80] sm:$0xff]  ;;  %v1465_v0 = vld [vmem:[%s6722_s20 + $0x90] sm:$0xff]  ;;  %s7798_s12 = scalar_lea.vmem %s7797_s9, %s6766_s22  ;;  %s7800_s24 = scalar_lea.vmem %s7799_s27, %s6766_s22 }
 0x206   : > { %4707 = vmatpush1.bf16.msra.mxu0 %v4706_v21  ;;  %v4716_v62 = vpack.c.bf16 %v1466_v61, %v1464_v60  ;;  %v4718_v1 = vpack.c.bf16 %v1465_v0, %v1463_v63  ;;  %v1468_v2 = vld [vmem:[%s6722_s20 + $0xa8] sm:$0xff]  ;;  %v1470_v3 = vld [vmem:[%s6722_s20 + $0xb8] sm:$0xff]  ;;  %v1471_v11 = vld [vmem:[%s6722_s20 + $0xc0] sm:$0xff]  ;;  %s7807_s18 = sld [smem:[#allocation57_spill]]  ;;  %s7809_s21 = scalar_lea.vmem [#allocation19], %s6708_s7 }
 0x207   : > { %4709 = vmatprep.subr.bf16.mxu0 %v4708_v22  ;;  %v1472_v8 = vld [vmem:[%s6722_s20 + $0xc8] sm:$0xff]  ;;  %v1474_v9 = vld [vmem:[%s6722_s20 + $0xd8] sm:$0xff]  ;;  %v1473_v12 = vld [vmem:[%s6722_s20 + $0xd0] sm:$0xff]  ;;  %s3823_s9 = sshll.u32 %s6811_s15, 4  ;;  %s7814_s22 = sld [smem:[#allocation80_spill]]  ;;  %s7479_s9 = int_to_ptr.vmem [resolvable:$true] %s3823_s9 }
 0x208   : > { %v4724_v10 = vpack.c.bf16 %v1474_v9, %v1472_v8  ;;  %v4726_v13 = vpack.c.bf16 %v1473_v12, %v1471_v11  ;;  %v1476_v14 = vld [vmem:[%s6722_s20 + $0xe8] sm:$0xff]  ;;  %v1478_v15 = vld [vmem:[%s6722_s20 + $0xf8] sm:$0xff]  ;;  %v1475_v17 = vld [vmem:[%s6722_s20 + $0xe0] sm:$0xff]  ;;  %s5738_s27 = scalar_lea.vmem %s7479_s9, 256  ;;  %p7815_p1 = scmp.ne.s32.totalorder %s7813_s30, 0 }
 0x209   : > { %v4728_v16 = vpack.c.bf16 %v1478_v15, %v1476_v14  ;;  %v1477_v18 = vld [vmem:[%s6722_s20 + $0xf0] sm:$0xff]  ;;  %v1416_v20 = vld [vmem:[%s6714_s2 + $0x8] sm:$0xff]  ;;  %v1418_v21 = vld [vmem:[%s6714_s2 + $0x18] sm:$0xff]  ;;  %p5739_p13 = scmp.ne.s32.totalorder %s7479_s9, %s5738_s27 }
 0x20a   : > { %4711 = vmatpush1.bf16.msra.mxu0 %v4710_v25  ;;  %v4730_v19 = vpack.c.bf16 %v1477_v18, %v1475_v17  ;;  %v4732_v22 = vpack.c.bf16 %v1418_v21, %v1416_v20  ;;  %v1685_v24 = vld [vmem:[%s6729_s10 + $0x80] sm:$0xff]  ;;  %v1686_v25 = vld [vmem:[%s6729_s10 + $0x88] sm:$0xff]  ;;  %v1417_v0 = vld [vmem:[%s6714_s2 + $0x10] sm:$0xff] }
 0x20b   : > { %4713 = vmatprep.subr.bf16.mxu0 %v4712_v56  ;;  %v4340_v61 = vld [vmem:[%s7794_s11] ss:$0 sm:$0xff]  ;;  %v1424_v11 = vld [vmem:[%s6714_s2 + $0x48] sm:$0xff]  ;;  %v1426_v12 = vld [vmem:[%s6714_s2 + $0x58] sm:$0xff]  ;;  %p5740_p9 = pnand %p5739_p13, %p7815_p1 }
 0x20c   : > { %v1415_v63 = vld [vmem:[%s6714_s2] sm:$0xff]  ;;  %v1428_v18 = vld [vmem:[%s6714_s2 + $0x68] sm:$0xff]  ;;  %vm7057_vm1 = vmpackc.low %vm2045_vm0, %vm2045_vm0 }
 0x20d   : > { %v1419_v9 = vld [vmem:[%s6714_s2 + $0x20] sm:$0xff]  ;;  %p5741_p8 = pneg %p5740_p9 }
 0x20e   : > { %4715 = vmatpush1.bf16.msra.mxu0 %v4714_v59  ;;  %v1423_v17 = vld [vmem:[%s6714_s2 + $0x40] sm:$0xff] }
 0x20f   : > { %4717 = vmatprep.subr.bf16.mxu0 %v4716_v62 }
 0x212   : > { %4719 = vmatpush1.bf16.msra.mxu0 %v4718_v1  ;;  %v4341_v1 = vld [vmem:[%s7796_s29] ss:$0 sm:$0xff]  ;;  %s7812_s29 = sld [smem:[#allocation56_spill]] }
 0x28d   : > { %v1339_v26 = vpop.xlane.xlu0 %1338 }
 0x28e   : > { %v1341_v27 = vpop.xlane.xlu1 %1340  ;;  %v1786_v39 = vmul.f32 0.0078125, %v1339_v26 }
 0x28f   : > { %v1787_v34 = vmul.f32 0.0078125, %v1341_v27 }
 0x290   : > { %v6863_v47 = vsub.f32 %v1334_v4, %v1786_v39  ;;  %v1689_v39 = vld [vmem:[%s6729_s10 + $0xa0] sm:$0xff] }
 0x291   : > { %v1343_v28 = vpop.xlane.xlu0 %1342  ;;  %v6861_v45 = vsub.f32 %v1335_v5, %v1787_v34  ;;  %v1672_v34 = vld [vmem:[%s6729_s10 + $0x18] sm:$0xff] }
 0x292   : > { %v1345_v29 = vpop.xlane.xlu1 %1344  ;;  %v1346_v30 = vadd.f32 %v1343_v28, %v1339_v26  ;;  %v1788_v46 = vmul.f32 0.0078125, %v1343_v28  ;;  %v1794_v50 = vmul.f32 %v6863_v47, %v6863_v47  ;;  %v1669_v26 = vld [vmem:[%s6729_s10] sm:$0xff]  ;;  %v1670_v28 = vld [vmem:[%s6729_s10 + $0x8] sm:$0xff] }
 0x293   : > { %v1347_v31 = vadd.f32 %v1345_v29, %v1341_v27  ;;  %v1789_v42 = vmul.f32 0.0078125, %v1345_v29  ;;  %v1795_v48 = vmul.f32 %v6861_v45, %v6861_v45  ;;  %v4764_v27 = vpack.c.bf16 %v1686_v25, %v1685_v24  ;;  %v1687_v29 = vld [vmem:[%s6729_s10 + $0x90] sm:$0xff]  ;;  %v1432_v25 = vld [vmem:[%s6714_s2 + $0x88] sm:$0xff] }
 0x294   : > { %v1349_v32 = vmul.f32 0.00390625, %v1346_v30  ;;  %v6871_v51 = vsub.f32 %v1336_v6, %v1788_v46  ;;  %v1688_v30 = vld [vmem:[%s6729_s10 + $0x98] sm:$0xff]  ;;  %v1429_v24 = vld [vmem:[%s6714_s2 + $0x70] sm:$0xff] }
 0x295   : > { %v1350_v33 = vmul.f32 0.00390625, %v1347_v31  ;;  %v6867_v49 = vsub.f32 %v1337_v7, %v1789_v42  ;;  %v4766_v31 = vpack.c.bf16 %v1670_v28, %v1669_v26  ;;  %4765 = vmatprep.subr.bf16.mxu1 %v4764_v27  ;;  %v1434_v26 = vld [vmem:[%s6714_s2 + $0x98] sm:$0xff] }
 0x296   : > { %v6845_v35 = vsub.f32 %v1336_v6, %v1349_v32  ;;  %v6847_v36 = vsub.f32 %v1334_v4, %v1349_v32  ;;  %v1796_v53 = vmul.f32 %v6871_v51, %v6871_v51  ;;  %v4720_v4 = vpack.c.bf16 %v1470_v3, %v1468_v2  ;;  %v1469_v6 = vld [vmem:[%s6722_s20 + $0xb0] sm:$0xff]  ;;  %v1420_v2 = vld [vmem:[%s6714_s2 + $0x28] sm:$0xff]  ;;  %v1422_v3 = vld [vmem:[%s6714_s2 + $0x38] sm:$0xff] }
 0x297   : > { %v6849_v37 = vsub.f32 %v1337_v7, %v1350_v33  ;;  %v6851_v38 = vsub.f32 %v1335_v5, %v1350_v33  ;;  %v1797_v52 = vmul.f32 %v6867_v49, %v6867_v49  ;;  %v1467_v5 = vld [vmem:[%s6722_s20 + $0xa0] sm:$0xff]  ;;  %v4768_v32 = vpack.c.bf16 %v1688_v30, %v1687_v29  ;;  %v1671_v33 = vld [vmem:[%s6729_s10 + $0x10] sm:$0xff]  ;;  %4767 = vmatpush3.bf16.msra.mxu1 %v4766_v31  ;;  %v1436_v31 = vld [vmem:[%s6714_s2 + $0xa8] sm:$0xff]  ;;  %s5942_s20 = smov 32  }
 0x298   : > { %v1361_v40 = vmul.f32 %v6845_v35, %v6845_v35  ;;  %v1353_v41 = vmul.f32 %v6847_v36, %v6847_v36  ;;  %v4722_v7 = vpack.c.bf16 %v1469_v6, %v1467_v5  ;;  %4721 = vmatprep.subr.bf16.mxu0 %v4720_v4  ;;  %v4734_v6 = vpack.c.bf16 %v1417_v0, %v1415_v63  ;;  %v1431_v29 = vld [vmem:[%s6714_s2 + $0x80] sm:$0xff]  ;;  %v1433_v30 = vld [vmem:[%s6714_s2 + $0x90] sm:$0xff] }
 0x299   : > { %v1362_v43 = vmul.f32 %v6849_v37, %v6849_v37  ;;  %v1354_v44 = vmul.f32 %v6851_v38, %v6851_v38  ;;  %4769 = vmatprep.subr.bf16.mxu1 %v4768_v32  ;;  %v4736_v8 = vpack.c.bf16 %v1422_v3, %v1420_v2  ;;  %v4748_v28 = vpack.c.bf16 %v1434_v26, %v1432_v25  ;;  %v1438_v32 = vld [vmem:[%s6714_s2 + $0xb8] sm:$0xff]  ;;  %v1675_v3 = vld [vmem:[%s6729_s10 + $0x30] sm:$0xff] }
 0x29a   : > { %1363 = vadd.xlane.f32.xlu1 %v1361_v40  ;;  %1355 = vadd.xlane.f32.xlu0 %v1353_v41  ;;  %v1690_v40 = vld [vmem:[%s6729_s10 + $0xa8] sm:$0xff]  ;;  %v4770_v41 = vpack.c.bf16 %v1672_v34, %v1671_v33  ;;  %v4750_v33 = vpack.c.bf16 %v1433_v30, %v1431_v29  ;;  %v4752_v34 = vpack.c.bf16 %v1438_v32, %v1436_v31  ;;  %v1683_v26 = vld [vmem:[%s6729_s10 + $0x70] sm:$0xff]  ;;  %v1845_v30 = vld [vmem:[%s6740_s4 + $0x18] sm:$0xff]  ;;  %v1635_v32 = vlaneseq }
 0x29b   : > { %4723 = vmatpush1.bf16.msra.mxu0 %v4722_v7  ;;  %v4772_v42 = vpack.c.bf16 %v1690_v40, %v1689_v39  ;;  %v1435_v39 = vld [vmem:[%s6714_s2 + $0xa0] sm:$0xff]  ;;  %v1437_v40 = vld [vmem:[%s6714_s2 + $0xb0] sm:$0xff] }
 0x29c   : > { %4725 = vmatprep.subr.bf16.mxu0 %v4724_v10  ;;  %4771 = vmatpush3.bf16.msra.mxu1 %v4770_v41  ;;  %v1421_v10 = vld [vmem:[%s6714_s2 + $0x30] sm:$0xff]  ;;  %v1440_v41 = vld [vmem:[%s6714_s2 + $0xc8] sm:$0xff] }
 0x29d   : > { %4773 = vmatprep.subr.bf16.mxu1 %v4772_v42  ;;  %v4738_v14 = vpack.c.bf16 %v1421_v10, %v1419_v9  ;;  %v1442_v42 = vld [vmem:[%s6714_s2 + $0xd8] sm:$0xff]  ;;  %v1678_v9 = vld [vmem:[%s6729_s10 + $0x48] sm:$0xff] }
 0x29e   : > { %1365 = vadd.xlane.f32.xlu1 %v1362_v43  ;;  %1357 = vadd.xlane.f32.xlu0 %v1354_v44  ;;  %v1673_v43 = vld [vmem:[%s6729_s10 + $0x20] sm:$0xff]  ;;  %v1674_v44 = vld [vmem:[%s6729_s10 + $0x28] sm:$0xff] }
 0x29f   : > { %4727 = vmatpush1.bf16.msra.mxu0 %v4726_v13  ;;  %v4774_v46 = vpack.c.bf16 %v1674_v44, %v1673_v43  ;;  %v4754_v43 = vpack.c.bf16 %v1437_v40, %v1435_v39  ;;  %v4756_v44 = vpack.c.bf16 %v1442_v42, %v1440_v41  ;;  %v1843_v29 = vld [vmem:[%s6740_s4 + $0x8] sm:$0xff]  ;;  %v1633_v39 = vld [vmem:[%s6792_s17] sm:$0x3] }
 0x2a0   : > { %4729 = vmatprep.subr.bf16.mxu0 %v4728_v16  ;;  %v4740_v16 = vpack.c.bf16 %v1426_v12, %v1424_v11  ;;  %v1695_v11 = vld [vmem:[%s6729_s10 + $0xd0] sm:$0xff]  ;;  %v1696_v12 = vld [vmem:[%s6729_s10 + $0xd8] sm:$0xff]  ;;  %v4796_v31 = vpack.c.bf16 %v1845_v30, %v1843_v29 }
 0x2a1   : > { %4775 = vmatpush3.bf16.msra.mxu1 %v4774_v46  ;;  %v1439_v46 = vld [vmem:[%s6714_s2 + $0xc0] sm:$0xff] }
 0x2a2   : > { %1800 = vadd.xlane.f32.xlu1 %v1795_v48  ;;  %1798 = vadd.xlane.f32.xlu0 %v1794_v50 }
 0x2a3   : > { %4731 = vmatpush1.bf16.msra.mxu0 %v4730_v19  ;;  %v1430_v19 = vld [vmem:[%s6714_s2 + $0x78] sm:$0xff] }
 0x2a4   : > { %4733 = vmatprep.subr.bf16.mxu0 %v4732_v22  ;;  %v4744_v21 = vpack.c.bf16 %v1430_v19, %v1428_v18  ;;  %v1427_v22 = vld [vmem:[%s6714_s2 + $0x60] sm:$0xff] }
 0x2a5   : > { %v4746_v27 = vpack.c.bf16 %v1429_v24, %v1427_v22  ;;  %v1681_v19 = vld [vmem:[%s6729_s10 + $0x60] sm:$0xff]  ;;  %v1699_v22 = vld [vmem:[%s6729_s10 + $0xf0] sm:$0xff]  ;;  %v1700_v24 = vld [vmem:[%s6729_s10 + $0xf8] sm:$0xff] }
 0x2a6   : > { %1804 = vadd.xlane.f32.xlu1 %v1797_v52  ;;  %1802 = vadd.xlane.f32.xlu0 %v1796_v53  ;;  %v4792_v25 = vpack.c.bf16 %v1700_v24, %v1699_v22  ;;  %v1850_v22 = vld [vmem:[%s6740_s4 + $0x40] sm:$0xff]  ;;  %v1852_v24 = vld [vmem:[%s6740_s4 + $0x50] sm:$0xff] }
 0x2a7   : > { %v4806_v29 = vpack.c.bf16 %v1852_v24, %v1850_v22 }
 0x327   : > { %v1364_v48 = vpop.xlane.xlu1 %1363  ;;  %v1356_v50 = vpop.xlane.xlu0 %1355 }
 0x328   : > { %v1367_v52 = vadd.f32 %v1364_v48, %v1356_v50  ;;  %v1441_v48 = vld [vmem:[%s6714_s2 + $0xd0] sm:$0xff]  ;;  %v1444_v50 = vld [vmem:[%s6714_s2 + $0xe8] sm:$0xff] }
 0x32a   : > { %v1369_v53 = vmul.f32 0.00390625, %v1367_v52  ;;  %v1446_v52 = vld [vmem:[%s6714_s2 + $0xf8] sm:$0xff] }
 0x32b   : > { %v1366_v54 = vpop.xlane.xlu1 %1365  ;;  %v1358_v55 = vpop.xlane.xlu0 %1357 }
 0x32c   : > { %v1371_v56 = vadd.f32 1e-05, %v1369_v53  ;;  %v1368_v57 = vadd.f32 %v1366_v54, %v1358_v55  ;;  %v4758_v53 = vpack.c.bf16 %v1441_v48, %v1439_v46  ;;  %v4760_v55 = vpack.c.bf16 %v1446_v52, %v1444_v50 }
 0x32e   : > { %5236 = vrsqrt.f32 %v1371_v56  ;;  %v1370_v58 = vmul.f32 0.00390625, %v1368_v57  ;;  %v1443_v56 = vld [vmem:[%s6714_s2 + $0xe0] sm:$0xff]  ;;  %v1445_v57 = vld [vmem:[%s6714_s2 + $0xf0] sm:$0xff] }
 0x330   : > { %v1372_v59 = vadd.f32 1e-05, %v1370_v58  ;;  %v4338_v58 = vld [vmem:[%s7798_s12] ss:$0 sm:$0xff] }
 0x332   : > { %5238 = vrsqrt.f32 %v1372_v59  ;;  %v4762_v59 = vpack.c.bf16 %v1445_v57, %v1443_v56 }
 0x338   : > { %v6912_v60 = vpop.eup %5236 }
 0x339   : > { %v1395_v62 = vmul.f32 %v6912_v60, %v6845_v35  ;;  %v1375_v54 = vmul.f32 %v6912_v60, %v6847_v36  ;;  %v4339_v60 = vld [vmem:[%s7800_s24] ss:$0 sm:$0xff]  ;;  %s5943_s24 = smov [#allocation23]  }
 0x33b   : > { %v1404_v4 = vmul.f32 %v4340_v61, %v1395_v62 }
 0x33c   : > { %v6930_v5 = vpop.eup %5238 }
 0x33d   : > { %v1413_v7 = vadd.f32 %v4341_v1, %v1404_v4  ;;  %v1396_v35 = vmul.f32 %v6930_v5, %v6849_v37  ;;  %v1425_v37 = vld [vmem:[%s6714_s2 + $0x50] sm:$0xff]  ;;  %v1376_v36 = vmul.f32 %v6930_v5, %v6851_v38  ;;  %v1692_v38 = vld [vmem:[%s6729_s10 + $0xb8] sm:$0xff]  ;;  %s7801_s2 = scalar_lea.vmem [#allocation11], %s6708_s7 }
 0x33e   : > { %v4742_v20 = vpack.c.bf16 %v1425_v37, %v1423_v17  ;;  %v1676_v4 = vld [vmem:[%s6729_s10 + $0x38] sm:$0xff]  ;;  %v1697_v17 = vld [vmem:[%s6729_s10 + $0xe0] sm:$0xff]  ;;  %v1698_v37 = vld [vmem:[%s6729_s10 + $0xe8] sm:$0xff] }
 0x33f   : > { %1544 = vmatmul.mubr.f32.vlgmr.msra.gmra.mrb[0].mxu0 %v1413_v7  ;;  %v1405_v13 = vmul.f32 %v4340_v61, %v1396_v35  ;;  %v1384_v61 = vmul.f32 %v4338_v58, %v1375_v54  ;;  %v1385_v63 = vmul.f32 %v4338_v58, %v1376_v36  ;;  %v4778_v5 = vpack.c.bf16 %v1676_v4, %v1675_v3  ;;  %v1694_v7 = vld [vmem:[%s6729_s10 + $0xc8] sm:$0xff]  ;;  %v1677_v35 = vld [vmem:[%s6729_s10 + $0x40] sm:$0xff] }
 0x340   : > { %4735 = vmatpush1.bf16.msra.mxu0 %v4734_v6  ;;  %1549 = vmatprep.mubr.f32.mxu0 %v5939_v23  ;;  %v1693_v6 = vld [vmem:[%s6729_s10 + $0xc0] sm:$0xff]  ;;  %v4782_v10 = vpack.c.bf16 %v1678_v9, %v1677_v35  ;;  %v4788_v18 = vpack.c.bf16 %v1698_v37, %v1697_v17 }
 0x341   : > { %4737 = vmatprep.subr.bf16.mxu0 %v4736_v8  ;;  %v1414_v15 = vadd.f32 %v4341_v1, %v1405_v13  ;;  %v1393_v62 = vadd.f32 %v4339_v60, %v1384_v61  ;;  %v1394_v0 = vadd.f32 %v4339_v60, %v1385_v63  ;;  %v1691_v1 = vld [vmem:[%s6729_s10 + $0xb0] sm:$0xff]  ;;  %v4780_v8 = vpack.c.bf16 %v1694_v7, %v1693_v6  ;;  %v1842_v60 = vld [vmem:[%s6740_s4] sm:$0xff]  ;;  %v1799_v7 = vpop.xlane.xlu0 %1798 }
 0x342   : > { %v4776_v2 = vpack.c.bf16 %v1692_v38, %v1691_v1  ;;  %v4784_v13 = vpack.c.bf16 %v1696_v12, %v1695_v11  ;;  %v1847_v1 = vld [vmem:[%s6740_s4 + $0x28] sm:$0xff]  ;;  %v1849_v38 = vld [vmem:[%s6740_s4 + $0x38] sm:$0xff]  ;;  %v1848_v11 = vld [vmem:[%s6740_s4 + $0x30] sm:$0xff]  ;;  %v1806_v17 = vmul.f32 0.0078125, %v1799_v7 }
 0x343   : > { %1550 = vmatmul.mubr.f32.gmra.mrb[2].mxu0 %v1414_v15  ;;  %v1680_v15 = vld [vmem:[%s6729_s10 + $0x58] sm:$0xff]  ;;  %v4800_v9 = vpack.c.bf16 %v1849_v38, %v1847_v1  ;;  %v1866_v38 = vld [vmem:[%s6740_s4 + $0xc0] sm:$0xff] }
 0x344   : > { %4739 = vmatpush1.bf16.msra.mxu0 %v4738_v14  ;;  %1620 = vmatprep.mubr.f32.mxu0 %v5939_v23  ;;  %v1679_v14 = vld [vmem:[%s6729_s10 + $0x50] sm:$0xff] }
 0x345   : > { %4741 = vmatprep.subr.bf16.mxu0 %v4740_v16  ;;  %4777 = vmatprep.subr.bf16.mxu1 %v4776_v2  ;;  %v4786_v16 = vpack.c.bf16 %v1680_v15, %v1679_v14  ;;  %v1851_v14 = vld [vmem:[%s6740_s4 + $0x48] sm:$0xff]  ;;  %v1853_v15 = vld [vmem:[%s6740_s4 + $0x58] sm:$0xff]  ;;  %v1803_v30 = vpop.xlane.xlu0 %1802 }
 0x346   : > { %4779 = vmatpush3.bf16.msra.mxu1 %v4778_v5 }
 0x347   : > { %4781 = vmatprep.subr.bf16.mxu1 %v4780_v8 }
 0x348   : > { %4743 = vmatpush1.bf16.msra.mxu0 %v4742_v20  ;;  %v1682_v20 = vld [vmem:[%s6729_s10 + $0x68] sm:$0xff] }
 0x349   : > { %4745 = vmatprep.subr.bf16.mxu0 %v4744_v21  ;;  %v4790_v21 = vpack.c.bf16 %v1682_v20, %v1681_v19  ;;  %v1801_v19 = vpop.xlane.xlu1 %1800 }
 0x34a   : > { %4783 = vmatpush3.bf16.msra.mxu1 %v4782_v10  ;;  %v1846_v10 = vld [vmem:[%s6740_s4 + $0x20] sm:$0xff] }
 0x34b   : > { %4785 = vmatprep.subr.bf16.mxu1 %v4784_v13 }
 0x34c   : > { %4747 = vmatpush1.bf16.msra.mxu0 %v4746_v27  ;;  %v1684_v27 = vld [vmem:[%s6729_s10 + $0x78] sm:$0xff]  ;;  %s7802_s10 = scalar_lea.vmem [#allocation13], %s6708_s7 }
 0x34d   : > { %4749 = vmatprep.subr.bf16.mxu0 %v4748_v28  ;;  %v4794_v28 = vpack.c.bf16 %v1684_v27, %v1683_v26  ;;  %v1857_v26 = vld [vmem:[%s6740_s4 + $0x78] sm:$0xff]  ;;  %v1807_v27 = vmul.f32 0.0078125, %v1801_v19 }
 0x34e   : > { %4787 = vmatpush3.bf16.msra.mxu1 %v4786_v16 }
 0x34f   : > { %4789 = vmatprep.subr.bf16.mxu1 %v4788_v18  ;;  %v4802_v18 = vpack.c.bf16 %v1848_v11, %v1846_v10  ;;  %v4343_v11 = vld [vmem:[%s7801_s2] ss:$0 sm:$0xff]  ;;  %s5742_s2 = sshll.u32 %s5943_s24, 4  ;;  %s5743_s2 = int_to_ptr.vmem [resolvable:$false] %s5742_s2 }
 0x350   : > { %4751 = vmatpush1.bf16.msra.mxu0 %v4750_v33  ;;  %v6999_v33 = vshrl.u32 %v1635_v32, 7  ;;  %v1854_v32 = vld [vmem:[%s6740_s4 + $0x60] sm:$0xff]  ;;  %p5745_p2 = scmp.lt.s32.totalorder %s7479_s9, %s5743_s2 }
 0x351   : > { %4753 = vmatprep.subr.bf16.mxu0 %v4752_v34 }
 0x352   : > { %4791 = vmatpush3.bf16.msra.mxu1 %v4790_v21  ;;  %v1637_v34 = vsub.s32 0, %v6999_v33  ;;  %v1641_v40 = vsub.s32 1, %v6999_v33  ;;  %v4804_v21 = vpack.c.bf16 %v1853_v15, %v1851_v14 }
 0x353   : > { %4793 = vmatprep.subr.bf16.mxu1 %v4792_v25  ;;  %v1855_v25 = vld [vmem:[%s6740_s4 + $0x68] sm:$0xff] }
 0x354   : > { %4755 = vmatpush1.bf16.msra.mxu0 %v4754_v43  ;;  %v1638_v41 = vrot.slane %v1633_v39, %v1637_v34  ;;  %v1642_v42 = vrot.slane %v1633_v39, %v1641_v40  ;;  %v1856_v39 = vld [vmem:[%s6740_s4 + $0x70] sm:$0xff] }
 0x355   : > { %4757 = vmatprep.subr.bf16.mxu0 %v4756_v44 }
 0x356   : > { %4795 = vmatpush3.bf16.msra.mxu1 %v4794_v28  ;;  %v1810_v28 = vadd.f32 1e-05, %v1806_v17 }
 0x357   : > { %4797 = vmatprep.subr.bf16.mxu1 %v4796_v31  ;;  %v4808_v31 = vpack.c.bf16 %v1857_v26, %v1855_v25 }
 0x358   : > { %4759 = vmatpush1.bf16.msra.mxu0 %v4758_v53 }
 0x359   : > { %4761 = vmatprep.subr.bf16.mxu0 %v4760_v55 }
 0x35c   : > { %4763 = vmatpush1.bf16.msra.mxu0 %v4762_v59 }
 0x35f   : > { %1621 = vmatmul.mubr.f32.vlgmr.msra.gmra.mrb[0].mxu0 %v1393_v62  ;;  %v1844_v62 = vld [vmem:[%s6740_s4 + $0x10] sm:$0xff] }
 0x360   : > { %1626 = vmatprep.mubr.f32.mxu0 %v5939_v23  ;;  %v4798_v5 = vpack.c.bf16 %v1844_v62, %v1842_v60  ;;  %v1867_v60 = vld [vmem:[%s6740_s4 + $0xc8] sm:$0xff]  ;;  %v1869_v62 = vld [vmem:[%s6740_s4 + $0xd8] sm:$0xff] }
 0x361   : > { %v4820_v1 = vpack.c.bf16 %v1869_v62, %v1867_v60 }
 0x363   : > { %1627 = vmatmul.mubr.f32.gmra.mrb[2].mxu0 %v1394_v0 }
 0x432   : > { %v1622_v43 = vpop.f32.mrb[0].mxu0 }
 0x433   : > { %v1645_v44 = vadd.f32 %v1638_v41, %v1622_v43  ;;  %v1624_v46 = vpop.f32.mrb[1].mxu0  ;;  %v1811_v43 = vadd.f32 1e-05, %v1807_v27 }
 0x434   : > { %v1646_v48 = vadd.f32 %v1642_v42, %v1624_v46  ;;  %v4810_v46 = vpack.c.bf16 %v1856_v39, %v1854_v32 }
 0x435   : > { %v1653_v50 = vmul.f32 0.70710677, %v1645_v44  ;;  %v1649_v2 = vmul.f32 0.5, %v1645_v44  ;;  %v1808_v44 = vmul.f32 0.0078125, %v1803_v30 }
 0x436   : > { %v1654_v52 = vmul.f32 0.70710677, %v1646_v48  ;;  %v1628_v53 = vpop.f32.mrb[2].mxu0  ;;  %v1650_v63 = vmul.f32 0.5, %v1646_v48  ;;  %v1805_v48 = vpop.xlane.xlu1 %1804 }
 0x437   : > { %5240 = verf.f32 %v1653_v50  ;;  %v1647_v54 = vadd.f32 %v1638_v41, %v1628_v53  ;;  %v1630_v55 = vpop.f32.mrb[3].mxu0  ;;  %v1859_v41 = vld [vmem:[%s6740_s4 + $0x88] sm:$0xff]  ;;  %v1860_v53 = vld [vmem:[%s6740_s4 + $0x90] sm:$0xff] }
 0x438   : > { %5242 = verf.f32 %v1654_v52  ;;  %v1648_v56 = vadd.f32 %v1642_v42, %v1630_v55  ;;  %v1861_v42 = vld [vmem:[%s6740_s4 + $0x98] sm:$0xff]  ;;  %v1858_v52 = vld [vmem:[%s6740_s4 + $0x80] sm:$0xff] }
 0x439   : > { %v1655_v57 = vmul.f32 0.70710677, %v1647_v54  ;;  %v1651_v16 = vmul.f32 0.5, %v1647_v54  ;;  %v4812_v50 = vpack.c.bf16 %v1861_v42, %v1859_v41  ;;  %v1863_v54 = vld [vmem:[%s6740_s4 + $0xa8] sm:$0xff]  ;;  %v1865_v55 = vld [vmem:[%s6740_s4 + $0xb8] sm:$0xff] }
 0x43a   : > { %v1656_v58 = vmul.f32 0.70710677, %v1648_v56  ;;  %v1652_v12 = vmul.f32 0.5, %v1648_v56  ;;  %v1809_v56 = vmul.f32 0.0078125, %v1805_v48 }
 0x43b   : > { %5244 = verf.f32 %v1655_v57  ;;  %v1812_v57 = vadd.f32 1e-05, %v1808_v44 }
 0x43c   : > { %5246 = verf.f32 %v1656_v58  ;;  %v4814_v58 = vpack.c.bf16 %v1860_v53, %v1858_v52 }
 0x43d   : > { %5248 = vrsqrt.f32 %v1810_v28  ;;  %v4342_v28 = vld [vmem:[%s1311_s1] ss:$0 sm:$0xff]  ;;  %s5941_s1 = smov 96  }
 0x43e   : > { %5250 = vrsqrt.f32 %v1811_v43 }
 0x43f   : > { %5252 = vrsqrt.f32 %v1812_v57 }
 0x441   : > { %v5241_v59 = vpop.eup %5240 }
 0x442   : > { %v5243_v61 = vpop.eup %5242  ;;  %v1661_v36 = vadd.f32 1.0, %v5241_v59  ;;  %v4816_v59 = vpack.c.bf16 %v1865_v55, %v1863_v54 }
 0x443   : > { %v1662_v0 = vadd.f32 1.0, %v5243_v61  ;;  %v1862_v61 = vld [vmem:[%s6740_s4 + $0xa0] sm:$0xff] }
 0x444   : > { %v1665_v35 = vmul.f32 %v1661_v36, %v1649_v2  ;;  %v1864_v36 = vld [vmem:[%s6740_s4 + $0xb0] sm:$0xff] }
 0x445   : > { %v5245_v3 = vpop.eup %5244  ;;  %v1666_v4 = vmul.f32 %v1662_v0, %v1650_v63  ;;  %v1813_v63 = vadd.f32 1e-05, %v1809_v56  ;;  %v4818_v0 = vpack.c.bf16 %v1864_v36, %v1862_v61  ;;  %v1868_v2 = vld [vmem:[%s6740_s4 + $0xd0] sm:$0xff] }
 0x446   : > { %v5247_v6 = vpop.eup %5246  ;;  %v1663_v8 = vadd.f32 1.0, %v5245_v3 }
 0x447   : > { %v1664_v13 = vadd.f32 1.0, %v5247_v6  ;;  %1772 = vmatprep.mubr.f32.mxu1 %v1666_v4  ;;  %v5249_v3 = vpop.eup %5248  ;;  %v1871_v4 = vld [vmem:[%s6740_s4 + $0xe8] sm:$0xff]  ;;  %5254 = vrsqrt.f32 %v1813_v63  ;;  %v4822_v6 = vpack.c.bf16 %v1868_v2, %v1866_v38 }
 0x448   : > { %1773 = vmatmul.mubr.f32.vlgmr.msra.gmra.mrb[0].mxu1 %v1665_v35  ;;  %v1667_v20 = vmul.f32 %v1663_v8, %v1651_v16  ;;  %v1818_v7 = vmul.f32 %v5249_v3, %v6863_v47  ;;  %v1870_v35 = vld [vmem:[%s6740_s4 + $0xe0] sm:$0xff]  ;;  %v5251_v10 = vpop.eup %5250  ;;  %v4344_v16 = vld [vmem:[%s7802_s10] ss:$0 sm:$0xff]  ;;  %s5744_s10 = scalar_lea.vmem %s5743_s2, 512 }
 0x449   : > { %4799 = vmatpush1.bf16.msra.mxu1 %v4798_v5  ;;  %v1668_v37 = vmul.f32 %v1664_v13, %v1652_v12  ;;  %v1873_v5 = vld [vmem:[%s6740_s4 + $0xf8] sm:$0xff]  ;;  %v1819_v14 = vmul.f32 %v5251_v10, %v6861_v45  ;;  %v5253_v15 = vpop.eup %5252  ;;  %p5746_p6 = scmp.lt.s32.totalorder %s5744_s10, %s5738_s27 }
 0x44a   : > { %4801 = vmatprep.subr.bf16.mxu1 %v4800_v9  ;;  %v4824_v8 = vpack.c.bf16 %v1873_v5, %v1871_v4  ;;  %v1872_v9 = vld [vmem:[%s6740_s4 + $0xf0] sm:$0xff]  ;;  %v1828_v13 = vmul.f32 %v4343_v11, %v1818_v7  ;;  %v1820_v47 = vmul.f32 %v5253_v15, %v6871_v51 }
 0x44b   : > { %1777 = vmatprep.mubr.f32.mxu1 %v1668_v37  ;;  %v4826_v12 = vpack.c.bf16 %v1872_v9, %v1870_v35  ;;  %v1829_v37 = vmul.f32 %v4343_v11, %v1819_v14  ;;  %p5747_p11 = por %p5746_p6, %p5745_p2 }
 0x44c   : > { %1778 = vmatmul.mubr.f32.gmra.mrb[2].mxu1 %v1667_v20  ;;  %v1838_v17 = vadd.f32 %v4344_v16, %v1828_v13  ;;  %v1830_v20 = vmul.f32 %v4343_v11, %v1820_v47 }
 0x44d   : > { %4803 = vmatpush1.bf16.msra.mxu1 %v4802_v18  ;;  %1938 = vmatprep.mubr.f32.mxu1 %v5939_v23  ;;  %v1839_v19 = vadd.f32 %v4344_v16, %v1829_v37  ;;  %p5748_p7 = pnand %p5747_p11, %p5741_p8 }
 0x44e   : > { %4805 = vmatprep.subr.bf16.mxu1 %v4804_v21  ;;  %v1840_v45 = vadd.f32 %v4344_v16, %v1830_v20 }
 0x451   : > { %4807 = vmatpush1.bf16.msra.mxu1 %v4806_v29  ;;  %v5255_v18 = vpop.eup %5254 }
 0x452   : > { %4809 = vmatprep.subr.bf16.mxu1 %v4808_v31  ;;  %v1821_v21 = vmul.f32 %v5255_v18, %v6867_v49 }
 0x454   : > { %v1831_v22 = vmul.f32 %v4343_v11, %v1821_v21 }
 0x455   : > { %4811 = vmatpush1.bf16.msra.mxu1 %v4810_v46 }
 0x456   : > { %4813 = vmatprep.subr.bf16.mxu1 %v4812_v50  ;;  %v1841_v24 = vadd.f32 %v4344_v16, %v1831_v22 }
 0x459   : > { %4815 = vmatpush1.bf16.msra.mxu1 %v4814_v58 }
 0x45a   : > { %4817 = vmatprep.subr.bf16.mxu1 %v4816_v59 }
 0x45d   : > { %4819 = vmatpush1.bf16.msra.mxu1 %v4818_v0 }
 0x45e   : > { %4821 = vmatprep.subr.bf16.mxu1 %v4820_v1 }
 0x461   : > { %4823 = vmatpush1.bf16.msra.mxu1 %v4822_v6 }
 0x462   : > { %4825 = vmatprep.subr.bf16.mxu1 %v4824_v8 }
 0x465   : > { %4827 = vmatpush1.bf16.msra.mxu1 %v4826_v12 }
 0x468   : > { %1939 = vmatmul.mubr.f32.vlgmr.msra.gmra.mrb[4].mxu1 %v1838_v17 }
 0x469   : > { %1944 = vmatprep.mubr.f32.mxu1 %v5939_v23 }
 0x46c   : > { %1945 = vmatmul.mubr.f32.gmra.mrb[6].mxu1 %v1839_v19 }
 0x46d   : > { %1950 = vmatprep.mubr.f32.mxu1 %v5939_v23 }
 0x470   : > { %1951 = vmatmul.mubr.f32.gmra.mrb[8].mxu1 %v1840_v45 }
 0x471   : > { %1956 = vmatprep.mubr.f32.mxu1 %v5939_v23 }
 0x474   : > { %1957 = vmatmul.mubr.f32.gmra.mrb[10].mxu1 %v1841_v24 }
 0x51b   : > { %v4440_v51 = vpop.f32.mrb[0].mxu1 }
 0x51c   : > { %v4441_v25 = vpop.f32.mrb[1].mxu1 }
 0x51d   : > { %v4442_v26 = vadd.f32 %v4441_v25, %v4440_v51 }
 0x51f   : > { %v4443_v27 = vpop.f32.mrb[2].mxu1  ;;  %v1775_v30 = vadd.f32 %v4442_v26, %v4342_v28 }
 0x520   : > { %v4444_v49 = vpop.f32.mrb[3].mxu1 }
 0x521   : > { %v4445_v29 = vadd.f32 %v4444_v49, %v4443_v27 }
 0x523   : > { %v1780_v31 = vadd.f32 %v4445_v29, %v4342_v28 }
 0x525   : > { %v5166_v39 = vpack.i.bf16 %v1780_v31, %v1775_v30  ;;  %v4828_v41 = vpack.c.bf16 %v1780_v31, %v1775_v30 }
 0x527   : > { %5167 = vrot.lane.b32.xlu1 %v5166_v39, %s5940_s5  ;;  %4830 = vmatprep.subr.msk.bf16.mxu1 %vm7057_vm1, %v4828_v41 }
 0x528   : > { %5162 = vrot.lane.b32.xlu0 %v5166_v39, %s5941_s1  ;;  %4833 = vmatpush3.bf16.xpose.msk.msra.mxu1 %vm7057_vm1, %v4828_v41 }
 0x52b   : > { %5172 = vrot.lane.b32.xlu1 %v5166_v39, %s5942_s20 }
 0x53b   : > { %v1940_v42 = vpop.f32.mrb[4].mxu1 }
 0x53c   : > { %1967 = vrot.lane.b32.xlu1 %v1940_v42, %s5941_s1  ;;  %v1942_v43 = vpop.f32.mrb[5].mxu1  ;;  %4570 = vmatprep.mubr.msk.f32.mxu1 %vm2045_vm0, %v1940_v42 }
 0x53f   : > { %v1946_v44 = vpop.f32.mrb[6].mxu1 }
 0x540   : > { %v1948_v46 = vpop.f32.mrb[7].mxu1  ;;  %1969 = vrot.lane.b32.xlu0 %v1946_v44, %s5941_s1  ;;  %4571 = vmatmul.mubr.msk.f32.vlgmr.msra.gmra.mrb[12].mxu1 %vm2045_vm0, %v1946_v44 }
 0x541   : > { %v4852_v48 = vpack.c.bf16 %v1948_v46, %v1942_v43  ;;  %v7072_v50 = vpack.i.bf16 %v1948_v46, %v1942_v43 }
 0x543   : > { %v1952_v52 = vpop.f32.mrb[8].mxu1 }
 0x544   : > { %1971 = vrot.lane.b32.xlu1 %v1952_v52, %s5941_s1  ;;  %v1954_v53 = vpop.f32.mrb[9].mxu1  ;;  %4573 = vmatprep.mubr.msk.f32.mxu1 %vm2045_vm0, %v1952_v52 }
 0x547   : > { %v1958_v54 = vpop.f32.mrb[10].mxu1 }
 0x548   : > { %1975 = vrot.lane.b32.xlu1 %v1940_v42, %s5940_s5  ;;  %1973 = vrot.lane.b32.xlu0 %v1958_v54, %s5941_s1  ;;  %v1960_v55 = vpop.f32.mrb[11].mxu1 }
 0x549   : > { %4574 = vmatmul.mubr.msk.f32.gmra.mrb[14].mxu1 %vm2045_vm0, %v1958_v54  ;;  %v7079_v56 = vpack.i.bf16 %v1960_v55, %v1954_v53  ;;  %v7081_v57 = vpack.c.bf16 %v1960_v55, %v1954_v53 }
 0x54c   : > { %1983 = vrot.lane.b32.xlu1 %v1940_v42, %s5942_s20  ;;  %1977 = vrot.lane.b32.xlu0 %v1946_v44, %s5940_s5 }
 0x550   : > { %1979 = vrot.lane.b32.xlu1 %v1952_v52, %s5940_s5  ;;  %1985 = vrot.lane.b32.xlu0 %v1946_v44, %s5942_s20 }
 0x554   : > { %1987 = vrot.lane.b32.xlu1 %v1952_v52, %s5942_s20  ;;  %1981 = vrot.lane.b32.xlu0 %v1958_v54, %s5940_s5 }
 0x558   : > { %1989 = vrot.lane.b32.xlu0 %v1958_v54, %s5942_s20 }
 0x599   : > { %v5168_v58 = vpop.permute.xlu1 %5167 }
 0x59a   : > { %v5163_v59 = vpop.permute.xlu0 %5162  ;;  %v5170_v61 = vunpack.i.h.bf16 %v5168_v58  ;;  %v5169_v36 = vunpack.i.l.bf16 %v5168_v58 }
 0x59b   : > { %v5165_v60 = vunpack.i.h.bf16 %v5163_v59  ;;  %v5164_v62 = vunpack.i.l.bf16 %v5163_v59 }
 0x59c   : > { %v4840_v2 = vpack.c.bf16 %v5170_v61, %v5169_v36 }
 0x59d   : > { %v4834_v63 = vpack.c.bf16 %v5165_v60, %v5164_v62  ;;  %v5173_v0 = vpop.permute.xlu1 %5172 }
 0x59e   : > { %v5175_v1 = vunpack.i.h.bf16 %v5173_v0  ;;  %v5174_v38 = vunpack.i.l.bf16 %v5173_v0 }
 0x59f   : > { %4836 = vmatprep.subr.msk.bf16.mxu1 %vm7057_vm1, %v4834_v63 }
 0x5a0   : > { %v4846_v3 = vpack.c.bf16 %v5175_v1, %v5174_v38  ;;  %4839 = vmatpush3.bf16.xpose.msk.msra.mxu1 %vm7057_vm1, %v4834_v63 }
 0x5a1   : > { %4842 = vmatprep.subr.msk.bf16.mxu1 %vm7057_vm1, %v4840_v2 }
 0x5a2   : > { %4848 = vmatprep.subr.msk.bf16.mxu0 %vm7057_vm1, %v4846_v3 }
 0x5a3   : > { %4851 = vmatpush3.bf16.xpose.msk.msra.mxu0 %vm7057_vm1, %v4846_v3 }
 0x5ae   : > { %v1968_v4 = vpop.permute.xlu1 %1967 }
 0x5af   : > { %4580 = vmatprep.mubr.msk.f32.mxu1 %vm2045_vm0, %v1968_v4 }
 0x5b2   : > { %v1970_v5 = vpop.permute.xlu0 %1969 }
 0x5b3   : > { %4581 = vmatmul.mubr.msk.f32.vlgmr.msra.gmra.mrb[16].mxu1 %vm2045_vm0, %v1970_v5 }
 0x5b4   : > { %4845 = vmatpush3.bf16.xpose.msk.msra.mxu1 %vm7057_vm1, %v4840_v2 }
 0x5b5   : > { %4853 = vmatprep.subr.bf16.mxu1 %v4852_v48 }
 0x5b6   : > { %v1972_v6 = vpop.permute.xlu1 %1971 }
 0x5b7   : > { %4583 = vmatprep.mubr.msk.f32.mxu1 %vm2045_vm0, %v1972_v6 }
 0x5ba   : > { %v1976_v7 = vpop.permute.xlu1 %1975  ;;  %v1974_v8 = vpop.permute.xlu0 %1973 }
 0x5bb   : > { %4584 = vmatmul.mubr.msk.f32.gmra.mrb[18].mxu1 %vm2045_vm0, %v1974_v8 }
 0x5bc   : > { %4590 = vmatprep.mubr.msk.f32.mxu1 %vm2045_vm0, %v1976_v7 }
 0x5be   : > { %v1984_v35 = vpop.permute.xlu1 %1983  ;;  %v1978_v9 = vpop.permute.xlu0 %1977 }
 0x5bf   : > { %4591 = vmatmul.mubr.msk.f32.vlgmr.msra.gmra.mrb[20].mxu1 %vm2045_vm0, %v1978_v9  ;;  %4600 = vmatprep.mubr.msk.f32.mxu0 %vm2045_vm0, %v1984_v35 }
 0x5c0   : > { %4855 = vmatpush3.bf16.msra.mxu1 %v4852_v48 }
 0x5c2   : > { %v1980_v10 = vpop.permute.xlu1 %1979  ;;  %v1986_v11 = vpop.permute.xlu0 %1985 }
 0x5c3   : > { %4593 = vmatprep.mubr.msk.f32.mxu1 %vm2045_vm0, %v1980_v10  ;;  %4601 = vmatmul.mubr.msk.f32.vlgmr.msra.gmra.mrb[4].mxu0 %vm2045_vm0, %v1986_v11 }
 0x5c6   : > { %v1988_v12 = vpop.permute.xlu1 %1987  ;;  %v1982_v13 = vpop.permute.xlu0 %1981 }
 0x5c7   : > { %4594 = vmatmul.mubr.msk.f32.gmra.mrb[22].mxu1 %vm2045_vm0, %v1982_v13  ;;  %4603 = vmatprep.mubr.msk.f32.mxu0 %vm2045_vm0, %v1988_v12 }
 0x5ca   : > { %v1990_v14 = vpop.permute.xlu0 %1989 }
 0x5cb   : > { %4604 = vmatmul.mubr.msk.f32.gmra.mrb[6].mxu0 %vm2045_vm0, %v1990_v14 }
 0x613   : > { %v4572_v15 = vpop.f32.mrb[12].mxu1 }
 0x614   : > { %v7114_v16 = vpop.f32.mrb[13].mxu1  ;;  %v2438_v17 = vsel %vm2434_vm2, %v4572_v15, -inf }
 0x615   : > { %2439 = vmax.xlane.f32.xlu0 %v2438_v17  ;;  %v2435_v37 = vsel %vm2434_vm2, %v7114_v16, -inf }
 0x616   : > { %2436 = vmax.xlane.f32.xlu1 %v2435_v37 }
 0x61c   : > { %v4575_v47 = vpop.f32.mrb[14].mxu1 }
 0x61d   : > { %v7119_v18 = vpop.f32.mrb[15].mxu1  ;;  %v2444_v19 = vsel %vm2434_vm2, %v4575_v47, -inf }
 0x61e   : > { %2445 = vmax.xlane.f32.xlu0 %v2444_v19  ;;  %v2441_v20 = vsel %vm2434_vm2, %v7119_v18, -inf }
 0x61f   : > { %2442 = vmax.xlane.f32.xlu1 %v2441_v20 }
 0x686   : > { %v4582_v21 = vpop.f32.mrb[16].mxu1 }
 0x687   : > { %v7124_v45 = vpop.f32.mrb[17].mxu1  ;;  %v2450_v22 = vsel %vm2434_vm2, %v4582_v21, -inf }
 0x688   : > { %2451 = vmax.xlane.f32.xlu0 %v2450_v22  ;;  %v2447_v32 = vsel %vm2434_vm2, %v7124_v45, -inf }
 0x68e   : > { %v7127_v24 = vpop.f32.mrb[18].mxu1 }
 0x68f   : > { %v7129_v51 = vpop.f32.mrb[19].mxu1  ;;  %v2456_v43 = vsel %vm2434_vm2, %v7127_v24, -inf }
 0x690   : > { %v2453_v39 = vsel %vm2434_vm2, %v7129_v51, -inf }
 0x692   : > { %v7131_v25 = vpop.f32.mrb[20].mxu1 }
 0x693   : > { %v7133_v26 = vpop.f32.mrb[21].mxu1  ;;  %v2462_v46 = vsel %vm2434_vm2, %v7131_v25, -inf }
 0x694   : > { %v2459_v36 = vsel %vm2434_vm2, %v7133_v26, -inf }
 0x696   : > { %v4602_v27 = vpop.f32.mrb[4].mxu0 }
 0x697   : > { %v7135_v28 = vpop.f32.mrb[5].mxu0  ;;  %v2474_v49 = vsel %vm2434_vm2, %v4602_v27, -inf }
 0x698   : > { %2475 = vmax.xlane.f32.xlu0 %v2474_v49  ;;  %v2471_v29 = vsel %vm2434_vm2, %v7135_v28, -inf }
 0x699   : > { %2472 = vmax.xlane.f32.xlu1 %v2471_v29 }
 0x69a   : > { %v7140_v30 = vpop.f32.mrb[22].mxu1 }
 0x69b   : > { %v7142_v31 = vpop.f32.mrb[23].mxu1  ;;  %v2468_v52 = vsel %vm2434_vm2, %v7140_v30, -inf }
 0x69c   : > { %2448 = vmax.xlane.f32.xlu0 %v2447_v32  ;;  %v2465_v1 = vsel %vm2434_vm2, %v7142_v31, -inf }
 0x69d   : > { %2454 = vmax.xlane.f32.xlu1 %v2453_v39 }
 0x69e   : > { %v7148_v41 = vpop.f32.mrb[6].mxu0 }
 0x69f   : > { %v7150_v42 = vpop.f32.mrb[7].mxu0  ;;  %v2480_v48 = vsel %vm2434_vm2, %v7148_v41, -inf }
 0x6a0   : > { %2457 = vmax.xlane.f32.xlu0 %v2456_v43  ;;  %v2477_v44 = vsel %vm2434_vm2, %v7150_v42, -inf }
 0x6a1   : > { %2478 = vmax.xlane.f32.xlu1 %v2477_v44 }
 0x6a2   : > { %v2440_v53 = vpop.xlane.xlu0 %2439 }
 0x6a3   : > { %v2484_v54 = vsub.f32 %v4572_v15, %v2440_v53  ;;  %v2437_v4 = vpop.xlane.xlu1 %2436 }
 0x6a4   : > { %2463 = vmax.xlane.f32.xlu0 %v2462_v46  ;;  %v2483_v10 = vsub.f32 %v7114_v16, %v2437_v4 }
 0x6a5   : > { %v2501_v58 = vmul.f32 1.442695, %v2484_v54 }
 0x6a6   : > { %v2499_v13 = vmul.f32 1.442695, %v2483_v10 }
 0x6a7   : > { %5256 = vpow2.f32 %v2501_v58 }
 0x6a8   : > { %2481 = vmax.xlane.f32.xlu0 %v2480_v48 }
 0x6ab   : > { %v2446_v55 = vpop.xlane.xlu0 %2445 }
 0x6ac   : > { %2469 = vmax.xlane.f32.xlu0 %v2468_v52  ;;  %v2486_v59 = vsub.f32 %v4575_v47, %v2446_v55  ;;  %v2443_v5 = vpop.xlane.xlu1 %2442 }
 0x6ad   : > { %v2485_v15 = vsub.f32 %v7119_v18, %v2443_v5 }
 0x6ae   : > { %v2505_v61 = vmul.f32 1.442695, %v2486_v59 }
 0x6b0   : > { %5258 = vpow2.f32 %v2505_v61 }
 0x6b1   : > { %v7168_v60 = vpop.eup %5256 }
 0x6b2   : > { %5177 = vrot.lane.b32.xlu1 %v7072_v50, %s5941_s1  ;;  %v2534_v62 = vsel %vm2434_vm2, %v7168_v60, 0.0 }
 0x6ba   : > { %v7172_v63 = vpop.eup %5258 }
 0x6bb   : > { %v2540_v0 = vsel %vm2434_vm2, %v7172_v63, 0.0 }
 0x6c2   : > { %5182 = vrot.lane.b32.xlu0 %v7072_v50, %s5940_s5 }
 0x6d6   : > { %2460 = vmax.xlane.f32.xlu1 %v2459_v36 }
 0x6e1   : > { %2535 = vadd.xlane.f32.xlu0 %v2534_v62 }
 0x6e5   : > { %2541 = vadd.xlane.f32.xlu0 %v2540_v0 }
 0x6e7   : > { %5187 = vrot.lane.b32.xlu1 %v7072_v50, %s5942_s20 }
 0x70b   : > { %2466 = vmax.xlane.f32.xlu1 %v2465_v1 }
 0x715   : > { %v2452_v38 = vpop.xlane.xlu0 %2451 }
 0x716   : > { %v2488_v2 = vsub.f32 %v4582_v21, %v2452_v38  ;;  %v2503_v21 = vmul.f32 1.442695, %v2485_v15 }
 0x718   : > { %v2509_v3 = vmul.f32 1.442695, %v2488_v2 }
 0x71a   : > { %5260 = vpow2.f32 %v2509_v3 }
 0x71c   : > { %5192 = vrot.lane.b32.xlu1 %v7079_v56, %s5941_s1 }
 0x724   : > { %v7182_v6 = vpop.eup %5260 }
 0x725   : > { %v2476_v7 = vpop.xlane.xlu0 %2475  ;;  %v2546_v8 = vsel %vm2434_vm2, %v7182_v6, 0.0 }
 0x726   : > { %v2496_v50 = vsub.f32 %v4602_v27, %v2476_v7  ;;  %v2473_v35 = vpop.xlane.xlu1 %2472  ;;  %2547 = vadd.xlane.f32.xlu0 %v2546_v8 }
 0x727   : > { %v2495_v32 = vsub.f32 %v7135_v28, %v2473_v35 }
 0x728   : > { %v2525_v9 = vmul.f32 1.442695, %v2496_v50 }
 0x729   : > { %v2449_v11 = vpop.xlane.xlu0 %2448  ;;  %v2523_v48 = vmul.f32 1.442695, %v2495_v32 }
 0x72a   : > { %5262 = vpow2.f32 %v2525_v9  ;;  %v2455_v12 = vpop.xlane.xlu1 %2454  ;;  %v2487_v19 = vsub.f32 %v7124_v45, %v2449_v11 }
 0x72b   : > { %5264 = vpow2.f32 %v2499_v13  ;;  %v2489_v28 = vsub.f32 %v7129_v51, %v2455_v12 }
 0x72c   : > { %v2507_v18 = vmul.f32 1.442695, %v2487_v19 }
 0x72d   : > { %v2458_v14 = vpop.xlane.xlu0 %2457  ;;  %v2511_v59 = vmul.f32 1.442695, %v2489_v28 }
 0x72e   : > { %v2490_v17 = vsub.f32 %v7127_v24, %v2458_v14  ;;  %v2479_v37 = vpop.xlane.xlu1 %2478 }
 0x72f   : > { %v2497_v61 = vsub.f32 %v7150_v42, %v2479_v37 }
 0x730   : > { %v2513_v47 = vmul.f32 1.442695, %v2490_v17 }
 0x731   : > { %v2464_v20 = vpop.xlane.xlu0 %2463  ;;  %v2527_v1 = vmul.f32 1.442695, %v2497_v61 }
 0x732   : > { %5266 = vpow2.f32 %v2513_v47  ;;  %v5178_v22 = vpop.permute.xlu1 %5177  ;;  %v2492_v29 = vsub.f32 %v7131_v25, %v2464_v20 }
 0x733   : > { %v5180_v27 = vunpack.i.h.bf16 %v5178_v22  ;;  %v5179_v16 = vunpack.i.l.bf16 %v5178_v22  ;;  %5268 = vpow2.f32 %v2503_v21 }
 0x734   : > { %v7190_v49 = vpop.eup %5262  ;;  %v2517_v44 = vmul.f32 1.442695, %v2492_v29  ;;  %5270 = vpow2.f32 %v2507_v18 }
 0x735   : > { %v7194_v39 = vpack.c.bf16 %v5180_v27, %v5179_v16  ;;  %v2482_v24 = vpop.xlane.xlu0 %2481  ;;  %v2570_v43 = vsel %vm2434_vm2, %v7190_v49, 0.0  ;;  %v7202_v53 = vpop.eup %5264 }
 0x736   : > { %v2498_v45 = vsub.f32 %v7148_v41, %v2482_v24  ;;  %2571 = vadd.xlane.f32.xlu0 %v2570_v43  ;;  %v2531_v51 = vsel %vm2434_vm2, %v7202_v53, 0.0 }
 0x737   : > { %4857 = vmatprep.subr.bf16.mxu1 %v7194_v39 }
 0x738   : > { %v2529_v46 = vmul.f32 1.442695, %v2498_v45 }
 0x739   : > { %v2470_v25 = vpop.xlane.xlu0 %2469 }
 0x73a   : > { %5272 = vpow2.f32 %v2529_v46  ;;  %v2494_v52 = vsub.f32 %v7140_v30, %v2470_v25 }
 0x73b   : > { %5274 = vpow2.f32 %v2517_v44 }
 0x73c   : > { %v7204_v54 = vpop.eup %5266  ;;  %v2521_v55 = vmul.f32 1.442695, %v2494_v52  ;;  %5276 = vpow2.f32 %v2523_v48 }
 0x73d   : > { %v5183_v41 = vpop.permute.xlu0 %5182  ;;  %v2552_v58 = vsel %vm2434_vm2, %v7204_v54, 0.0  ;;  %v7211_v30 = vpop.eup %5268 }
 0x73e   : > { %v5185_v36 = vunpack.i.h.bf16 %v5183_v41  ;;  %v5184_v62 = vunpack.i.l.bf16 %v5183_v41  ;;  %2553 = vadd.xlane.f32.xlu0 %v2552_v58  ;;  %5278 = vpow2.f32 %v2521_v55  ;;  %v7213_v38 = vpop.eup %5270  ;;  %v2537_v42 = vsel %vm2434_vm2, %v7211_v30, 0.0 }
 0x73f   : > { %5280 = vpow2.f32 %v2511_v59  ;;  %v2543_v7 = vsel %vm2434_vm2, %v7213_v38, 0.0 }
 0x740   : > { %v4860_v0 = vpack.c.bf16 %v5185_v36, %v5184_v62  ;;  %2532 = vadd.xlane.f32.xlu1 %v2531_v51  ;;  %5282 = vpow2.f32 %v2527_v1 }
 0x742   : > { %4861 = vmatprep.subr.bf16.mxu0 %v4860_v0 }
 0x743   : > { %4863 = vmatpush3.bf16.msra.mxu0 %v4860_v0 }
 0x744   : > { %v7217_v2 = vpop.eup %5272  ;;  %4869 = vmatprep.subr.bf16.mxu0 %v7081_v57  ;;  %2538 = vadd.xlane.f32.xlu1 %v2537_v42 }
 0x745   : > { %v2576_v3 = vsel %vm2434_vm2, %v7217_v2, 0.0  ;;  %v7222_v4 = vpop.eup %5274 }
 0x746   : > { %2577 = vadd.xlane.f32.xlu0 %v2576_v3  ;;  %v7224_v5 = vpop.eup %5276  ;;  %v2558_v8 = vsel %vm2434_vm2, %v7222_v4, 0.0 }
 0x747   : > { %v2567_v35 = vsel %vm2434_vm2, %v7224_v5, 0.0 }
 0x748   : > { %2544 = vadd.xlane.f32.xlu1 %v2543_v7  ;;  %v7230_v50 = vpop.eup %5278 }
 0x749   : > { %v7234_v9 = vpop.eup %5280  ;;  %v2564_v10 = vsel %vm2434_vm2, %v7230_v50, 0.0 }
 0x74a   : > { %2559 = vadd.xlane.f32.xlu0 %v2558_v8  ;;  %v2549_v11 = vsel %vm2434_vm2, %v7234_v9, 0.0  ;;  %v7240_v12 = vpop.eup %5282 }
 0x74b   : > { %v2573_v13 = vsel %vm2434_vm2, %v7240_v12, 0.0 }
 0x74c   : > { %2568 = vadd.xlane.f32.xlu1 %v2567_v35 }
 0x74e   : > { %2565 = vadd.xlane.f32.xlu0 %v2564_v10 }
 0x750   : > { %2550 = vadd.xlane.f32.xlu1 %v2549_v11 }
 0x754   : > { %2574 = vadd.xlane.f32.xlu1 %v2573_v13 }
 0x763   : > { %v2461_v14 = vpop.xlane.xlu1 %2460 }
 0x764   : > { %v2491_v15 = vsub.f32 %v7133_v26, %v2461_v14  ;;  %5202 = vrot.lane.b32.xlu0 %v7079_v56, %s5942_s20 }
 0x766   : > { %v2515_v17 = vmul.f32 1.442695, %v2491_v15 }
 0x767   : > { %v5188_v19 = vpop.permute.xlu1 %5187 }
 0x768   : > { %5284 = vpow2.f32 %v2515_v17  ;;  %v5189_v52 = vunpack.i.l.bf16 %v5188_v19 }
 0x76e   : > { %v2536_v16 = vpop.xlane.xlu0 %2535 }
 0x772   : > { %v7247_v37 = vpop.eup %5284  ;;  %v7258_v29 = vpop.xlane.xlu0 %2541 }
 0x773   : > { %v2555_v47 = vsel %vm2434_vm2, %v7247_v37, 0.0 }
 0x774   : > { %2556 = vadd.xlane.f32.xlu1 %v2555_v47 }
 0x798   : > { %v2467_v20 = vpop.xlane.xlu1 %2466 }
 0x799   : > { %v2493_v21 = vsub.f32 %v7142_v31, %v2467_v20 }
 0x79b   : > { %v2519_v22 = vmul.f32 1.442695, %v2493_v21 }
 0x79c   : > { %v5193_v18 = vpop.permute.xlu1 %5192 }
 0x79d   : > { %5286 = vpow2.f32 %v2519_v22  ;;  %v5195_v0 = vunpack.i.h.bf16 %v5193_v18 }
 0x79e   : > { %5288 = vrcp.f32 %v2536_v16 }
 0x7a7   : > { %v7252_v27 = vpop.eup %5286 }
 0x7a8   : > { %v2561_v26 = vsel %vm2434_vm2, %v7252_v27, 0.0  ;;  %v5289_v48 = vpop.eup %5288 }
 0x7a9   : > { %2562 = vadd.xlane.f32.xlu1 %v2561_v26  ;;  %v2596_v58 = vmul.f32 %v5289_v48, %v7168_v60 }
 0x7b3   : > { %v2548_v32 = vpop.xlane.xlu0 %2547 }
 0x7ba   : > { %5197 = vrot.lane.b32.xlu1 %v7079_v56, %s5940_s5  ;;  %v5190_v56 = vunpack.i.h.bf16 %v5188_v19 }
 0x7bc   : > { %v4864_v61 = vpack.c.bf16 %v5190_v56, %v5189_v52  ;;  %v3325_v56 = vld [vmem:[%s6747_s28 + $0x20] sm:$0xff] }
 0x7c3   : > { %v2572_v24 = vpop.xlane.xlu0 %2571 }
 0x7cb   : > { %v2554_v31 = vpop.xlane.xlu0 %2553 }
 0x7cd   : > { %v2533_v43 = vpop.xlane.xlu1 %2532 }
 0x7ce   : > { %5290 = vrcp.f32 %v2533_v43 }
 0x7cf   : > { %5292 = vrcp.f32 %v2548_v32 }
 0x7d1   : > { %v7260_v45 = vpop.xlane.xlu1 %2538 }
 0x7d3   : > { %v2578_v44 = vpop.xlane.xlu0 %2577 }
 0x7d5   : > { %v2545_v46 = vpop.xlane.xlu1 %2544 }
 0x7d6   : > { %5294 = vrcp.f32 %v2545_v46  ;;  %v3323_v46 = vld [vmem:[%s6747_s28 + $0x10] sm:$0xff] }
 0x7d7   : > { %v2560_v25 = vpop.xlane.xlu0 %2559  ;;  %5296 = vrcp.f32 %v2572_v24 }
 0x7d8   : > { %v5291_v28 = vpop.eup %5290 }
 0x7d9   : > { %v2569_v55 = vpop.xlane.xlu1 %2568  ;;  %v2595_v41 = vmul.f32 %v5291_v28, %v7202_v53  ;;  %v5293_v62 = vpop.eup %5292  ;;  %v5194_v53 = vunpack.i.l.bf16 %v5193_v18 }
 0x7da   : > { %5298 = vrcp.f32 %v2569_v55  ;;  %v2600_v3 = vmul.f32 %v5293_v62, %v7182_v6 }
 0x7db   : > { %v7264_v59 = vpop.xlane.xlu0 %2565  ;;  %4610 = vmatprep.mubr.msk.f32.mxu1 %vm2434_vm2, %v2595_v41  ;;  %5300 = vrcp.f32 %v2554_v31  ;;  %v3327_v41 = vld [vmem:[%s6747_s28 + $0x30] sm:$0xff] }
 0x7dc   : > { %4611 = vmatmul.mubr.msk.f32.vlgmr.msra.gmra.mrb[24].mxu1 %vm2434_vm2, %v2596_v58  ;;  %v3328_v58 = vld [vmem:[%s6747_s28 + $0x38] sm:$0xff] }
 0x7dd   : > { %4859 = vmatpush3.bf16.msra.mxu1 %v7194_v39  ;;  %v2551_v36 = vpop.xlane.xlu1 %2550  ;;  %v4872_v39 = vpack.c.bf16 %v5195_v0, %v5194_v53  ;;  %v3330_v0 = vld [vmem:[%s6747_s28 + $0x48] sm:$0xff] }
 0x7de   : > { %4865 = vmatprep.subr.bf16.mxu1 %v4864_v61  ;;  %5302 = vrcp.f32 %v2551_v36  ;;  %v4896_v36 = vpack.c.bf16 %v3328_v58, %v3327_v41 }
 0x7df   : > { %5304 = vrcp.f32 %v2578_v44  ;;  %v5203_v60 = vpop.permute.xlu0 %5202  ;;  %v3322_v44 = vld [vmem:[%s6747_s28 + $0x8] sm:$0xff] }
 0x7e0   : > { %v5295_v51 = vpop.eup %5294  ;;  %v5205_v35 = vunpack.i.h.bf16 %v5203_v60  ;;  %v5204_v10 = vunpack.i.l.bf16 %v5203_v60 }
 0x7e1   : > { %v2575_v1 = vpop.xlane.xlu1 %2574  ;;  %v2599_v42 = vmul.f32 %v5295_v51, %v7213_v38  ;;  %v5297_v7 = vpop.eup %5296  ;;  %v3329_v51 = vld [vmem:[%s6747_s28 + $0x40] sm:$0xff] }
 0x7e2   : > { %5306 = vrcp.f32 %v2575_v1  ;;  %v2608_v13 = vmul.f32 %v5297_v7, %v7190_v49  ;;  %v4880_v38 = vpack.c.bf16 %v5205_v35, %v5204_v10  ;;  %v4900_v1 = vpack.c.bf16 %v3330_v0, %v3329_v51  ;;  %v3332_v7 = vld [vmem:[%s6747_s28 + $0x58] sm:$0xff] }
 0x7e3   : > { %4617 = vmatprep.mubr.msk.f32.mxu1 %vm2434_vm2, %v2599_v42  ;;  %5308 = vrcp.f32 %v7260_v45  ;;  %v3321_v45 = vld [vmem:[%s6747_s28] sm:$0xff] }
 0x7e4   : > { %v5299_v8 = vpop.eup %5298  ;;  %4618 = vmatmul.mubr.msk.f32.vlgmr.msra.gmra.mrb[26].mxu1 %vm2434_vm2, %v2600_v3  ;;  %5310 = vrcp.f32 %v2560_v25  ;;  %v4884_v48 = vpack.c.bf16 %v3322_v44, %v3321_v45  ;;  %v3324_v25 = vld [vmem:[%s6747_s28 + $0x18] sm:$0xff]  ;;  %v3331_v3 = vld [vmem:[%s6747_s28 + $0x50] sm:$0xff] }
 0x7e5   : > { %4867 = vmatpush3.bf16.msra.mxu1 %v4864_v61  ;;  %v2607_v11 = vmul.f32 %v5299_v8, %v7224_v5  ;;  %v5301_v14 = vpop.eup %5300  ;;  %v4888_v28 = vpack.c.bf16 %v3324_v25, %v3323_v46  ;;  %v4904_v35 = vpack.c.bf16 %v3332_v7, %v3331_v3 }
 0x7e6   : > { %4873 = vmatprep.subr.bf16.mxu1 %v4872_v39  ;;  %v2602_v17 = vmul.f32 %v5301_v14, %v7204_v54 }
 0x7e7   : > { %4631 = vmatprep.mubr.msk.f32.mxu1 %vm2434_vm2, %v2607_v11  ;;  %v3333_v11 = vld [vmem:[%s6747_s28 + $0x60] sm:$0xff] }
 0x7e8   : > { %v5303_v6 = vpop.eup %5302  ;;  %4632 = vmatmul.mubr.msk.f32.vlgmr.msra.gmra.mrb[28].mxu1 %vm2434_vm2, %v2608_v13  ;;  %v3334_v13 = vld [vmem:[%s6747_s28 + $0x68] sm:$0xff] }
 0x7e9   : > { %4875 = vmatpush3.bf16.msra.mxu1 %v4872_v39  ;;  %v2601_v15 = vmul.f32 %v5303_v6, %v7234_v9  ;;  %v5305_v47 = vpop.eup %5304  ;;  %v4908_v6 = vpack.c.bf16 %v3334_v13, %v3333_v11  ;;  %v5347_v11 = vld [vmem:[%s6814_s6 + $0x8] sm:$0xff] }
 0x7ea   : > { %4881 = vmatprep.subr.bf16.mxu1 %v4880_v38  ;;  %v2610_v19 = vmul.f32 %v5305_v47, %v7217_v2 }
 0x7eb   : > { %4645 = vmatprep.mubr.msk.f32.mxu1 %vm2434_vm2, %v2601_v15  ;;  %v3336_v15 = vld [vmem:[%s6747_s28 + $0x78] sm:$0xff] }
 0x7ec   : > { %v5307_v5 = vpop.eup %5306  ;;  %4646 = vmatmul.mubr.msk.f32.vlgmr.msra.gmra.mrb[30].mxu1 %vm2434_vm2, %v2602_v17 }
 0x7ed   : > { %4883 = vmatpush3.bf16.msra.mxu1 %v4880_v38  ;;  %v2609_v49 = vmul.f32 %v5307_v5, %v7240_v12  ;;  %v5309_v9 = vpop.eup %5308  ;;  %v3335_v38 = vld [vmem:[%s6747_s28 + $0x70] sm:$0xff] }
 0x7ee   : > { %v5311_v20 = vpop.eup %5310  ;;  %v2597_v26 = vmul.f32 %v5309_v9, %v7211_v30  ;;  %v4912_v17 = vpack.c.bf16 %v3336_v15, %v3335_v38  ;;  %v3499_v38 = vld [vmem:[%s7807_s18] sm:$0xff] }
 0x7ef   : > { %4659 = vmatprep.mubr.msk.f32.mxu1 %vm2434_vm2, %v2609_v49  ;;  %v2604_v2 = vmul.f32 %v5311_v20, %v7222_v4 }
 0x7f0   : > { %4660 = vmatmul.mubr.msk.f32.vlgmr.msra.gmra.mrb[32].mxu1 %vm2434_vm2, %v2610_v19 }
 0x7f1   : > { %3607 = vmatprep.mubr.f32.mxu1 %v5939_v23 }
 0x801   : > { %v2557_v54 = vpop.xlane.xlu1 %2556 }
 0x802   : > { %5312 = vrcp.f32 %v2557_v54 }
 0x803   : > { %5314 = vrcp.f32 %v7258_v29 }
 0x804   : > { %5316 = vrcp.f32 %v7264_v59 }
 0x80c   : > { %v5313_v21 = vpop.eup %5312 }
 0x80d   : > { %v2603_v12 = vmul.f32 %v5313_v21, %v7247_v37  ;;  %v5315_v22 = vpop.eup %5314 }
 0x80e   : > { %v2598_v16 = vmul.f32 %v5315_v22, %v7172_v63 }
 0x80f   : > { %4624 = vmatprep.mubr.msk.f32.mxu0 %vm2434_vm2, %v2603_v12 }
 0x810   : > { %4625 = vmatmul.mubr.msk.f32.vlgmr.msra.gmra.mrb[8].mxu0 %vm2434_vm2, %v2604_v2 }
 0x811   : > { %4871 = vmatpush3.bf16.msra.mxu0 %v7081_v57  ;;  %4638 = vmatprep.mubr.msk.f32.mxu0 %vm2434_vm2, %v2597_v26  ;;  %v5317_v57 = vpop.eup %5316 }
 0x812   : > { %v2606_v24 = vmul.f32 %v5317_v57, %v7230_v50 }
 0x814   : > { %4639 = vmatmul.mubr.msk.f32.vlgmr.msra.gmra.mrb[10].mxu0 %vm2434_vm2, %v2598_v16 }
 0x836   : > { %v2563_v37 = vpop.xlane.xlu1 %2562 }
 0x837   : > { %5318 = vrcp.f32 %v2563_v37 }
 0x83a   : > { %v5198_v4 = vpop.permute.xlu1 %5197 }
 0x83b   : > { %v5200_v29 = vunpack.i.h.bf16 %v5198_v4  ;;  %v5199_v30 = vunpack.i.l.bf16 %v5198_v4 }
 0x83d   : > { %v4876_v32 = vpack.c.bf16 %v5200_v29, %v5199_v30 }
 0x83f   : > { %4877 = vmatprep.subr.bf16.mxu0 %v4876_v32 }
 0x840   : > { %4879 = vmatpush3.bf16.msra.mxu0 %v4876_v32 }
 0x841   : > { %v5319_v63 = vpop.eup %5318  ;;  %4885 = vmatprep.subr.bf16.mxu0 %v4884_v48 }
 0x842   : > { %v2605_v18 = vmul.f32 %v5319_v63, %v7252_v27  ;;  %v3326_v27 = vld [vmem:[%s6747_s28 + $0x28] sm:$0xff]  ;;  %s7806_s28 = scalar_lea.vmem [#allocation17], %s6708_s7 }
 0x843   : > { %v4892_v52 = vpack.c.bf16 %v3326_v27, %v3325_v56 }
 0x844   : > { %4652 = vmatprep.mubr.msk.f32.mxu0 %vm2434_vm2, %v2605_v18 }
 0x845   : > { %4653 = vmatmul.mubr.msk.f32.vlgmr.msra.gmra.mrb[12].mxu0 %vm2434_vm2, %v2606_v24 }
 0x846   : > { %4887 = vmatpush3.bf16.msra.mxu0 %v4884_v48 }
 0x847   : > { %4889 = vmatprep.subr.bf16.mxu0 %v4888_v28 }
 0x84a   : > { %4891 = vmatpush3.bf16.msra.mxu0 %v4888_v28 }
 0x84b   : > { %4893 = vmatprep.subr.bf16.mxu0 %v4892_v52 }
 0x84e   : > { %4895 = vmatpush3.bf16.msra.mxu0 %v4892_v52 }
 0x84f   : > { %4897 = vmatprep.subr.bf16.mxu0 %v4896_v36 }
 0x852   : > { %4899 = vmatpush3.bf16.msra.mxu0 %v4896_v36 }
 0x853   : > { %4901 = vmatprep.subr.bf16.mxu0 %v4900_v1 }
 0x856   : > { %4903 = vmatpush3.bf16.msra.mxu0 %v4900_v1  ;;  %v5345_v1 = vld [vmem:[%s6811_s15] sm:$0xff] }
 0x857   : > { %4905 = vmatprep.subr.bf16.mxu0 %v4904_v35 }
 0x85a   : > { %4907 = vmatpush3.bf16.msra.mxu0 %v4904_v35  ;;  %v5346_v35 = vld [vmem:[%s6814_s6] sm:$0xff] }
 0x85b   : > { %4909 = vmatprep.subr.bf16.mxu0 %v4908_v6 }
 0x85e   : > { %4911 = vmatpush3.bf16.msra.mxu0 %v4908_v6  ;;  %v3502_v6 = vld [vmem:[%s7807_s18 + $0x18] sm:$0xff] }
 0x85f   : > { %4913 = vmatprep.subr.bf16.mxu0 %v4912_v17 }
 0x862   : > { %4915 = vmatpush3.bf16.msra.mxu0 %v4912_v17  ;;  %v3501_v17 = vld [vmem:[%s7807_s18 + $0x10] sm:$0xff] }
 0x8af   : > { %v7302_v43 = vpop.f32.mrb[24].mxu1 }
 0x8b0   : > { %v7304_v31 = vpop.f32.mrb[25].mxu1 }
 0x8b7   : > { %v4619_v50 = vpop.f32.mrb[26].mxu1 }
 0x8b8   : > { %v2764_v55 = vpop.f32.mrb[27].mxu1 }
 0x8b9   : > { %v5206_v59 = vpack.i.bf16 %v4619_v50, %v2764_v55 }
 0x8bb   : > { %5207 = vrot.lane.b32.xlu1 %v5206_v59, %s5942_s20  ;;  %v4633_v61 = vpop.f32.mrb[28].mxu1 }
 0x8bc   : > { %v2926_v62 = vpop.f32.mrb[29].mxu1 }
 0x8bd   : > { %v5216_v53 = vpack.i.bf16 %v4633_v61, %v2926_v62  ;;  %v4385_v61 = vld [vmem:[%s7806_s28] ss:$0 sm:$0xff] }
 0x8bf   : > { %5217 = vrot.lane.b32.xlu1 %v5216_v53, %s5941_s1  ;;  %v4647_v60 = vpop.f32.mrb[30].mxu1  ;;  %v5344_v53 = vld [vmem:[%s6811_s15 + $0x8] sm:$0xff] }
 0x8c0   : > { %v3088_v42 = vpop.f32.mrb[31].mxu1 }
 0x8c1   : > { %v5221_v8 = vpack.i.bf16 %v4647_v60, %v3088_v42 }
 0x8c3   : > { %v4661_v39 = vpop.f32.mrb[32].mxu1 }
 0x8c4   : > { %v3250_v10 = vpop.f32.mrb[33].mxu1 }
 0x8c5   : > { %v5231_v14 = vpack.i.bf16 %v4661_v39, %v3250_v10 }
 0x8e3   : > { %v4626_v47 = vpop.f32.mrb[8].mxu0 }
 0x8e4   : > { %v2845_v5 = vpop.f32.mrb[9].mxu0 }
 0x8e5   : > { %v5211_v49 = vpack.i.bf16 %v4626_v47, %v2845_v5  ;;  %v3504_v47 = vld [vmem:[%s7807_s18 + $0x28] sm:$0xff]  ;;  %v3506_v5 = vld [vmem:[%s7807_s18 + $0x38] sm:$0xff] }
 0x8e7   : > { %5212 = vrot.lane.b32.xlu0 %v5211_v49, %s5940_s5  ;;  %v4640_v19 = vpop.f32.mrb[10].mxu0  ;;  %v4918_v49 = vpack.c.bf16 %v3501_v17, %v3499_v38 }
 0x8e8   : > { %v3007_v54 = vpop.f32.mrb[11].mxu0 }
 0x8eb   : > { %5222 = vrot.lane.b32.xlu0 %v5221_v8, %s5942_s20 }
 0x8ef   : > { %5232 = vrot.lane.b32.xlu0 %v5231_v14, %s5941_s1  ;;  %v3500_v14 = vld [vmem:[%s7807_s18 + $0x8] sm:$0xff] }
 0x8f0   : > { %v4916_v15 = vpack.c.bf16 %v3502_v6, %v3500_v14 }
 0x8f2   : > { %4917 = vmatprep.subr.bf16.mxu1 %v4916_v15 }
 0x8f3   : > { %4919 = vmatpush1.bf16.msra.mxu1 %v4918_v49 }
 0x918   : > { %v4654_v9 = vpop.f32.mrb[12].mxu0 }
 0x919   : > { %v3169_v20 = vpop.f32.mrb[13].mxu0 }
 0x91a   : > { %v5226_v21 = vpack.i.bf16 %v4654_v9, %v3169_v20  ;;  %v3505_v9 = vld [vmem:[%s7807_s18 + $0x30] sm:$0xff]  ;;  %v3508_v20 = vld [vmem:[%s7807_s18 + $0x48] sm:$0xff] }
 0x91c   : > { %5227 = vrot.lane.b32.xlu1 %v5226_v21, %s5940_s5  ;;  %v3510_v21 = vld [vmem:[%s7807_s18 + $0x58] sm:$0xff] }
 0x92d   : > { %v5208_v12 = vpop.permute.xlu1 %5207 }
 0x92e   : > { %v5210_v2 = vunpack.i.h.bf16 %v5208_v12  ;;  %v5209_v22 = vunpack.i.l.bf16 %v5208_v12 }
 0x930   : > { %v3308_v29 = vsel %vm2045_vm0, %v7302_v43, %v5210_v2  ;;  %v3307_v57 = vsel %vm2045_vm0, %v7304_v31, %v5209_v22  ;;  %v4924_v2 = vpack.c.bf16 %v3510_v21, %v3508_v20  ;;  %v3507_v22 = vld [vmem:[%s7807_s18 + $0x40] sm:$0xff]  ;;  %v3673_v21 = vld [vmem:[%s6808_s14 + $0x8] sm:$0xff] }
 0x931   : > { %v5218_v26 = vpop.permute.xlu1 %5217 }
 0x932   : > { %v5220_v30 = vunpack.i.h.bf16 %v5218_v26  ;;  %v5219_v32 = vunpack.i.l.bf16 %v5218_v26  ;;  %v3509_v26 = vld [vmem:[%s7807_s18 + $0x50] sm:$0xff] }
 0x959   : > { %v5213_v16 = vpop.permute.xlu0 %5212 }
 0x95a   : > { %v5215_v37 = vunpack.i.h.bf16 %v5213_v16  ;;  %v5214_v4 = vunpack.i.l.bf16 %v5213_v16  ;;  %v4926_v16 = vpack.c.bf16 %v3509_v26, %v3507_v22 }
 0x95c   : > { %v3312_v63 = vsel %vm3311_vm3, %v3307_v57, %v5214_v4  ;;  %v3313_v18 = vsel %vm3311_vm3, %v3308_v29, %v5215_v37 }
 0x95d   : > { %v3317_v24 = vsel %vm3316_vm4, %v3312_v63, %v5219_v32  ;;  %v3318_v45 = vsel %vm3316_vm4, %v3313_v18, %v5220_v30  ;;  %v5223_v44 = vpop.permute.xlu0 %5222 }
 0x95e   : > { %4694 = vmatprep.mubr.f32.mxu0 %v3317_v24  ;;  %v5225_v46 = vunpack.i.h.bf16 %v5223_v44  ;;  %v5224_v48 = vunpack.i.l.bf16 %v5223_v44  ;;  %v3512_v24 = vld [vmem:[%s7807_s18 + $0x68] sm:$0xff] }
 0x95f   : > { %4695 = vmatmul.mubr.f32.vlgmr.msra.gmra.mrb[14].mxu0 %v3318_v45  ;;  %v3514_v45 = vld [vmem:[%s7807_s18 + $0x78] sm:$0xff] }
 0x960   : > { %v3309_v50 = vsel %vm2045_vm0, %v3007_v54, %v5224_v48  ;;  %v3310_v52 = vsel %vm2045_vm0, %v4640_v19, %v5225_v46  ;;  %v4920_v19 = vpack.c.bf16 %v3506_v5, %v3504_v47  ;;  %v3503_v54 = vld [vmem:[%s7807_s18 + $0x20] sm:$0xff]  ;;  %v4928_v44 = vpack.c.bf16 %v3514_v45, %v3512_v24  ;;  %v3513_v48 = vld [vmem:[%s7807_s18 + $0x70] sm:$0xff] }
 0x961   : > { %v5233_v43 = vpop.permute.xlu0 %5232  ;;  %v4922_v12 = vpack.c.bf16 %v3505_v9, %v3503_v54  ;;  %v3511_v46 = vld [vmem:[%s7807_s18 + $0x60] sm:$0xff]  ;;  %v3689_v54 = vld [vmem:[%s6808_s14 + $0x88] sm:$0xff]  ;;  %v3672_v9 = vld [vmem:[%s6808_s14] sm:$0xff] }
 0x962   : > { %v5235_v31 = vunpack.i.h.bf16 %v5233_v43  ;;  %v5234_v27 = vunpack.i.l.bf16 %v5233_v43  ;;  %4921 = vmatprep.subr.bf16.mxu1 %v4920_v19  ;;  %v4930_v43 = vpack.c.bf16 %v3513_v48, %v3511_v46  ;;  %v3688_v19 = vld [vmem:[%s6808_s14 + $0x80] sm:$0xff]  ;;  %v4950_v22 = vpack.c.bf16 %v3673_v21, %v3672_v9  ;;  %v3677_v24 = vld [vmem:[%s6808_s14 + $0x28] sm:$0xff]  ;;  %v3699_v21 = vld [vmem:[%s6808_s14 + $0xd8] sm:$0xff] }
 0x963   : > { %4923 = vmatpush1.bf16.msra.mxu1 %v4922_v12  ;;  %v4948_v20 = vpack.c.bf16 %v3689_v54, %v3688_v19  ;;  %v3690_v12 = vld [vmem:[%s6808_s14 + $0x90] sm:$0xff]  ;;  %v3681_v54 = vld [vmem:[%s6808_s14 + $0x48] sm:$0xff] }
 0x964   : > { %4925 = vmatprep.subr.bf16.mxu1 %v4924_v2  ;;  %v3691_v2 = vld [vmem:[%s6808_s14 + $0x98] sm:$0xff] }
 0x965   : > { %v4952_v26 = vpack.c.bf16 %v3691_v2, %v3690_v12  ;;  %4949 = vmatprep.subr.bf16.mxu0 %v4948_v20  ;;  %v3698_v20 = vld [vmem:[%s6808_s14 + $0xd0] sm:$0xff] }
 0x966   : > { %4951 = vmatpush3.bf16.msra.mxu0 %v4950_v22  ;;  %v4968_v12 = vpack.c.bf16 %v3699_v21, %v3698_v20  ;;  %v3682_v2 = vld [vmem:[%s6808_s14 + $0x50] sm:$0xff]  ;;  %v3683_v22 = vld [vmem:[%s6808_s14 + $0x58] sm:$0xff] }
 0x967   : > { %4927 = vmatpush1.bf16.msra.mxu1 %v4926_v16  ;;  %v3674_v16 = vld [vmem:[%s6808_s14 + $0x10] sm:$0xff]  ;;  %4953 = vmatprep.subr.bf16.mxu0 %v4952_v26  ;;  %v4970_v26 = vpack.c.bf16 %v3683_v22, %v3682_v2 }
 0x968   : > { %4929 = vmatprep.subr.bf16.mxu1 %v4928_v44 }
 0x96b   : > { %4931 = vmatpush1.bf16.msra.mxu1 %v4930_v43 }
 0x98e   : > { %v5228_v25 = vpop.permute.xlu1 %5227 }
 0x98f   : > { %v5230_v28 = vunpack.i.h.bf16 %v5228_v25  ;;  %v5229_v56 = vunpack.i.l.bf16 %v5228_v25  ;;  %v3516_v25 = vld [vmem:[%s7807_s18 + $0x88] sm:$0xff] }
 0x991   : > { %v3314_v55 = vsel %vm3311_vm3, %v3309_v50, %v5229_v56  ;;  %v3315_v41 = vsel %vm3311_vm3, %v3310_v52, %v5230_v28  ;;  %v3518_v28 = vld [vmem:[%s7807_s18 + $0x98] sm:$0xff]  ;;  %v3520_v50 = vld [vmem:[%s7807_s18 + $0xa8] sm:$0xff] }
 0x992   : > { %v3319_v58 = vsel %vm3316_vm4, %v3314_v55, %v5234_v27  ;;  %v3320_v59 = vsel %vm3316_vm4, %v3315_v41, %v5235_v31  ;;  %v4932_v56 = vpack.c.bf16 %v3518_v28, %v3516_v25  ;;  %v3515_v31 = vld [vmem:[%s7807_s18 + $0x80] sm:$0xff]  ;;  %v3517_v27 = vld [vmem:[%s7807_s18 + $0x90] sm:$0xff]  ;;  %v3522_v55 = vld [vmem:[%s7807_s18 + $0xb8] sm:$0xff] }
 0x993   : > { %4697 = vmatprep.mubr.f32.mxu0 %v3319_v58  ;;  %v4934_v52 = vpack.c.bf16 %v3517_v27, %v3515_v31  ;;  %v3519_v41 = vld [vmem:[%s7807_s18 + $0xa0] sm:$0xff]  ;;  %v3521_v58 = vld [vmem:[%s7807_s18 + $0xb0] sm:$0xff] }
 0x994   : > { %4698 = vmatmul.mubr.f32.gmra.mrb[16].mxu0 %v3320_v59  ;;  %4933 = vmatprep.subr.bf16.mxu1 %v4932_v56  ;;  %v4936_v59 = vpack.c.bf16 %v3522_v55, %v3520_v50  ;;  %v4386_v27 = vld [vmem:[%s1314_s23] ss:$0 sm:$0xff] }
 0x995   : > { %4935 = vmatpush1.bf16.msra.mxu1 %v4934_v52  ;;  %v4387_v55 = vld [vmem:[%s7809_s21] ss:$0 sm:$0xff] }
 0x996   : > { %4937 = vmatprep.subr.bf16.mxu1 %v4936_v59 }
 0xa32   : > { %v4696_v36 = vpop.f32.mrb[14].mxu0 }
 0xa33   : > { %v3416_v62 = vadd.f32 %v4696_v36, %v4385_v61  ;;  %v3410_v51 = vpop.f32.mrb[15].mxu0  ;;  %v3526_v36 = vld [vmem:[%s7807_s18 + $0xd8] sm:$0xff] }
 0xa34   : > { %v3411_v0 = vadd.f32 %v4385_v61, %v3410_v51 }
 0xa35   : > { %v7345_v60 = vadd.f32 %v5344_v53, %v3416_v62  ;;  %v4938_v62 = vpack.c.bf16 %v3521_v58, %v3519_v41  ;;  %v3525_v53 = vld [vmem:[%s7807_s18 + $0xd0] sm:$0xff] }
 0xa36   : > { %v7348_v42 = vadd.f32 %v5345_v1, %v3411_v0  ;;  %v3523_v0 = vld [vmem:[%s7807_s18 + $0xc0] sm:$0xff]  ;;  %v3528_v1 = vld [vmem:[%s7807_s18 + $0xe8] sm:$0xff] }
 0xa37   : > { %3437 = vadd.xlane.f32.xlu0 %v7345_v60  ;;  %4939 = vmatpush1.bf16.msra.mxu1 %v4938_v62 }
 0xa38   : > { %3435 = vadd.xlane.f32.xlu1 %v7348_v42 }
 0xa67   : > { %v4699_v3 = vpop.f32.mrb[16].mxu0 }
 0xa68   : > { %v3420_v7 = vpop.f32.mrb[17].mxu0  ;;  %v3426_v39 = vadd.f32 %v4699_v3, %v4385_v61  ;;  %v3530_v3 = vld [vmem:[%s7807_s18 + $0xf8] sm:$0xff] }
 0xa69   : > { %v3421_v8 = vadd.f32 %v4385_v61, %v3420_v7  ;;  %v3524_v61 = vld [vmem:[%s7807_s18 + $0xc8] sm:$0xff]  ;;  %v4942_v7 = vpack.c.bf16 %v3525_v53, %v3523_v0 }
 0xa6a   : > { %v7357_v13 = vadd.f32 %v5347_v11, %v3426_v39  ;;  %v4940_v51 = vpack.c.bf16 %v3526_v36, %v3524_v61  ;;  %v3527_v39 = vld [vmem:[%s7807_s18 + $0xe0] sm:$0xff] }
 0xa6b   : > { %v7353_v10 = vadd.f32 %v5346_v35, %v3421_v8  ;;  %v4944_v8 = vpack.c.bf16 %v3530_v3, %v3528_v1  ;;  %v3529_v35 = vld [vmem:[%s7807_s18 + $0xf0] sm:$0xff] }
 0xa6c   : > { %4941 = vmatprep.subr.bf16.mxu1 %v4940_v51  ;;  %v4946_v11 = vpack.c.bf16 %v3529_v35, %v3527_v39 }
 0xa6d   : > { %3439 = vadd.xlane.f32.xlu0 %v7353_v10  ;;  %4943 = vmatpush1.bf16.msra.mxu1 %v4942_v7 }
 0xa6e   : > { %4945 = vmatprep.subr.bf16.mxu1 %v4944_v8 }
 0xa71   : > { %3441 = vadd.xlane.f32.xlu0 %v7357_v13  ;;  %4947 = vmatpush1.bf16.msra.mxu1 %v4946_v11 }
 0xac4   : > { %v3438_v37 = vpop.xlane.xlu0 %3437 }
 0xac5   : > { %v3444_v4 = vmul.f32 0.0078125, %v3438_v37  ;;  %v3436_v29 = vpop.xlane.xlu1 %3435  ;;  %v3675_v37 = vld [vmem:[%s6808_s14 + $0x18] sm:$0xff] }
 0xac6   : > { %v3443_v30 = vmul.f32 0.0078125, %v3436_v29  ;;  %v3693_v29 = vld [vmem:[%s6808_s14 + $0xa8] sm:$0xff] }
 0xac7   : > { %v7373_v32 = vsub.f32 %v7345_v60, %v3444_v4  ;;  %v3692_v4 = vld [vmem:[%s6808_s14 + $0xa0] sm:$0xff] }
 0xac8   : > { %v7376_v57 = vsub.f32 %v7348_v42, %v3443_v30  ;;  %v4954_v30 = vpack.c.bf16 %v3675_v37, %v3674_v16  ;;  %v3700_v16 = vld [vmem:[%s6808_s14 + $0xe0] sm:$0xff]  ;;  %v3701_v37 = vld [vmem:[%s6808_s14 + $0xe8] sm:$0xff] }
 0xac9   : > { %v3452_v63 = vmul.f32 %v7373_v32, %v7373_v32 }
 0xaca   : > { %v3451_v18 = vmul.f32 %v7376_v57, %v7376_v57  ;;  %4955 = vmatpush3.bf16.msra.mxu0 %v4954_v30  ;;  %v3685_v30 = vld [vmem:[%s6808_s14 + $0x68] sm:$0xff] }
 0xacb   : > { %3457 = vadd.xlane.f32.xlu0 %v3452_v63  ;;  %v4956_v63 = vpack.c.bf16 %v3693_v29, %v3692_v4  ;;  %v4972_v4 = vpack.c.bf16 %v3701_v37, %v3700_v16  ;;  %v3684_v29 = vld [vmem:[%s6808_s14 + $0x60] sm:$0xff] }
 0xacc   : > { %3455 = vadd.xlane.f32.xlu1 %v3451_v18  ;;  %v3676_v18 = vld [vmem:[%s6808_s14 + $0x20] sm:$0xff] }
 0xacd   : > { %v4958_v45 = vpack.c.bf16 %v3677_v24, %v3676_v18  ;;  %4957 = vmatprep.subr.bf16.mxu0 %v4956_v63  ;;  %v4974_v63 = vpack.c.bf16 %v3685_v30, %v3684_v29  ;;  %v3702_v18 = vld [vmem:[%s6808_s14 + $0xf0] sm:$0xff]  ;;  %v3703_v24 = vld [vmem:[%s6808_s14 + $0xf8] sm:$0xff] }
 0xacf   : > { %4959 = vmatpush3.bf16.msra.mxu0 %v4958_v45  ;;  %v4976_v45 = vpack.c.bf16 %v3703_v24, %v3702_v18 }
 0xafa   : > { %v3440_v14 = vpop.xlane.xlu0 %3439 }
 0xafb   : > { %v3445_v6 = vmul.f32 0.0078125, %v3440_v14  ;;  %v3694_v14 = vld [vmem:[%s6808_s14 + $0xb0] sm:$0xff] }
 0xafd   : > { %v7403_v38 = vsub.f32 %v7353_v10, %v3445_v6  ;;  %v3695_v6 = vld [vmem:[%s6808_s14 + $0xb8] sm:$0xff] }
 0xafe   : > { %v3442_v15 = vpop.xlane.xlu0 %3441 }
 0xaff   : > { %v3446_v17 = vmul.f32 0.0078125, %v3442_v15  ;;  %v3453_v47 = vmul.f32 %v7403_v38, %v7403_v38  ;;  %v3678_v15 = vld [vmem:[%s6808_s14 + $0x30] sm:$0xff] }
 0xb01   : > { %v7408_v5 = vsub.f32 %v7357_v13, %v3446_v17  ;;  %3459 = vadd.xlane.f32.xlu1 %v3453_v47  ;;  %v3679_v17 = vld [vmem:[%s6808_s14 + $0x38] sm:$0xff] }
 0xb02   : > { %v4962_v47 = vpack.c.bf16 %v3679_v17, %v3678_v15 }
 0xb03   : > { %v3454_v49 = vmul.f32 %v7408_v5, %v7408_v5 }
 0xb05   : > { %3461 = vadd.xlane.f32.xlu0 %v3454_v49  ;;  %v3697_v49 = vld [vmem:[%s6808_s14 + $0xc8] sm:$0xff] }
 0xb58   : > { %v3458_v44 = vpop.xlane.xlu0 %3457 }
 0xb59   : > { %v3464_v46 = vmul.f32 0.0078125, %v3458_v44  ;;  %v3456_v48 = vpop.xlane.xlu1 %3455  ;;  %v3686_v44 = vld [vmem:[%s6808_s14 + $0x70] sm:$0xff] }
 0xb5a   : > { %v3463_v43 = vmul.f32 0.0078125, %v3456_v48 }
 0xb5b   : > { %v3468_v25 = vadd.f32 1e-05, %v3464_v46  ;;  %v3687_v46 = vld [vmem:[%s6808_s14 + $0x78] sm:$0xff] }
 0xb5c   : > { %v3467_v28 = vadd.f32 1e-05, %v3463_v43  ;;  %v4978_v48 = vpack.c.bf16 %v3687_v46, %v3686_v44  ;;  %v3531_v43 = vld [vmem:[%s6801_s0] sm:$0x3]  ;;  %s7810_s0 = sld [smem:[#allocation42_spill]] }
 0xb5d   : > { %5320 = vrsqrt.f32 %v3468_v25  ;;  %v3536_v25 = vrot.slane %v3531_v43, %v1637_v34 }
 0xb5e   : > { %5322 = vrsqrt.f32 %v3467_v28  ;;  %v3540_v28 = vrot.slane %v3531_v43, %v1641_v40  ;;  %v4388_v43 = vld [vmem:[%s1321_s25] ss:$0 sm:$0xff]  ;;  %s3805_s25 = scalar_lea.sflag [#allocation4], %s7812_s29 }
 0xb62   : > { %s4406_s16 = sshll.u32 %s7810_s0, 8 }
 0xb63   : > { %s7477_s3 = scalar_lea.hbm %s7814_s22, %s4406_s16 }
 0xb67   : > { %v5321_v56 = vpop.eup %5320 }
 0xb68   : > { %v5323_v31 = vpop.eup %5322  ;;  %v3476_v52 = vmul.f32 %v5321_v56, %v7373_v32 }
 0xb69   : > { %v3475_v50 = vmul.f32 %v5323_v31, %v7376_v57 }
 0xb6a   : > { %v3486_v59 = vmul.f32 %v4386_v27, %v3476_v52 }
 0xb6b   : > { %v3485_v41 = vmul.f32 %v4386_v27, %v3475_v50 }
 0xb6c   : > { %v3496_v61 = vadd.f32 %v4387_v55, %v3486_v59 }
 0xb6d   : > { %v3495_v58 = vadd.f32 %v4387_v55, %v3485_v41 }
 0xb6f   : > { %3608 = vmatmul.mubr.f32.vlgmr.msra.gmra.mrb[34].mxu1 %v3495_v58 }
 0xb70   : > { %3613 = vmatprep.mubr.f32.mxu1 %v5939_v23 }
 0xb73   : > { %3614 = vmatmul.mubr.f32.gmra.mrb[36].mxu1 %v3496_v61 }
 0xb74   : > { %3619 = vmatprep.mubr.f32.mxu1 %v5939_v23 }
 0xb8e   : > { %v3460_v36 = vpop.xlane.xlu1 %3459 }
 0xb8f   : > { %v3465_v62 = vmul.f32 0.0078125, %v3460_v36 }
 0xb91   : > { %v3469_v51 = vadd.f32 1e-05, %v3465_v62 }
 0xb92   : > { %v3462_v0 = vpop.xlane.xlu0 %3461 }
 0xb93   : > { %5324 = vrsqrt.f32 %v3469_v51  ;;  %v3466_v32 = vmul.f32 0.0078125, %v3462_v0 }
 0xb95   : > { %v3470_v57 = vadd.f32 1e-05, %v3466_v32 }
 0xb97   : > { %5326 = vrsqrt.f32 %v3470_v57 }
 0xb9d   : > { %v5325_v53 = vpop.eup %5324 }
 0xb9e   : > { %v3477_v1 = vmul.f32 %v5325_v53, %v7403_v38  ;;  %v4960_v38 = vpack.c.bf16 %v3695_v6, %v3694_v14 }
 0xba0   : > { %v3487_v3 = vmul.f32 %v4386_v27, %v3477_v1  ;;  %4961 = vmatprep.subr.bf16.mxu0 %v4960_v38 }
 0xba1   : > { %v5327_v7 = vpop.eup %5326  ;;  %4963 = vmatpush3.bf16.msra.mxu0 %v4962_v47 }
 0xba2   : > { %v3497_v8 = vadd.f32 %v4387_v55, %v3487_v3  ;;  %v3478_v39 = vmul.f32 %v5327_v7, %v7408_v5  ;;  %v3696_v5 = vld [vmem:[%s6808_s14 + $0xc0] sm:$0xff] }
 0xba3   : > { %v4964_v19 = vpack.c.bf16 %v3697_v49, %v3696_v5 }
 0xba4   : > { %3620 = vmatmul.mubr.f32.gmra.mrb[38].mxu1 %v3497_v8  ;;  %v3488_v35 = vmul.f32 %v4386_v27, %v3478_v39 }
 0xba5   : > { %3625 = vmatprep.mubr.f32.mxu1 %v5939_v23  ;;  %v3680_v23 = vld [vmem:[%s6808_s14 + $0x40] sm:$0xff]  ;;  %4965 = vmatprep.subr.bf16.mxu0 %v4964_v19 }
 0xba6   : > { %v3498_v11 = vadd.f32 %v4387_v55, %v3488_v35  ;;  %v4966_v9 = vpack.c.bf16 %v3681_v54, %v3680_v23 }
 0xba8   : > { %3626 = vmatmul.mubr.f32.gmra.mrb[40].mxu1 %v3498_v11  ;;  %4967 = vmatpush3.bf16.msra.mxu0 %v4966_v9 }
 0xba9   : > { %4969 = vmatprep.subr.bf16.mxu0 %v4968_v12 }
 0xbac   : > { %4971 = vmatpush3.bf16.msra.mxu0 %v4970_v26 }
 0xbad   : > { %4973 = vmatprep.subr.bf16.mxu0 %v4972_v4 }
 0xbb0   : > { %4975 = vmatpush3.bf16.msra.mxu0 %v4974_v63 }
 0xbb1   : > { %4977 = vmatprep.subr.bf16.mxu0 %v4976_v45 }
 0xbb4   : > { %4979 = vmatpush3.bf16.msra.mxu0 %v4978_v48 }
 0xc42   : > { %v3609_v56 = vpop.f32.mrb[34].mxu1 }
 0xc43   : > { %v3610_v31 = vadd.f32 %v3609_v56, %v3536_v25  ;;  %v3611_v27 = vpop.f32.mrb[35].mxu1 }
 0xc44   : > { %v3612_v50 = vadd.f32 %v3611_v27, %v3540_v28 }
 0xc45   : > { %v3640_v52 = vmul.f32 0.70710677, %v3610_v31  ;;  %v3632_v32 = vmul.f32 0.5, %v3610_v31 }
 0xc46   : > { %v3641_v55 = vmul.f32 0.70710677, %v3612_v50  ;;  %v3615_v41 = vpop.f32.mrb[36].mxu1  ;;  %v3633_v40 = vmul.f32 0.5, %v3612_v50 }
 0xc47   : > { %5328 = verf.f32 %v3640_v52  ;;  %v3616_v58 = vadd.f32 %v3615_v41, %v3536_v25  ;;  %v3617_v59 = vpop.f32.mrb[37].mxu1 }
 0xc48   : > { %5330 = verf.f32 %v3641_v55  ;;  %v3618_v61 = vadd.f32 %v3617_v59, %v3540_v28 }
 0xc49   : > { %v3642_v36 = vmul.f32 0.70710677, %v3616_v58  ;;  %v3634_v35 = vmul.f32 0.5, %v3616_v58 }
 0xc4a   : > { %v3643_v62 = vmul.f32 0.70710677, %v3618_v61  ;;  %v3635_v8 = vmul.f32 0.5, %v3618_v61 }
 0xc4b   : > { %5332 = verf.f32 %v3642_v36 }
 0xc4c   : > { %5334 = verf.f32 %v3643_v62 }
 0xc51   : > { %v5329_v34 = vpop.eup %5328 }
 0xc52   : > { %v5331_v51 = vpop.eup %5330  ;;  %v3656_v33 = vadd.f32 1.0, %v5329_v34 }
 0xc53   : > { %v3657_v0 = vadd.f32 1.0, %v5331_v51 }
 0xc54   : > { %v3664_v3 = vmul.f32 %v3656_v33, %v3632_v32 }
 0xc55   : > { %v5333_v57 = vpop.eup %5332  ;;  %v3665_v53 = vmul.f32 %v3657_v0, %v3633_v40 }
 0xc56   : > { %v5335_v1 = vpop.eup %5334  ;;  %v3658_v7 = vadd.f32 1.0, %v5333_v57 }
 0xc57   : > { %v3659_v39 = vadd.f32 1.0, %v5335_v1  ;;  %3775 = vmatprep.mubr.f32.mxu0 %v3665_v53 }
 0xc58   : > { %3776 = vmatmul.mubr.f32.vlgmr.msra.gmra.mrb[18].mxu0 %v3664_v3  ;;  %v3666_v14 = vmul.f32 %v3658_v7, %v3634_v35 }
 0xc59   : > { %v3667_v11 = vmul.f32 %v3659_v39, %v3635_v8 }
 0xc5b   : > { %3780 = vmatprep.mubr.f32.mxu0 %v3667_v11 }
 0xc5c   : > { %3781 = vmatmul.mubr.f32.gmra.mrb[20].mxu0 %v3666_v14 }
 0xc77   : > { %v3621_v6 = vpop.f32.mrb[38].mxu1 }
 0xc78   : > { %v3622_v38 = vadd.f32 %v3621_v6, %v3536_v25  ;;  %v3623_v15 = vpop.f32.mrb[39].mxu1 }
 0xc79   : > { %v3624_v17 = vadd.f32 %v3623_v15, %v3540_v28 }
 0xc7a   : > { %v3644_v47 = vmul.f32 0.70710677, %v3622_v38  ;;  %v3636_v16 = vmul.f32 0.5, %v3622_v38 }
 0xc7b   : > { %v3645_v5 = vmul.f32 0.70710677, %v3624_v17  ;;  %v3627_v49 = vpop.f32.mrb[40].mxu1  ;;  %v3637_v22 = vmul.f32 0.5, %v3624_v17 }
 0xc7c   : > { %5336 = verf.f32 %v3644_v47  ;;  %v3628_v19 = vadd.f32 %v3627_v49, %v3536_v25  ;;  %v3629_v23 = vpop.f32.mrb[41].mxu1 }
 0xc7d   : > { %5338 = verf.f32 %v3645_v5  ;;  %v3630_v54 = vadd.f32 %v3629_v23, %v3540_v28 }
 0xc7e   : > { %v3646_v9 = vmul.f32 0.70710677, %v3628_v19  ;;  %v3638_v45 = vmul.f32 0.5, %v3628_v19 }
 0xc7f   : > { %v3647_v20 = vmul.f32 0.70710677, %v3630_v54  ;;  %v3639_v18 = vmul.f32 0.5, %v3630_v54 }
 0xc80   : > { %5340 = verf.f32 %v3646_v9 }
 0xc81   : > { %5342 = verf.f32 %v3647_v20 }
 0xc86   : > { %v5337_v21 = vpop.eup %5336 }
 0xc87   : > { %v5339_v12 = vpop.eup %5338  ;;  %v3660_v2 = vadd.f32 1.0, %v5337_v21 }
 0xc88   : > { %v3661_v26 = vadd.f32 1.0, %v5339_v12 }
 0xc89   : > { %v3668_v63 = vmul.f32 %v3660_v2, %v3636_v16 }
 0xc8a   : > { %v5341_v37 = vpop.eup %5340  ;;  %v3669_v4 = vmul.f32 %v3661_v26, %v3637_v22 }
 0xc8b   : > { %v5343_v29 = vpop.eup %5342  ;;  %v3662_v30 = vadd.f32 1.0, %v5341_v37 }
 0xc8c   : > { %v3663_v24 = vadd.f32 1.0, %v5343_v29  ;;  %3785 = vmatprep.mubr.f32.mxu0 %v3669_v4 }
 0xc8d   : > { %3786 = vmatmul.mubr.f32.gmra.mrb[22].mxu0 %v3668_v63  ;;  %v3670_v46 = vmul.f32 %v3662_v30, %v3638_v45 }
 0xc8e   : > { %v3671_v44 = vmul.f32 %v3663_v24, %v3639_v18 }
 0xc90   : > { %3790 = vmatprep.mubr.f32.mxu0 %v3671_v44 }
 0xc91   : > { %3791 = vmatmul.mubr.f32.gmra.mrb[24].mxu0 %v3670_v46 }
 0xd2b   : > { %v4554_v48 = vpop.f32.mrb[18].mxu0 }
 0xd2c   : > { %v4555_v25 = vpop.f32.mrb[19].mxu0 }
 0xd2d   : > { %v4556_v28 = vadd.f32 %v4555_v25, %v4554_v48 }
 0xd2f   : > { %v3778_v56 = vadd.f32 %v4556_v28, %v4388_v43  ;;  %v4557_v31 = vpop.f32.mrb[20].mxu0 }
 0xd30   : > { %v4558_v27 = vpop.f32.mrb[21].mxu0 }
 0xd31   : > { %v3796_v50 = vadd.f32 %v3778_v56, %v7348_v42  ;;  %v4559_v52 = vadd.f32 %v4558_v27, %v4557_v31 }
 0xd33   : > { %3800 = vst [vmem:[%s6811_s15] sm:$0xff] %v3796_v50  ;;  %v3783_v55 = vadd.f32 %v4559_v52, %v4388_v43 }
 0xd35   : > { %v3797_v41 = vadd.f32 %v3783_v55, %v7345_v60 }
 0xd37   : > { %3801 = vst [vmem:[%s6811_s15 + $0x8] sm:$0xff] %v3797_v41 }
 0xd38   : > { %5751 = shalt.err (!%p5748_p7)
}
 0xd39   : > { %s5752_s15 = scalar_lea.hbm %s7477_s3, 256  ;;  %s5756_s26 = scalar_lea.hbm %s7814_s22, 512 }
 0xd3a   : > { %p5753_p4 = scmp.ne.s32.totalorder %s7477_s3, %s5752_s15  ;;  %p5757_p10 = scmp.lt.u32.totalorder %s7477_s3, %s7814_s22 }
 0xd3b   : > { %p5758_p12 = scmp.lt.u32.totalorder %s5756_s26, %s5752_s15  ;;  %p5760_p13 = scmp.lt.u32.totalorder %s5752_s15, %s7477_s3 }
 0xd3c   : > { %p5754_p5 = pnand %p5753_p4, %p7815_p1 }
 0xd3d   : > { %p5759_p0 = por %p5758_p12, %p5757_p10 }
 0xd3e   : > { %p5755_p3 = pneg %p5754_p5 }
 0xd3f   : > { %p5761_p9 = por %p5760_p13, %p5759_p0 }
 0xd41   : > { %p5762_p8 = pnand %p5761_p9, %p5755_p3 }
 0xd43   : > { %5765 = shalt.err (!%p5762_p8)
}
 0xd44   : > { %s5944_s20 = smov 128   ;;  %s5945_s28 = smov 8  }
 0xd45   : > { %5010 = dma.vmem_to_hbm [thread:$0]  (%p7815_p1), %s7479_s9, 256, %s7477_s3, %s3805_s25, %s5944_s20, %s5944_s20, %s5945_s28  }
 0xd46   : > { %s3839_s18 = sshll.u32 %s6814_s6, 4  ;;  %s7816_s8 = sld [smem:[#allocation81_spill]]  ;;  %s7521_s18 = int_to_ptr.vmem [resolvable:$true] %s3839_s18 }
 0xd47   : > { %s3810_s7 = scalar_lea.sflag [#allocation25], %s7812_s29  ;;  %s5766_s23 = scalar_lea.vmem %s7521_s18, 256 }
 0xd48   : > { %p5767_p2 = scmp.ne.s32.totalorder %s7521_s18, %s5766_s23  ;;  %s5946_s14 = smov [#allocation24]  }
 0xd49   : > { %s5770_s9 = sshll.u32 %s5946_s14, 4  ;;  %s5771_s9 = int_to_ptr.vmem [resolvable:$false] %s5770_s9 }
 0xd4a   : > { %p5768_p6 = pnand %p5767_p2, %p7815_p1  ;;  %s5772_s0 = scalar_lea.vmem %s5771_s9, 512 }
 0xd4b   : > { %p5773_p7 = scmp.lt.s32.totalorder %s7521_s18, %s5771_s9  ;;  %p5774_p4 = scmp.lt.s32.totalorder %s5772_s0, %s5766_s23 }
 0xd4c   : > { %s7519_s21 = scalar_lea.hbm %s7816_s8, %s4406_s16  ;;  %p5769_p11 = pneg %p5768_p6 }
 0xd4d   : > { %p5775_p5 = por %p5774_p4, %p5773_p7 }
 0xd4f   : > { %p5776_p3 = pnand %p5775_p5, %p5769_p11 }
 0xd60   : > { %v4560_v60 = vpop.f32.mrb[22].mxu0 }
 0xd61   : > { %v4561_v42 = vpop.f32.mrb[23].mxu0 }
 0xd62   : > { %v4562_v58 = vadd.f32 %v4561_v42, %v4560_v60 }
 0xd64   : > { %v3788_v59 = vadd.f32 %v4562_v58, %v4388_v43  ;;  %v4563_v61 = vpop.f32.mrb[24].mxu0 }
 0xd65   : > { %v4564_v36 = vpop.f32.mrb[25].mxu0 }
 0xd66   : > { %v3798_v62 = vadd.f32 %v3788_v59, %v7353_v10  ;;  %v4565_v34 = vadd.f32 %v4564_v36, %v4563_v61 }
 0xd68   : > { %3802 = vst [vmem:[%s6814_s6] sm:$0xff] %v3798_v62  ;;  %v3793_v51 = vadd.f32 %v4565_v34, %v4388_v43 }
 0xd6a   : > { %v3799_v33 = vadd.f32 %v3793_v51, %v7357_v13 }
 0xd6c   : > { %3803 = vst [vmem:[%s6814_s6 + $0x8] sm:$0xff] %v3799_v33 }
 0xd6d   : > { %5779 = shalt.err (!%p5776_p3)
}
 0xd6e   : > { %s5780_s6 = scalar_lea.hbm %s7519_s21, 256  ;;  %s5784_s13 = scalar_lea.hbm %s7816_s8, 512 }
 0xd6f   : > { %p5781_p10 = scmp.ne.s32.totalorder %s7519_s21, %s5780_s6  ;;  %p5785_p13 = scmp.lt.u32.totalorder %s7519_s21, %s7816_s8 }
 0xd70   : > { %p5786_p9 = scmp.lt.u32.totalorder %s5784_s13, %s5780_s6  ;;  %p5788_p2 = scmp.lt.u32.totalorder %s5780_s6, %s7519_s21 }
 0xd71   : > { %p5782_p12 = pnand %p5781_p10, %p7815_p1 }
 0xd72   : > { %p5787_p8 = por %p5786_p9, %p5785_p13 }
 0xd73   : > { %p5783_p0 = pneg %p5782_p12 }
 0xd74   : > { %p5789_p6 = por %p5788_p2, %p5787_p8 }
 0xd76   : > { %p5790_p11 = pnand %p5789_p6, %p5783_p0 }
 0xd78   : > { %5793 = shalt.err (!%p5790_p11)
}
 0xd79   : > { %5011 = dma.vmem_to_hbm [thread:$0]  (%p7815_p1), %s7521_s18, 256, %s7519_s21, %s3810_s7, %s5944_s20, %s5944_s20, %s5945_s28  }
 0xd7a PF: > { %s7817_s27 = sld [smem:[#allocation45_spill]]  ;;  %s7818_s24 = sld [smem:[#allocation38_spill]] }
 0xd7b   : > { %s7819_s2 = sld [smem:[#allocation54_spill]] }
 0xd80   : > { %p5062_p7 = scmp.ge.s32.totalorder %s7817_s27, 2  ;;  %s3854_s10 = sand.u32 1, %s7818_s24  }
 0xd81   : > { %p7820_p4 = scmp.ne.s32.totalorder %s7819_s2, 0  ;;  %s3855_s15 = scalar_lea.sflag [#allocation4], %s3854_s10 }
 0xd83   : > { %p5055_p5 = pnand %p5062_p7, %p7820_p4 }
 0xd85   : > { %5871 = dma.done.wait (!%p5055_p5), %s3855_s15, 256  }
 0xd86   : > { %5873 = vsyncadd (!%p5055_p5), %s3855_s15, 4294967040  ;;  %s3864_s30 = scalar_lea.sflag [#allocation25], %s3854_s10 }
 0xd87   : > { %5875 = dma.done.wait (!%p5055_p5), %s3864_s30, 256  }
 0xd88   : > { %5877 = vsyncadd (!%p5055_p5), %s3864_s30, 4294967040  ;;  %s61_s7 = sadd.s32 1, %s7817_s27   ;;  %s7821_s4 = sld [smem:[#allocation36_spill]] }
 0xd89   : > { %p58_p3 = scmp.ge.s32.totalorder %s61_s7, 6   ;;  %s7822_s30 = sld [smem:[#allocation37_spill]] }
 0xd8a   : > { %s7823_s24 = sld [smem:[#allocation50_spill]]  ;;  %s7824_s25 = sld [smem:[#allocation39_spill]] }
 0xd8b   : > { %s7825_s5 = sld [smem:[#allocation40_spill]]  ;;  %s7826_s1 = sld [smem:[#allocation51_spill]] }
 0xd8c   : > { %s7827_s26 = sld [smem:[#allocation43_spill]]  ;;  %s7828_s2 = sld [smem:[#allocation44_spill]] }
 0xd8d   : > { %s7829_s6 = sld [smem:[#allocation47_spill]]  ;;  %s7830_s27 = sld [smem:[#allocation48_spill]] }
 0xd8e   :  { %60 = sbr.rel (!%p58_p3) target bundleno = 48 (0x30), region = 345 }
 0xd95   :  { %3869 = vsyncpa [#allocation3], 1 }
 0xd96   :  { %3871 = vsyncpa [#allocation3 + $0x1], 1 }
 0xd97   :  { %3872 = vsyncpa [#allocation6], 1 }
 0xd98   :  { %3874 = vsyncpa [#allocation6 + $0x1], 1 }
 0xd99   :  { %3875 = vsyncpa [#allocation9], 1 }
 0xd9a   :  { %3877 = vsyncpa [#allocation9 + $0x1], 1 }
 0xd9b   :  { %3878 = vsyncpa [#allocation12], 1 }
 0xd9c   :  { %3880 = vsyncpa [#allocation12 + $0x1], 1 }
 0xd9d   :  { %3881 = vsyncpa [#allocation15], 1 }
 0xd9e   :  { %3883 = vsyncpa [#allocation15 + $0x1], 1 }
 0xd9f   :  { %3884 = vsyncpa [#allocation18], 1 }
 0xda0   :  { %3886 = vsyncpa [#allocation18 + $0x1], 1 }
 0xda1   :  { %3887 = vsyncpa [#allocation21], 1 }
 0xda2   :  { %3889 = vsyncpa [#allocation21 + $0x1], 1 }
 0xda3   :  { %3890 = vsyncpa [#allocation4], 1 }
 0xda4   :  { %3892 = vsyncpa [#allocation4 + $0x1], 1 }
 0xda5   :  { %3893 = vsyncpa [#allocation25], 1 }
 0xda6   :  { %3895 = vsyncpa [#allocation25 + $0x1], 1 }

</bundles_post_ra>
